<compile_context>
chip_gen: v6e
topology: v6e:2x2x1
jax: 0.10.0
libtpu: 0.0.40
codegen_flags: <defaults>
</compile_context>

<pallas_src>
import functools

import jax
import jax.numpy as jnp
from jax import lax
from jax.experimental import pallas as pl
from jax.experimental.pallas import tpu as pltpu

K = 3                          # all convs are 3x3, stride 1, padding 1
CHANNELS = [3, 16, 32, 32, 12]  # [in] + hidden + [out]


def _round_up(x, m):
    return (x + m - 1) // m * m


# --------------------------------------------------------------------------
# Pallas kernel: fused conv(3x3) + bias + ReLU + maxpool(2x2) for one block
# --------------------------------------------------------------------------

def _block_kernel(xg_ref, w_ref, b_ref, o_ref, *, wg, tm, nsteps):
    """Fused Conv3x3 -> ReLU -> MaxPool2d(2) on a phase-split flattened input.

    xg_ref: (4, Cin, L)  bf16  2x2 phase grids of the padded input, flattened
                               (b, row, col)-major, zero tail-padded to L.
    w_ref : (Cout, 9*Cin) bf16 conv weight, columns ordered (kh, kw, ci).
    b_ref : (Cout, 1)     f32  bias.
    o_ref : (Cout, tm)    f32  pooled output columns [col0, col0+tm).

    For output flat column m (pooled pixel) and pool phase (dh, dw), the tap
    (kh, kw) reads phase grid (s, t) = ((dh+kh)%2, (dw+kw)%2) at flat offset
    a*wg + c with a = (dh+kh)//2, c = (dw+kw)//2 -- a contiguous lane slice.
    """
    if nsteps == 1:
        col0 = 0                                   # fully static slices
    else:
        col0 = pl.multiple_of(pl.program_id(0) * tm, 128)

    # Build the (9*Cin, 4*tm) patch matrix in VMEM/vregs (never in HBM):
    # taps along the contraction dim, the 4 pool phases along lanes.
    phase_mats = []
    for dh in (0, 1):
        for dw in (0, 1):
            taps = []
            for kh in range(K):
                s, a = (dh + kh) % 2, (dh + kh) // 2
                for kw in range(K):
                    t, c = (dw + kw) % 2, (dw + kw) // 2
                    off = a * wg + c
                    taps.append(xg_ref[2 * s + t, :, pl.ds(col0 + off, tm)])
            phase_mats.append(jnp.concatenate(taps, axis=0))      # (9*Cin, tm)
    patches = jnp.concatenate(phase_mats, axis=1)                 # (9*Cin, 4*tm)

    # One wide MXU matmul (bf16 operands, f32 accumulation).
    acc = jnp.dot(w_ref[...], patches, preferred_element_type=jnp.float32)

    # MaxPool over the 4 lane-aligned phase chunks, then bias + ReLU (hoisted:
    # exact because ReLU(x + b) is monotone in x with b shared across phases).
    pooled = acc[:, 0:tm]
    for q in range(1, 4):
        pooled = jnp.maximum(pooled, acc[:, q * tm:(q + 1) * tm])
    o_ref[...] = jnp.maximum(pooled + b_ref[...], 0.0)


# --------------------------------------------------------------------------
# Glue: pad + 2x2 space-to-depth + flatten (the only per-block XLA work)
# --------------------------------------------------------------------------

def _phase_grids(h):
    """(C, B, H, W) f32 -> (4, C, L) bf16 phase grids of the padded input.

    Grid (s, t): xg[2*s+t, c, b*Hg*Wg + i*Wg + j] = x_pad[c, b, 2i+s, 2j+t]
    with Hg = H/2 + 1, Wg = W/2 + 1, plus >= Wg+1 zero tail columns so the
    in-kernel shifted slices never read out of bounds.  L is a multiple of 128.
    """
    C, B, H, W = h.shape
    assert H % 2 == 0 and W % 2 == 0, (H, W)
    Hg, Wg = H // 2 + 1, W // 2 + 1
    xp = jnp.pad(h.astype(jnp.bfloat16), ((0, 0), (0, 0), (1, 1), (1, 1)))
    xg = xp.reshape(C, B, Hg, 2, Wg, 2)
    xg = jnp.transpose(xg, (3, 5, 0, 1, 2, 4))        # (2, 2, C, B, Hg, Wg)
    N = B * Hg * Wg
    xg = xg.reshape(4, C, N)
    NO = _round_up(N, 128)                            # lane-dense output width
    L = NO + _round_up(Wg + 1, 128)                   # slack for shifted slices
    xg = jnp.pad(xg, ((0, 0), (0, 0), (0, L - N)))
    return xg, N, NO, L, Hg, Wg


def _pick_tm(NO):
    """Output lane-tile: multiple of 128 dividing NO; >=2 steps only when big."""
    if NO < 1024:
        return NO                                     # one block, static slices
    tm = min(4096, (NO // 2) // 128 * 128)            # >=2 steps -> v7x megacore
    while NO % tm:
        tm -= 128
    return max(tm, 128)


def conv3x3_relu_pool(h, w, b):
    """One encoder block. h is (Cin, B, H, W); returns (Cout, B, H//2, W//2)."""
    Cout, Cin = w.shape[0], w.shape[1]
    _, B, H, W = h.shape
    Ho, Wo = H // 2, W // 2

    xg, N, NO, L, Hg, Wg = _phase_grids(h)
    w2 = jnp.transpose(w, (0, 2, 3, 1)).reshape(Cout, K * K * Cin)
    w2 = w2.astype(jnp.bfloat16)                      # (kh, kw, ci) columns
    b2 = b.reshape(Cout, 1).astype(jnp.float32)

    tm = _pick_tm(NO)
    nsteps = NO // tm
    kernel = functools.partial(_block_kernel, wg=Wg, tm=tm, nsteps=nsteps)

    out = pl.pallas_call(
        kernel,
        out_shape=jax.ShapeDtypeStruct((Cout, NO), jnp.float32),
        grid=(nsteps,),
        in_specs=[
            # Whole phase grid stays resident in VMEM (tiny for encoder-sized
            # activations); constant block index -> fetched once per core.
            pl.BlockSpec((4, Cin, L), lambda i: (0, 0, 0)),
            pl.BlockSpec((Cout, K * K * Cin), lambda i: (0, 0)),
            pl.BlockSpec((Cout, 1), lambda i: (0, 0)),
        ],
        out_specs=pl.BlockSpec((Cout, tm), lambda i: (0, i)),
        compiler_params=pltpu.CompilerParams(
            dimension_semantics=("parallel",)),
    )(xg, w2, b2)

    # Drop the padded-grid garbage rows/columns (finite, never used).
    out = out[:, :N].reshape(Cout, B, Hg, Wg)[:, :, :Ho, :Wo]
    return out


# --------------------------------------------------------------------------
# Encoder forward
# --------------------------------------------------------------------------

def init_params(key):
    params = []
    ks = jax.random.split(key, 2 * (len(CHANNELS) - 1))
    for i in range(len(CHANNELS) - 1):
        cin, cout = CHANNELS[i], CHANNELS[i + 1]
        w = jax.random.normal(ks[2 * i], (cout, cin, K, K), jnp.float32)
        w = w / (cin * K * K) ** 0.5
        b = 0.01 * jax.random.normal(ks[2 * i + 1], (cout,), jnp.float32)
        params.append((w, b))
    return params


def encoder_forward(params, x_nchw):
    h = jnp.transpose(x_nchw, (1, 0, 2, 3))          # NCHW -> (C, B, H, W), once
    for (w, b) in params:
        h = conv3x3_relu_pool(h, w, b)
    return jnp.transpose(h, (1, 0, 2, 3))            # back to NCHW


# --------------------------------------------------------------------------
# Pure-JAX reference (for correctness check)
# --------------------------------------------------------------------------

def reference_forward(params, x_nchw):
    h = x_nchw
    for (w, b) in params:
        h = lax.conv_general_dilated(
            h, w, window_strides=(1, 1), padding=((1, 1), (1, 1)),
            dimension_numbers=("NCHW", "OIHW", "NCHW"))
        h = jnp.maximum(h + b.reshape(1, -1, 1, 1), 0.0)
        h = lax.reduce_window(h, -jnp.inf, lax.max,
                              (1, 1, 2, 2), (1, 1, 2, 2), "VALID")
    return h


if __name__ == "__main__":
    B, Cin, H, W = 2, 3, 32, 32
    key = jax.random.PRNGKey(0)
    kx, kp = jax.random.split(key)
    x = jax.random.normal(kx, (B, Cin, H, W), jnp.float32)
    params = init_params(kp)

    fwd = jax.jit(encoder_forward)
    out = jax.block_until_ready(fwd(params, x))

    assert out.shape == (B, CHANNELS[-1], H // 16, W // 16), out.shape
    assert out.dtype == jnp.float32
    assert bool(jnp.all(jnp.isfinite(out)))
    assert bool(jnp.all(out >= 0.0))  # ReLU before each max-pool

    ref = jax.block_until_ready(jax.jit(reference_forward)(params, x))
    # bf16 matmul operands with f32 accumulation -> ~1% worst-case deviation.
    assert bool(jnp.allclose(out, ref, atol=2e-2, rtol=2e-2)), (
        float(jnp.max(jnp.abs(out - ref))))

    print("KERNEL_OK")
</pallas_src>

<mosaic_0001>
module attributes {stable_mosaic.version = 11 : i64} {
  func.func @_block_kernel(%arg0: i32, %arg1: memref<4x3x768xbf16, #tpu.memory_space<vmem>>, %arg2: memref<16x27xbf16, #tpu.memory_space<vmem>>, %arg3: memref<16x1xf32, #tpu.memory_space<vmem>>, %arg4: memref<16x640xf32, #tpu.memory_space<vmem>>) attributes {dimension_semantics = [#tpu.dimension_semantics<parallel>], iteration_bounds = array<i64: 1>, scalar_prefetch = 0 : i64, scratch_operands = 0 : i64, tpu.core_type = #tpu.core_type<tc>, window_params = [{pipeline_mode = #tpu.pipeline_mode<synchronous>, transform_indices = @transform_0, window_bounds = array<i64: 4, 3, 768>}, {pipeline_mode = #tpu.pipeline_mode<synchronous>, transform_indices = @transform_1, window_bounds = array<i64: 16, 27>}, {pipeline_mode = #tpu.pipeline_mode<synchronous>, transform_indices = @transform_2, window_bounds = array<i64: 16, 1>}, {transform_indices = @transform_3, window_bounds = array<i64: 16, 640>}]} {
    %c0 = arith.constant 0 : index
    %c0_0 = arith.constant 0 : index
    %c0_1 = arith.constant 0 : index
    %0 = vector.load %arg1[%c0, %c0_0, %c0_1] : memref<4x3x768xbf16, #tpu.memory_space<vmem>>, vector<1x3x640xbf16>
    %1 = vector.shape_cast %0 : vector<1x3x640xbf16> to vector<3x640xbf16>
    %c1 = arith.constant 1 : index
    %c0_2 = arith.constant 0 : index
    %c0_3 = arith.constant 0 : index
    %2 = vector.load %arg1[%c1, %c0_2, %c0_3] : memref<4x3x768xbf16, #tpu.memory_space<vmem>>, vector<1x3x640xbf16>
    %3 = vector.shape_cast %2 : vector<1x3x640xbf16> to vector<3x640xbf16>
    %c0_4 = arith.constant 0 : index
    %c0_5 = arith.constant 0 : index
    %c1_6 = arith.constant 1 : index
    %4 = vector.load %arg1[%c0_4, %c0_5, %c1_6] : memref<4x3x768xbf16, #tpu.memory_space<vmem>>, vector<1x3x640xbf16>
    %5 = vector.shape_cast %4 : vector<1x3x640xbf16> to vector<3x640xbf16>
    %c2 = arith.constant 2 : index
    %c0_7 = arith.constant 0 : index
    %c0_8 = arith.constant 0 : index
    %6 = vector.load %arg1[%c2, %c0_7, %c0_8] : memref<4x3x768xbf16, #tpu.memory_space<vmem>>, vector<1x3x640xbf16>
    %7 = vector.shape_cast %6 : vector<1x3x640xbf16> to vector<3x640xbf16>
    %c3 = arith.constant 3 : index
    %c0_9 = arith.constant 0 : index
    %c0_10 = arith.constant 0 : index
    %8 = vector.load %arg1[%c3, %c0_9, %c0_10] : memref<4x3x768xbf16, #tpu.memory_space<vmem>>, vector<1x3x640xbf16>
    %9 = vector.shape_cast %8 : vector<1x3x640xbf16> to vector<3x640xbf16>
    %c2_11 = arith.constant 2 : index
    %c0_12 = arith.constant 0 : index
    %c1_13 = arith.constant 1 : index
    %10 = vector.load %arg1[%c2_11, %c0_12, %c1_13] : memref<4x3x768xbf16, #tpu.memory_space<vmem>>, vector<1x3x640xbf16>
    %11 = vector.shape_cast %10 : vector<1x3x640xbf16> to vector<3x640xbf16>
    %c0_14 = arith.constant 0 : index
    %c0_15 = arith.constant 0 : index
    %c17 = arith.constant 17 : index
    %12 = vector.load %arg1[%c0_14, %c0_15, %c17] : memref<4x3x768xbf16, #tpu.memory_space<vmem>>, vector<1x3x640xbf16>
    %13 = vector.shape_cast %12 : vector<1x3x640xbf16> to vector<3x640xbf16>
    %c1_16 = arith.constant 1 : index
    %c0_17 = arith.constant 0 : index
    %c17_18 = arith.constant 17 : index
    %14 = vector.load %arg1[%c1_16, %c0_17, %c17_18] : memref<4x3x768xbf16, #tpu.memory_space<vmem>>, vector<1x3x640xbf16>
    %15 = vector.shape_cast %14 : vector<1x3x640xbf16> to vector<3x640xbf16>
    %c0_19 = arith.constant 0 : index
    %c0_20 = arith.constant 0 : index
    %c18 = arith.constant 18 : index
    %16 = vector.load %arg1[%c0_19, %c0_20, %c18] : memref<4x3x768xbf16, #tpu.memory_space<vmem>>, vector<1x3x640xbf16>
    %17 = vector.shape_cast %16 : vector<1x3x640xbf16> to vector<3x640xbf16>
    %18 = tpu.concatenate %1, %3, %5, %7, %9, %11, %13, %15, %17 in 0 : vector<3x640xbf16>, vector<3x640xbf16>, vector<3x640xbf16>, vector<3x640xbf16>, vector<3x640xbf16>, vector<3x640xbf16>, vector<3x640xbf16>, vector<3x640xbf16>, vector<3x640xbf16> -> vector<27x640xbf16>
    %c1_21 = arith.constant 1 : index
    %c0_22 = arith.constant 0 : index
    %c0_23 = arith.constant 0 : index
    %19 = vector.load %arg1[%c1_21, %c0_22, %c0_23] : memref<4x3x768xbf16, #tpu.memory_space<vmem>>, vector<1x3x640xbf16>
    %20 = vector.shape_cast %19 : vector<1x3x640xbf16> to vector<3x640xbf16>
    %c0_24 = arith.constant 0 : index
    %c0_25 = arith.constant 0 : index
    %c1_26 = arith.constant 1 : index
    %21 = vector.load %arg1[%c0_24, %c0_25, %c1_26] : memref<4x3x768xbf16, #tpu.memory_space<vmem>>, vector<1x3x640xbf16>
    %22 = vector.shape_cast %21 : vector<1x3x640xbf16> to vector<3x640xbf16>
    %c1_27 = arith.constant 1 : index
    %c0_28 = arith.constant 0 : index
    %c1_29 = arith.constant 1 : index
    %23 = vector.load %arg1[%c1_27, %c0_28, %c1_29] : memref<4x3x768xbf16, #tpu.memory_space<vmem>>, vector<1x3x640xbf16>
    %24 = vector.shape_cast %23 : vector<1x3x640xbf16> to vector<3x640xbf16>
    %c3_30 = arith.constant 3 : index
    %c0_31 = arith.constant 0 : index
    %c0_32 = arith.constant 0 : index
    %25 = vector.load %arg1[%c3_30, %c0_31, %c0_32] : memref<4x3x768xbf16, #tpu.memory_space<vmem>>, vector<1x3x640xbf16>
    %26 = vector.shape_cast %25 : vector<1x3x640xbf16> to vector<3x640xbf16>
    %c2_33 = arith.constant 2 : index
    %c0_34 = arith.constant 0 : index
    %c1_35 = arith.constant 1 : index
    %27 = vector.load %arg1[%c2_33, %c0_34, %c1_35] : memref<4x3x768xbf16, #tpu.memory_space<vmem>>, vector<1x3x640xbf16>
    %28 = vector.shape_cast %27 : vector<1x3x640xbf16> to vector<3x640xbf16>
    %c3_36 = arith.constant 3 : index
    %c0_37 = arith.constant 0 : index
    %c1_38 = arith.constant 1 : index
    %29 = vector.load %arg1[%c3_36, %c0_37, %c1_38] : memref<4x3x768xbf16, #tpu.memory_space<vmem>>, vector<1x3x640xbf16>
    %30 = vector.shape_cast %29 : vector<1x3x640xbf16> to vector<3x640xbf16>
    %c1_39 = arith.constant 1 : index
    %c0_40 = arith.constant 0 : index
    %c17_41 = arith.constant 17 : index
    %31 = vector.load %arg1[%c1_39, %c0_40, %c17_41] : memref<4x3x768xbf16, #tpu.memory_space<vmem>>, vector<1x3x640xbf16>
    %32 = vector.shape_cast %31 : vector<1x3x640xbf16> to vector<3x640xbf16>
    %c0_42 = arith.constant 0 : index
    %c0_43 = arith.constant 0 : index
    %c18_44 = arith.constant 18 : index
    %33 = vector.load %arg1[%c0_42, %c0_43, %c18_44] : memref<4x3x768xbf16, #tpu.memory_space<vmem>>, vector<1x3x640xbf16>
    %34 = vector.shape_cast %33 : vector<1x3x640xbf16> to vector<3x640xbf16>
    %c1_45 = arith.constant 1 : index
    %c0_46 = arith.constant 0 : index
    %c18_47 = arith.constant 18 : index
    %35 = vector.load %arg1[%c1_45, %c0_46, %c18_47] : memref<4x3x768xbf16, #tpu.memory_space<vmem>>, vector<1x3x640xbf16>
    %36 = vector.shape_cast %35 : vector<1x3x640xbf16> to vector<3x640xbf16>
    %37 = tpu.concatenate %20, %22, %24, %26, %28, %30, %32, %34, %36 in 0 : vector<3x640xbf16>, vector<3x640xbf16>, vector<3x640xbf16>, vector<3x640xbf16>, vector<3x640xbf16>, vector<3x640xbf16>, vector<3x640xbf16>, vector<3x640xbf16>, vector<3x640xbf16> -> vector<27x640xbf16>
    %c2_48 = arith.constant 2 : index
    %c0_49 = arith.constant 0 : index
    %c0_50 = arith.constant 0 : index
    %38 = vector.load %arg1[%c2_48, %c0_49, %c0_50] : memref<4x3x768xbf16, #tpu.memory_space<vmem>>, vector<1x3x640xbf16>
    %39 = vector.shape_cast %38 : vector<1x3x640xbf16> to vector<3x640xbf16>
    %c3_51 = arith.constant 3 : index
    %c0_52 = arith.constant 0 : index
    %c0_53 = arith.constant 0 : index
    %40 = vector.load %arg1[%c3_51, %c0_52, %c0_53] : memref<4x3x768xbf16, #tpu.memory_space<vmem>>, vector<1x3x640xbf16>
    %41 = vector.shape_cast %40 : vector<1x3x640xbf16> to vector<3x640xbf16>
    %c2_54 = arith.constant 2 : index
    %c0_55 = arith.constant 0 : index
    %c1_56 = arith.constant 1 : index
    %42 = vector.load %arg1[%c2_54, %c0_55, %c1_56] : memref<4x3x768xbf16, #tpu.memory_space<vmem>>, vector<1x3x640xbf16>
    %43 = vector.shape_cast %42 : vector<1x3x640xbf16> to vector<3x640xbf16>
    %c0_57 = arith.constant 0 : index
    %c0_58 = arith.constant 0 : index
    %c17_59 = arith.constant 17 : index
    %44 = vector.load %arg1[%c0_57, %c0_58, %c17_59] : memref<4x3x768xbf16, #tpu.memory_space<vmem>>, vector<1x3x640xbf16>
    %45 = vector.shape_cast %44 : vector<1x3x640xbf16> to vector<3x640xbf16>
    %c1_60 = arith.constant 1 : index
    %c0_61 = arith.constant 0 : index
    %c17_62 = arith.constant 17 : index
    %46 = vector.load %arg1[%c1_60, %c0_61, %c17_62] : memref<4x3x768xbf16, #tpu.memory_space<vmem>>, vector<1x3x640xbf16>
    %47 = vector.shape_cast %46 : vector<1x3x640xbf16> to vector<3x640xbf16>
    %c0_63 = arith.constant 0 : index
    %c0_64 = arith.constant 0 : index
    %c18_65 = arith.constant 18 : index
    %48 = vector.load %arg1[%c0_63, %c0_64, %c18_65] : memref<4x3x768xbf16, #tpu.memory_space<vmem>>, vector<1x3x640xbf16>
    %49 = vector.shape_cast %48 : vector<1x3x640xbf16> to vector<3x640xbf16>
    %c2_66 = arith.constant 2 : index
    %c0_67 = arith.constant 0 : index
    %c17_68 = arith.constant 17 : index
    %50 = vector.load %arg1[%c2_66, %c0_67, %c17_68] : memref<4x3x768xbf16, #tpu.memory_space<vmem>>, vector<1x3x640xbf16>
    %51 = vector.shape_cast %50 : vector<1x3x640xbf16> to vector<3x640xbf16>
    %c3_69 = arith.constant 3 : index
    %c0_70 = arith.constant 0 : index
    %c17_71 = arith.constant 17 : index
    %52 = vector.load %arg1[%c3_69, %c0_70, %c17_71] : memref<4x3x768xbf16, #tpu.memory_space<vmem>>, vector<1x3x640xbf16>
    %53 = vector.shape_cast %52 : vector<1x3x640xbf16> to vector<3x640xbf16>
    %c2_72 = arith.constant 2 : index
    %c0_73 = arith.constant 0 : index
    %c18_74 = arith.constant 18 : index
    %54 = vector.load %arg1[%c2_72, %c0_73, %c18_74] : memref<4x3x768xbf16, #tpu.memory_space<vmem>>, vector<1x3x640xbf16>
    %55 = vector.shape_cast %54 : vector<1x3x640xbf16> to vector<3x640xbf16>
    %56 = tpu.concatenate %39, %41, %43, %45, %47, %49, %51, %53, %55 in 0 : vector<3x640xbf16>, vector<3x640xbf16>, vector<3x640xbf16>, vector<3x640xbf16>, vector<3x640xbf16>, vector<3x640xbf16>, vector<3x640xbf16>, vector<3x640xbf16>, vector<3x640xbf16> -> vector<27x640xbf16>
    %c3_75 = arith.constant 3 : index
    %c0_76 = arith.constant 0 : index
    %c0_77 = arith.constant 0 : index
    %57 = vector.load %arg1[%c3_75, %c0_76, %c0_77] : memref<4x3x768xbf16, #tpu.memory_space<vmem>>, vector<1x3x640xbf16>
    %58 = vector.shape_cast %57 : vector<1x3x640xbf16> to vector<3x640xbf16>
    %c2_78 = arith.constant 2 : index
    %c0_79 = arith.constant 0 : index
    %c1_80 = arith.constant 1 : index
    %59 = vector.load %arg1[%c2_78, %c0_79, %c1_80] : memref<4x3x768xbf16, #tpu.memory_space<vmem>>, vector<1x3x640xbf16>
    %60 = vector.shape_cast %59 : vector<1x3x640xbf16> to vector<3x640xbf16>
    %c3_81 = arith.constant 3 : index
    %c0_82 = arith.constant 0 : index
    %c1_83 = arith.constant 1 : index
    %61 = vector.load %arg1[%c3_81, %c0_82, %c1_83] : memref<4x3x768xbf16, #tpu.memory_space<vmem>>, vector<1x3x640xbf16>
    %62 = vector.shape_cast %61 : vector<1x3x640xbf16> to vector<3x640xbf16>
    %c1_84 = arith.constant 1 : index
    %c0_85 = arith.constant 0 : index
    %c17_86 = arith.constant 17 : index
    %63 = vector.load %arg1[%c1_84, %c0_85, %c17_86] : memref<4x3x768xbf16, #tpu.memory_space<vmem>>, vector<1x3x640xbf16>
    %64 = vector.shape_cast %63 : vector<1x3x640xbf16> to vector<3x640xbf16>
    %c0_87 = arith.constant 0 : index
    %c0_88 = arith.constant 0 : index
    %c18_89 = arith.constant 18 : index
    %65 = vector.load %arg1[%c0_87, %c0_88, %c18_89] : memref<4x3x768xbf16, #tpu.memory_space<vmem>>, vector<1x3x640xbf16>
    %66 = vector.shape_cast %65 : vector<1x3x640xbf16> to vector<3x640xbf16>
    %c1_90 = arith.constant 1 : index
    %c0_91 = arith.constant 0 : index
    %c18_92 = arith.constant 18 : index
    %67 = vector.load %arg1[%c1_90, %c0_91, %c18_92] : memref<4x3x768xbf16, #tpu.memory_space<vmem>>, vector<1x3x640xbf16>
    %68 = vector.shape_cast %67 : vector<1x3x640xbf16> to vector<3x640xbf16>
    %c3_93 = arith.constant 3 : index
    %c0_94 = arith.constant 0 : index
    %c17_95 = arith.constant 17 : index
    %69 = vector.load %arg1[%c3_93, %c0_94, %c17_95] : memref<4x3x768xbf16, #tpu.memory_space<vmem>>, vector<1x3x640xbf16>
    %70 = vector.shape_cast %69 : vector<1x3x640xbf16> to vector<3x640xbf16>
    %c2_96 = arith.constant 2 : index
    %c0_97 = arith.constant 0 : index
    %c18_98 = arith.constant 18 : index
    %71 = vector.load %arg1[%c2_96, %c0_97, %c18_98] : memref<4x3x768xbf16, #tpu.memory_space<vmem>>, vector<1x3x640xbf16>
    %72 = vector.shape_cast %71 : vector<1x3x640xbf16> to vector<3x640xbf16>
    %c3_99 = arith.constant 3 : index
    %c0_100 = arith.constant 0 : index
    %c18_101 = arith.constant 18 : index
    %73 = vector.load %arg1[%c3_99, %c0_100, %c18_101] : memref<4x3x768xbf16, #tpu.memory_space<vmem>>, vector<1x3x640xbf16>
    %74 = vector.shape_cast %73 : vector<1x3x640xbf16> to vector<3x640xbf16>
    %75 = tpu.concatenate %58, %60, %62, %64, %66, %68, %70, %72, %74 in 0 : vector<3x640xbf16>, vector<3x640xbf16>, vector<3x640xbf16>, vector<3x640xbf16>, vector<3x640xbf16>, vector<3x640xbf16>, vector<3x640xbf16>, vector<3x640xbf16>, vector<3x640xbf16> -> vector<27x640xbf16>
    %76 = tpu.concatenate %18, %37, %56, %75 in 1 : vector<27x640xbf16>, vector<27x640xbf16>, vector<27x640xbf16>, vector<27x640xbf16> -> vector<27x2560xbf16>
    %c0_102 = arith.constant 0 : index
    %c0_103 = arith.constant 0 : index
    %77 = vector.load %arg2[%c0_102, %c0_103] : memref<16x27xbf16, #tpu.memory_space<vmem>>, vector<16x27xbf16>
    %cst = arith.constant dense<0.000000e+00> : vector<16x2560xf32>
    %78 = tpu.matmul %77, %76, %cst {dimension_numbers = #tpu.dot_dimension_numbers<[1], [0], [0], [1], [0, 0, 1, 1], [], []>} : vector<16x27xbf16>, vector<27x2560xbf16>, vector<16x2560xf32> -> vector<16x2560xf32>
    %79 = vector.extract_strided_slice %78 {offsets = [0, 0], sizes = [16, 640], strides = [1, 1]} : vector<16x2560xf32> to vector<16x640xf32>
    %80 = vector.extract_strided_slice %78 {offsets = [0, 640], sizes = [16, 640], strides = [1, 1]} : vector<16x2560xf32> to vector<16x640xf32>
    %81 = arith.maximumf %79, %80 : vector<16x640xf32>
    %82 = vector.extract_strided_slice %78 {offsets = [0, 1280], sizes = [16, 640], strides = [1, 1]} : vector<16x2560xf32> to vector<16x640xf32>
    %83 = arith.maximumf %81, %82 : vector<16x640xf32>
    %84 = vector.extract_strided_slice %78 {offsets = [0, 1920], sizes = [16, 640], strides = [1, 1]} : vector<16x2560xf32> to vector<16x640xf32>
    %85 = arith.maximumf %83, %84 : vector<16x640xf32>
    %c0_104 = arith.constant 0 : index
    %c0_105 = arith.constant 0 : index
    %86 = vector.load %arg3[%c0_104, %c0_105] : memref<16x1xf32, #tpu.memory_space<vmem>>, vector<16x1xf32>
    %87 = vector.broadcast %86 : vector<16x1xf32> to vector<16x640xf32>
    %88 = arith.addf %85, %87 : vector<16x640xf32>
    %cst_106 = arith.constant 0.000000e+00 : f32
    %89 = vector.broadcast %cst_106 : f32 to vector<16x640xf32>
    %90 = arith.maximumf %88, %89 : vector<16x640xf32>
    %c0_107 = arith.constant 0 : index
    %c0_108 = arith.constant 0 : index
    %91 = vector.load %arg4[%c0_107, %c0_108] : memref<16x640xf32, #tpu.memory_space<vmem>>, vector<16x640xf32>
    tpu.vector_store %arg4[%c0_107, %c0_108], %90 {strides = array<i32>} : memref<16x640xf32, #tpu.memory_space<vmem>>, vector<16x640xf32>,
    return
  }
  func.func @transform_0(%arg0: i32) -> (i32, i32, i32) {
    %c0_i32 = arith.constant 0 : i32
    %c0_i32_0 = arith.constant 0 : i32
    %c0_i32_1 = arith.constant 0 : i32
    %c0_i32_2 = arith.constant 0 : i32
    return %c0_i32, %c0_i32_0, %c0_i32_1 : i32, i32, i32
  }
  func.func @transform_1(%arg0: i32) -> (i32, i32) {
    %c0_i32 = arith.constant 0 : i32
    %c0_i32_0 = arith.constant 0 : i32
    %c0_i32_1 = arith.constant 0 : i32
    return %c0_i32, %c0_i32_0 : i32, i32
  }
  func.func @transform_2(%arg0: i32) -> (i32, i32) {
    %c0_i32 = arith.constant 0 : i32
    %c0_i32_0 = arith.constant 0 : i32
    %c0_i32_1 = arith.constant 0 : i32
    return %c0_i32, %c0_i32_0 : i32, i32
  }
  func.func @transform_3(%arg0: i32) -> (i32, i32) {
    %c0_i32 = arith.constant 0 : i32
    %c0_i32_0 = arith.constant 0 : i32
    return %c0_i32, %arg0 : i32, i32
  }
}

module attributes {stable_mosaic.version = 11 : i64} {
  func.func @_block_kernel(%arg0: i32, %arg1: memref<4x16x384xbf16, #tpu.memory_space<vmem>>, %arg2: memref<32x144xbf16, #tpu.memory_space<vmem>>, %arg3: memref<32x1xf32, #tpu.memory_space<vmem>>, %arg4: memref<32x256xf32, #tpu.memory_space<vmem>>) attributes {dimension_semantics = [#tpu.dimension_semantics<parallel>], iteration_bounds = array<i64: 1>, scalar_prefetch = 0 : i64, scratch_operands = 0 : i64, tpu.core_type = #tpu.core_type<tc>, window_params = [{pipeline_mode = #tpu.pipeline_mode<synchronous>, transform_indices = @transform_0, window_bounds = array<i64: 4, 16, 384>}, {pipeline_mode = #tpu.pipeline_mode<synchronous>, transform_indices = @transform_1, window_bounds = array<i64: 32, 144>}, {pipeline_mode = #tpu.pipeline_mode<synchronous>, transform_indices = @transform_2, window_bounds = array<i64: 32, 1>}, {transform_indices = @transform_3, window_bounds = array<i64: 32, 256>}]} {
    %c0 = arith.constant 0 : index
    %c0_0 = arith.constant 0 : index
    %c0_1 = arith.constant 0 : index
    %0 = vector.load %arg1[%c0, %c0_0, %c0_1] : memref<4x16x384xbf16, #tpu.memory_space<vmem>>, vector<1x16x256xbf16>
    %1 = vector.shape_cast %0 : vector<1x16x256xbf16> to vector<16x256xbf16>
    %c1 = arith.constant 1 : index
    %c0_2 = arith.constant 0 : index
    %c0_3 = arith.constant 0 : index
    %2 = vector.load %arg1[%c1, %c0_2, %c0_3] : memref<4x16x384xbf16, #tpu.memory_space<vmem>>, vector<1x16x256xbf16>
    %3 = vector.shape_cast %2 : vector<1x16x256xbf16> to vector<16x256xbf16>
    %c0_4 = arith.constant 0 : index
    %c0_5 = arith.constant 0 : index
    %c1_6 = arith.constant 1 : index
    %4 = vector.load %arg1[%c0_4, %c0_5, %c1_6] : memref<4x16x384xbf16, #tpu.memory_space<vmem>>, vector<1x16x256xbf16>
    %5 = vector.shape_cast %4 : vector<1x16x256xbf16> to vector<16x256xbf16>
    %c2 = arith.constant 2 : index
    %c0_7 = arith.constant 0 : index
    %c0_8 = arith.constant 0 : index
    %6 = vector.load %arg1[%c2, %c0_7, %c0_8] : memref<4x16x384xbf16, #tpu.memory_space<vmem>>, vector<1x16x256xbf16>
    %7 = vector.shape_cast %6 : vector<1x16x256xbf16> to vector<16x256xbf16>
    %c3 = arith.constant 3 : index
    %c0_9 = arith.constant 0 : index
    %c0_10 = arith.constant 0 : index
    %8 = vector.load %arg1[%c3, %c0_9, %c0_10] : memref<4x16x384xbf16, #tpu.memory_space<vmem>>, vector<1x16x256xbf16>
    %9 = vector.shape_cast %8 : vector<1x16x256xbf16> to vector<16x256xbf16>
    %c2_11 = arith.constant 2 : index
    %c0_12 = arith.constant 0 : index
    %c1_13 = arith.constant 1 : index
    %10 = vector.load %arg1[%c2_11, %c0_12, %c1_13] : memref<4x16x384xbf16, #tpu.memory_space<vmem>>, vector<1x16x256xbf16>
    %11 = vector.shape_cast %10 : vector<1x16x256xbf16> to vector<16x256xbf16>
    %c0_14 = arith.constant 0 : index
    %c0_15 = arith.constant 0 : index
    %c9 = arith.constant 9 : index
    %12 = vector.load %arg1[%c0_14, %c0_15, %c9] : memref<4x16x384xbf16, #tpu.memory_space<vmem>>, vector<1x16x256xbf16>
    %13 = vector.shape_cast %12 : vector<1x16x256xbf16> to vector<16x256xbf16>
    %c1_16 = arith.constant 1 : index
    %c0_17 = arith.constant 0 : index
    %c9_18 = arith.constant 9 : index
    %14 = vector.load %arg1[%c1_16, %c0_17, %c9_18] : memref<4x16x384xbf16, #tpu.memory_space<vmem>>, vector<1x16x256xbf16>
    %15 = vector.shape_cast %14 : vector<1x16x256xbf16> to vector<16x256xbf16>
    %c0_19 = arith.constant 0 : index
    %c0_20 = arith.constant 0 : index
    %c10 = arith.constant 10 : index
    %16 = vector.load %arg1[%c0_19, %c0_20, %c10] : memref<4x16x384xbf16, #tpu.memory_space<vmem>>, vector<1x16x256xbf16>
    %17 = vector.shape_cast %16 : vector<1x16x256xbf16> to vector<16x256xbf16>
    %18 = tpu.concatenate %1, %3, %5, %7, %9, %11, %13, %15, %17 in 0 : vector<16x256xbf16>, vector<16x256xbf16>, vector<16x256xbf16>, vector<16x256xbf16>, vector<16x256xbf16>, vector<16x256xbf16>, vector<16x256xbf16>, vector<16x256xbf16>, vector<16x256xbf16> -> vector<144x256xbf16>
    %c1_21 = arith.constant 1 : index
    %c0_22 = arith.constant 0 : index
    %c0_23 = arith.constant 0 : index
    %19 = vector.load %arg1[%c1_21, %c0_22, %c0_23] : memref<4x16x384xbf16, #tpu.memory_space<vmem>>, vector<1x16x256xbf16>
    %20 = vector.shape_cast %19 : vector<1x16x256xbf16> to vector<16x256xbf16>
    %c0_24 = arith.constant 0 : index
    %c0_25 = arith.constant 0 : index
    %c1_26 = arith.constant 1 : index
    %21 = vector.load %arg1[%c0_24, %c0_25, %c1_26] : memref<4x16x384xbf16, #tpu.memory_space<vmem>>, vector<1x16x256xbf16>
    %22 = vector.shape_cast %21 : vector<1x16x256xbf16> to vector<16x256xbf16>
    %c1_27 = arith.constant 1 : index
    %c0_28 = arith.constant 0 : index
    %c1_29 = arith.constant 1 : index
    %23 = vector.load %arg1[%c1_27, %c0_28, %c1_29] : memref<4x16x384xbf16, #tpu.memory_space<vmem>>, vector<1x16x256xbf16>
    %24 = vector.shape_cast %23 : vector<1x16x256xbf16> to vector<16x256xbf16>
    %c3_30 = arith.constant 3 : index
    %c0_31 = arith.constant 0 : index
    %c0_32 = arith.constant 0 : index
    %25 = vector.load %arg1[%c3_30, %c0_31, %c0_32] : memref<4x16x384xbf16, #tpu.memory_space<vmem>>, vector<1x16x256xbf16>
    %26 = vector.shape_cast %25 : vector<1x16x256xbf16> to vector<16x256xbf16>
    %c2_33 = arith.constant 2 : index
    %c0_34 = arith.constant 0 : index
    %c1_35 = arith.constant 1 : index
    %27 = vector.load %arg1[%c2_33, %c0_34, %c1_35] : memref<4x16x384xbf16, #tpu.memory_space<vmem>>, vector<1x16x256xbf16>
    %28 = vector.shape_cast %27 : vector<1x16x256xbf16> to vector<16x256xbf16>
    %c3_36 = arith.constant 3 : index
    %c0_37 = arith.constant 0 : index
    %c1_38 = arith.constant 1 : index
    %29 = vector.load %arg1[%c3_36, %c0_37, %c1_38] : memref<4x16x384xbf16, #tpu.memory_space<vmem>>, vector<1x16x256xbf16>
    %30 = vector.shape_cast %29 : vector<1x16x256xbf16> to vector<16x256xbf16>
    %c1_39 = arith.constant 1 : index
    %c0_40 = arith.constant 0 : index
    %c9_41 = arith.constant 9 : index
    %31 = vector.load %arg1[%c1_39, %c0_40, %c9_41] : memref<4x16x384xbf16, #tpu.memory_space<vmem>>, vector<1x16x256xbf16>
    %32 = vector.shape_cast %31 : vector<1x16x256xbf16> to vector<16x256xbf16>
    %c0_42 = arith.constant 0 : index
    %c0_43 = arith.constant 0 : index
    %c10_44 = arith.constant 10 : index
    %33 = vector.load %arg1[%c0_42, %c0_43, %c10_44] : memref<4x16x384xbf16, #tpu.memory_space<vmem>>, vector<1x16x256xbf16>
    %34 = vector.shape_cast %33 : vector<1x16x256xbf16> to vector<16x256xbf16>
    %c1_45 = arith.constant 1 : index
    %c0_46 = arith.constant 0 : index
    %c10_47 = arith.constant 10 : index
    %35 = vector.load %arg1[%c1_45, %c0_46, %c10_47] : memref<4x16x384xbf16, #tpu.memory_space<vmem>>, vector<1x16x256xbf16>
    %36 = vector.shape_cast %35 : vector<1x16x256xbf16> to vector<16x256xbf16>
    %37 = tpu.concatenate %20, %22, %24, %26, %28, %30, %32, %34, %36 in 0 : vector<16x256xbf16>, vector<16x256xbf16>, vector<16x256xbf16>, vector<16x256xbf16>, vector<16x256xbf16>, vector<16x256xbf16>, vector<16x256xbf16>, vector<16x256xbf16>, vector<16x256xbf16> -> vector<144x256xbf16>
    %c2_48 = arith.constant 2 : index
    %c0_49 = arith.constant 0 : index
    %c0_50 = arith.constant 0 : index
    %38 = vector.load %arg1[%c2_48, %c0_49, %c0_50] : memref<4x16x384xbf16, #tpu.memory_space<vmem>>, vector<1x16x256xbf16>
    %39 = vector.shape_cast %38 : vector<1x16x256xbf16> to vector<16x256xbf16>
    %c3_51 = arith.constant 3 : index
    %c0_52 = arith.constant 0 : index
    %c0_53 = arith.constant 0 : index
    %40 = vector.load %arg1[%c3_51, %c0_52, %c0_53] : memref<4x16x384xbf16, #tpu.memory_space<vmem>>, vector<1x16x256xbf16>
    %41 = vector.shape_cast %40 : vector<1x16x256xbf16> to vector<16x256xbf16>
    %c2_54 = arith.constant 2 : index
    %c0_55 = arith.constant 0 : index
    %c1_56 = arith.constant 1 : index
    %42 = vector.load %arg1[%c2_54, %c0_55, %c1_56] : memref<4x16x384xbf16, #tpu.memory_space<vmem>>, vector<1x16x256xbf16>
    %43 = vector.shape_cast %42 : vector<1x16x256xbf16> to vector<16x256xbf16>
    %c0_57 = arith.constant 0 : index
    %c0_58 = arith.constant 0 : index
    %c9_59 = arith.constant 9 : index
    %44 = vector.load %arg1[%c0_57, %c0_58, %c9_59] : memref<4x16x384xbf16, #tpu.memory_space<vmem>>, vector<1x16x256xbf16>
    %45 = vector.shape_cast %44 : vector<1x16x256xbf16> to vector<16x256xbf16>
    %c1_60 = arith.constant 1 : index
    %c0_61 = arith.constant 0 : index
    %c9_62 = arith.constant 9 : index
    %46 = vector.load %arg1[%c1_60, %c0_61, %c9_62] : memref<4x16x384xbf16, #tpu.memory_space<vmem>>, vector<1x16x256xbf16>
    %47 = vector.shape_cast %46 : vector<1x16x256xbf16> to vector<16x256xbf16>
    %c0_63 = arith.constant 0 : index
    %c0_64 = arith.constant 0 : index
    %c10_65 = arith.constant 10 : index
    %48 = vector.load %arg1[%c0_63, %c0_64, %c10_65] : memref<4x16x384xbf16, #tpu.memory_space<vmem>>, vector<1x16x256xbf16>
    %49 = vector.shape_cast %48 : vector<1x16x256xbf16> to vector<16x256xbf16>
    %c2_66 = arith.constant 2 : index
    %c0_67 = arith.constant 0 : index
    %c9_68 = arith.constant 9 : index
    %50 = vector.load %arg1[%c2_66, %c0_67, %c9_68] : memref<4x16x384xbf16, #tpu.memory_space<vmem>>, vector<1x16x256xbf16>
    %51 = vector.shape_cast %50 : vector<1x16x256xbf16> to vector<16x256xbf16>
    %c3_69 = arith.constant 3 : index
    %c0_70 = arith.constant 0 : index
    %c9_71 = arith.constant 9 : index
    %52 = vector.load %arg1[%c3_69, %c0_70, %c9_71] : memref<4x16x384xbf16, #tpu.memory_space<vmem>>, vector<1x16x256xbf16>
    %53 = vector.shape_cast %52 : vector<1x16x256xbf16> to vector<16x256xbf16>
    %c2_72 = arith.constant 2 : index
    %c0_73 = arith.constant 0 : index
    %c10_74 = arith.constant 10 : index
    %54 = vector.load %arg1[%c2_72, %c0_73, %c10_74] : memref<4x16x384xbf16, #tpu.memory_space<vmem>>, vector<1x16x256xbf16>
    %55 = vector.shape_cast %54 : vector<1x16x256xbf16> to vector<16x256xbf16>
    %56 = tpu.concatenate %39, %41, %43, %45, %47, %49, %51, %53, %55 in 0 : vector<16x256xbf16>, vector<16x256xbf16>, vector<16x256xbf16>, vector<16x256xbf16>, vector<16x256xbf16>, vector<16x256xbf16>, vector<16x256xbf16>, vector<16x256xbf16>, vector<16x256xbf16> -> vector<144x256xbf16>
    %c3_75 = arith.constant 3 : index
    %c0_76 = arith.constant 0 : index
    %c0_77 = arith.constant 0 : index
    %57 = vector.load %arg1[%c3_75, %c0_76, %c0_77] : memref<4x16x384xbf16, #tpu.memory_space<vmem>>, vector<1x16x256xbf16>
    %58 = vector.shape_cast %57 : vector<1x16x256xbf16> to vector<16x256xbf16>
    %c2_78 = arith.constant 2 : index
    %c0_79 = arith.constant 0 : index
    %c1_80 = arith.constant 1 : index
    %59 = vector.load %arg1[%c2_78, %c0_79, %c1_80] : memref<4x16x384xbf16, #tpu.memory_space<vmem>>, vector<1x16x256xbf16>
    %60 = vector.shape_cast %59 : vector<1x16x256xbf16> to vector<16x256xbf16>
    %c3_81 = arith.constant 3 : index
    %c0_82 = arith.constant 0 : index
    %c1_83 = arith.constant 1 : index
    %61 = vector.load %arg1[%c3_81, %c0_82, %c1_83] : memref<4x16x384xbf16, #tpu.memory_space<vmem>>, vector<1x16x256xbf16>
    %62 = vector.shape_cast %61 : vector<1x16x256xbf16> to vector<16x256xbf16>
    %c1_84 = arith.constant 1 : index
    %c0_85 = arith.constant 0 : index
    %c9_86 = arith.constant 9 : index
    %63 = vector.load %arg1[%c1_84, %c0_85, %c9_86] : memref<4x16x384xbf16, #tpu.memory_space<vmem>>, vector<1x16x256xbf16>
    %64 = vector.shape_cast %63 : vector<1x16x256xbf16> to vector<16x256xbf16>
    %c0_87 = arith.constant 0 : index
    %c0_88 = arith.constant 0 : index
    %c10_89 = arith.constant 10 : index
    %65 = vector.load %arg1[%c0_87, %c0_88, %c10_89] : memref<4x16x384xbf16, #tpu.memory_space<vmem>>, vector<1x16x256xbf16>
    %66 = vector.shape_cast %65 : vector<1x16x256xbf16> to vector<16x256xbf16>
    %c1_90 = arith.constant 1 : index
    %c0_91 = arith.constant 0 : index
    %c10_92 = arith.constant 10 : index
    %67 = vector.load %arg1[%c1_90, %c0_91, %c10_92] : memref<4x16x384xbf16, #tpu.memory_space<vmem>>, vector<1x16x256xbf16>
    %68 = vector.shape_cast %67 : vector<1x16x256xbf16> to vector<16x256xbf16>
    %c3_93 = arith.constant 3 : index
    %c0_94 = arith.constant 0 : index
    %c9_95 = arith.constant 9 : index
    %69 = vector.load %arg1[%c3_93, %c0_94, %c9_95] : memref<4x16x384xbf16, #tpu.memory_space<vmem>>, vector<1x16x256xbf16>
    %70 = vector.shape_cast %69 : vector<1x16x256xbf16> to vector<16x256xbf16>
    %c2_96 = arith.constant 2 : index
    %c0_97 = arith.constant 0 : index
    %c10_98 = arith.constant 10 : index
    %71 = vector.load %arg1[%c2_96, %c0_97, %c10_98] : memref<4x16x384xbf16, #tpu.memory_space<vmem>>, vector<1x16x256xbf16>
    %72 = vector.shape_cast %71 : vector<1x16x256xbf16> to vector<16x256xbf16>
    %c3_99 = arith.constant 3 : index
    %c0_100 = arith.constant 0 : index
    %c10_101 = arith.constant 10 : index
    %73 = vector.load %arg1[%c3_99, %c0_100, %c10_101] : memref<4x16x384xbf16, #tpu.memory_space<vmem>>, vector<1x16x256xbf16>
    %74 = vector.shape_cast %73 : vector<1x16x256xbf16> to vector<16x256xbf16>
    %75 = tpu.concatenate %58, %60, %62, %64, %66, %68, %70, %72, %74 in 0 : vector<16x256xbf16>, vector<16x256xbf16>, vector<16x256xbf16>, vector<16x256xbf16>, vector<16x256xbf16>, vector<16x256xbf16>, vector<16x256xbf16>, vector<16x256xbf16>, vector<16x256xbf16> -> vector<144x256xbf16>
    %76 = tpu.concatenate %18, %37, %56, %75 in 1 : vector<144x256xbf16>, vector<144x256xbf16>, vector<144x256xbf16>, vector<144x256xbf16> -> vector<144x1024xbf16>
    %c0_102 = arith.constant 0 : index
    %c0_103 = arith.constant 0 : index
    %77 = vector.load %arg2[%c0_102, %c0_103] : memref<32x144xbf16, #tpu.memory_space<vmem>>, vector<32x144xbf16>
    %cst = arith.constant dense<0.000000e+00> : vector<32x1024xf32>
    %78 = tpu.matmul %77, %76, %cst {dimension_numbers = #tpu.dot_dimension_numbers<[1], [0], [0], [1], [0, 0, 1, 1], [], []>} : vector<32x144xbf16>, vector<144x1024xbf16>, vector<32x1024xf32> -> vector<32x1024xf32>
    %79 = vector.extract_strided_slice %78 {offsets = [0, 0], sizes = [32, 256], strides = [1, 1]} : vector<32x1024xf32> to vector<32x256xf32>
    %80 = vector.extract_strided_slice %78 {offsets = [0, 256], sizes = [32, 256], strides = [1, 1]} : vector<32x1024xf32> to vector<32x256xf32>
    %81 = arith.maximumf %79, %80 : vector<32x256xf32>
    %82 = vector.extract_strided_slice %78 {offsets = [0, 512], sizes = [32, 256], strides = [1, 1]} : vector<32x1024xf32> to vector<32x256xf32>
    %83 = arith.maximumf %81, %82 : vector<32x256xf32>
    %84 = vector.extract_strided_slice %78 {offsets = [0, 768], sizes = [32, 256], strides = [1, 1]} : vector<32x1024xf32> to vector<32x256xf32>
    %85 = arith.maximumf %83, %84 : vector<32x256xf32>
    %c0_104 = arith.constant 0 : index
    %c0_105 = arith.constant 0 : index
    %86 = vector.load %arg3[%c0_104, %c0_105] : memref<32x1xf32, #tpu.memory_space<vmem>>, vector<32x1xf32>
    %87 = vector.broadcast %86 : vector<32x1xf32> to vector<32x256xf32>
    %88 = arith.addf %85, %87 : vector<32x256xf32>
    %cst_106 = arith.constant 0.000000e+00 : f32
    %89 = vector.broadcast %cst_106 : f32 to vector<32x256xf32>
    %90 = arith.maximumf %88, %89 : vector<32x256xf32>
    %c0_107 = arith.constant 0 : index
    %c0_108 = arith.constant 0 : index
    %91 = vector.load %arg4[%c0_107, %c0_108] : memref<32x256xf32, #tpu.memory_space<vmem>>, vector<32x256xf32>
    tpu.vector_store %arg4[%c0_107, %c0_108], %90 {strides = array<i32>} : memref<32x256xf32, #tpu.memory_space<vmem>>, vector<32x256xf32>,
    return
  }
  func.func @transform_0(%arg0: i32) -> (i32, i32, i32) {
    %c0_i32 = arith.constant 0 : i32
    %c0_i32_0 = arith.constant 0 : i32
    %c0_i32_1 = arith.constant 0 : i32
    %c0_i32_2 = arith.constant 0 : i32
    return %c0_i32, %c0_i32_0, %c0_i32_1 : i32, i32, i32
  }
  func.func @transform_1(%arg0: i32) -> (i32, i32) {
    %c0_i32 = arith.constant 0 : i32
    %c0_i32_0 = arith.constant 0 : i32
    %c0_i32_1 = arith.constant 0 : i32
    return %c0_i32, %c0_i32_0 : i32, i32
  }
  func.func @transform_2(%arg0: i32) -> (i32, i32) {
    %c0_i32 = arith.constant 0 : i32
    %c0_i32_0 = arith.constant 0 : i32
    %c0_i32_1 = arith.constant 0 : i32
    return %c0_i32, %c0_i32_0 : i32, i32
  }
  func.func @transform_3(%arg0: i32) -> (i32, i32) {
    %c0_i32 = arith.constant 0 : i32
    %c0_i32_0 = arith.constant 0 : i32
    return %c0_i32, %arg0 : i32, i32
  }
}

module attributes {stable_mosaic.version = 11 : i64} {
  func.func @_block_kernel(%arg0: i32, %arg1: memref<4x32x256xbf16, #tpu.memory_space<vmem>>, %arg2: memref<32x288xbf16, #tpu.memory_space<vmem>>, %arg3: memref<32x1xf32, #tpu.memory_space<vmem>>, %arg4: memref<32x128xf32, #tpu.memory_space<vmem>>) attributes {dimension_semantics = [#tpu.dimension_semantics<parallel>], iteration_bounds = array<i64: 1>, scalar_prefetch = 0 : i64, scratch_operands = 0 : i64, tpu.core_type = #tpu.core_type<tc>, window_params = [{pipeline_mode = #tpu.pipeline_mode<synchronous>, transform_indices = @transform_0, window_bounds = array<i64: 4, 32, 256>}, {pipeline_mode = #tpu.pipeline_mode<synchronous>, transform_indices = @transform_1, window_bounds = array<i64: 32, 288>}, {pipeline_mode = #tpu.pipeline_mode<synchronous>, transform_indices = @transform_2, window_bounds = array<i64: 32, 1>}, {transform_indices = @transform_3, window_bounds = array<i64: 32, 128>}]} {
    %c0 = arith.constant 0 : index
    %c0_0 = arith.constant 0 : index
    %c0_1 = arith.constant 0 : index
    %0 = vector.load %arg1[%c0, %c0_0, %c0_1] : memref<4x32x256xbf16, #tpu.memory_space<vmem>>, vector<1x32x128xbf16>
    %1 = vector.shape_cast %0 : vector<1x32x128xbf16> to vector<32x128xbf16>
    %c1 = arith.constant 1 : index
    %c0_2 = arith.constant 0 : index
    %c0_3 = arith.constant 0 : index
    %2 = vector.load %arg1[%c1, %c0_2, %c0_3] : memref<4x32x256xbf16, #tpu.memory_space<vmem>>, vector<1x32x128xbf16>
    %3 = vector.shape_cast %2 : vector<1x32x128xbf16> to vector<32x128xbf16>
    %c0_4 = arith.constant 0 : index
    %c0_5 = arith.constant 0 : index
    %c1_6 = arith.constant 1 : index
    %4 = vector.load %arg1[%c0_4, %c0_5, %c1_6] : memref<4x32x256xbf16, #tpu.memory_space<vmem>>, vector<1x32x128xbf16>
    %5 = vector.shape_cast %4 : vector<1x32x128xbf16> to vector<32x128xbf16>
    %c2 = arith.constant 2 : index
    %c0_7 = arith.constant 0 : index
    %c0_8 = arith.constant 0 : index
    %6 = vector.load %arg1[%c2, %c0_7, %c0_8] : memref<4x32x256xbf16, #tpu.memory_space<vmem>>, vector<1x32x128xbf16>
    %7 = vector.shape_cast %6 : vector<1x32x128xbf16> to vector<32x128xbf16>
    %c3 = arith.constant 3 : index
    %c0_9 = arith.constant 0 : index
    %c0_10 = arith.constant 0 : index
    %8 = vector.load %arg1[%c3, %c0_9, %c0_10] : memref<4x32x256xbf16, #tpu.memory_space<vmem>>, vector<1x32x128xbf16>
    %9 = vector.shape_cast %8 : vector<1x32x128xbf16> to vector<32x128xbf16>
    %c2_11 = arith.constant 2 : index
    %c0_12 = arith.constant 0 : index
    %c1_13 = arith.constant 1 : index
    %10 = vector.load %arg1[%c2_11, %c0_12, %c1_13] : memref<4x32x256xbf16, #tpu.memory_space<vmem>>, vector<1x32x128xbf16>
    %11 = vector.shape_cast %10 : vector<1x32x128xbf16> to vector<32x128xbf16>
    %c0_14 = arith.constant 0 : index
    %c0_15 = arith.constant 0 : index
    %c5 = arith.constant 5 : index
    %12 = vector.load %arg1[%c0_14, %c0_15, %c5] : memref<4x32x256xbf16, #tpu.memory_space<vmem>>, vector<1x32x128xbf16>
    %13 = vector.shape_cast %12 : vector<1x32x128xbf16> to vector<32x128xbf16>
    %c1_16 = arith.constant 1 : index
    %c0_17 = arith.constant 0 : index
    %c5_18 = arith.constant 5 : index
    %14 = vector.load %arg1[%c1_16, %c0_17, %c5_18] : memref<4x32x256xbf16, #tpu.memory_space<vmem>>, vector<1x32x128xbf16>
    %15 = vector.shape_cast %14 : vector<1x32x128xbf16> to vector<32x128xbf16>
    %c0_19 = arith.constant 0 : index
    %c0_20 = arith.constant 0 : index
    %c6 = arith.constant 6 : index
    %16 = vector.load %arg1[%c0_19, %c0_20, %c6] : memref<4x32x256xbf16, #tpu.memory_space<vmem>>, vector<1x32x128xbf16>
    %17 = vector.shape_cast %16 : vector<1x32x128xbf16> to vector<32x128xbf16>
    %18 = tpu.concatenate %1, %3, %5, %7, %9, %11, %13, %15, %17 in 0 : vector<32x128xbf16>, vector<32x128xbf16>, vector<32x128xbf16>, vector<32x128xbf16>, vector<32x128xbf16>, vector<32x128xbf16>, vector<32x128xbf16>, vector<32x128xbf16>, vector<32x128xbf16> -> vector<288x128xbf16>
    %c1_21 = arith.constant 1 : index
    %c0_22 = arith.constant 0 : index
    %c0_23 = arith.constant 0 : index
    %19 = vector.load %arg1[%c1_21, %c0_22, %c0_23] : memref<4x32x256xbf16, #tpu.memory_space<vmem>>, vector<1x32x128xbf16>
    %20 = vector.shape_cast %19 : vector<1x32x128xbf16> to vector<32x128xbf16>
    %c0_24 = arith.constant 0 : index
    %c0_25 = arith.constant 0 : index
    %c1_26 = arith.constant 1 : index
    %21 = vector.load %arg1[%c0_24, %c0_25, %c1_26] : memref<4x32x256xbf16, #tpu.memory_space<vmem>>, vector<1x32x128xbf16>
    %22 = vector.shape_cast %21 : vector<1x32x128xbf16> to vector<32x128xbf16>
    %c1_27 = arith.constant 1 : index
    %c0_28 = arith.constant 0 : index
    %c1_29 = arith.constant 1 : index
    %23 = vector.load %arg1[%c1_27, %c0_28, %c1_29] : memref<4x32x256xbf16, #tpu.memory_space<vmem>>, vector<1x32x128xbf16>
    %24 = vector.shape_cast %23 : vector<1x32x128xbf16> to vector<32x128xbf16>
    %c3_30 = arith.constant 3 : index
    %c0_31 = arith.constant 0 : index
    %c0_32 = arith.constant 0 : index
    %25 = vector.load %arg1[%c3_30, %c0_31, %c0_32] : memref<4x32x256xbf16, #tpu.memory_space<vmem>>, vector<1x32x128xbf16>
    %26 = vector.shape_cast %25 : vector<1x32x128xbf16> to vector<32x128xbf16>
    %c2_33 = arith.constant 2 : index
    %c0_34 = arith.constant 0 : index
    %c1_35 = arith.constant 1 : index
    %27 = vector.load %arg1[%c2_33, %c0_34, %c1_35] : memref<4x32x256xbf16, #tpu.memory_space<vmem>>, vector<1x32x128xbf16>
    %28 = vector.shape_cast %27 : vector<1x32x128xbf16> to vector<32x128xbf16>
    %c3_36 = arith.constant 3 : index
    %c0_37 = arith.constant 0 : index
    %c1_38 = arith.constant 1 : index
    %29 = vector.load %arg1[%c3_36, %c0_37, %c1_38] : memref<4x32x256xbf16, #tpu.memory_space<vmem>>, vector<1x32x128xbf16>
    %30 = vector.shape_cast %29 : vector<1x32x128xbf16> to vector<32x128xbf16>
    %c1_39 = arith.constant 1 : index
    %c0_40 = arith.constant 0 : index
    %c5_41 = arith.constant 5 : index
    %31 = vector.load %arg1[%c1_39, %c0_40, %c5_41] : memref<4x32x256xbf16, #tpu.memory_space<vmem>>, vector<1x32x128xbf16>
    %32 = vector.shape_cast %31 : vector<1x32x128xbf16> to vector<32x128xbf16>
    %c0_42 = arith.constant 0 : index
    %c0_43 = arith.constant 0 : index
    %c6_44 = arith.constant 6 : index
    %33 = vector.load %arg1[%c0_42, %c0_43, %c6_44] : memref<4x32x256xbf16, #tpu.memory_space<vmem>>, vector<1x32x128xbf16>
    %34 = vector.shape_cast %33 : vector<1x32x128xbf16> to vector<32x128xbf16>
    %c1_45 = arith.constant 1 : index
    %c0_46 = arith.constant 0 : index
    %c6_47 = arith.constant 6 : index
    %35 = vector.load %arg1[%c1_45, %c0_46, %c6_47] : memref<4x32x256xbf16, #tpu.memory_space<vmem>>, vector<1x32x128xbf16>
    %36 = vector.shape_cast %35 : vector<1x32x128xbf16> to vector<32x128xbf16>
    %37 = tpu.concatenate %20, %22, %24, %26, %28, %30, %32, %34, %36 in 0 : vector<32x128xbf16>, vector<32x128xbf16>, vector<32x128xbf16>, vector<32x128xbf16>, vector<32x128xbf16>, vector<32x128xbf16>, vector<32x128xbf16>, vector<32x128xbf16>, vector<32x128xbf16> -> vector<288x128xbf16>
    %c2_48 = arith.constant 2 : index
    %c0_49 = arith.constant 0 : index
    %c0_50 = arith.constant 0 : index
    %38 = vector.load %arg1[%c2_48, %c0_49, %c0_50] : memref<4x32x256xbf16, #tpu.memory_space<vmem>>, vector<1x32x128xbf16>
    %39 = vector.shape_cast %38 : vector<1x32x128xbf16> to vector<32x128xbf16>
    %c3_51 = arith.constant 3 : index
    %c0_52 = arith.constant 0 : index
    %c0_53 = arith.constant 0 : index
    %40 = vector.load %arg1[%c3_51, %c0_52, %c0_53] : memref<4x32x256xbf16, #tpu.memory_space<vmem>>, vector<1x32x128xbf16>
    %41 = vector.shape_cast %40 : vector<1x32x128xbf16> to vector<32x128xbf16>
    %c2_54 = arith.constant 2 : index
    %c0_55 = arith.constant 0 : index
    %c1_56 = arith.constant 1 : index
    %42 = vector.load %arg1[%c2_54, %c0_55, %c1_56] : memref<4x32x256xbf16, #tpu.memory_space<vmem>>, vector<1x32x128xbf16>
    %43 = vector.shape_cast %42 : vector<1x32x128xbf16> to vector<32x128xbf16>
    %c0_57 = arith.constant 0 : index
    %c0_58 = arith.constant 0 : index
    %c5_59 = arith.constant 5 : index
    %44 = vector.load %arg1[%c0_57, %c0_58, %c5_59] : memref<4x32x256xbf16, #tpu.memory_space<vmem>>, vector<1x32x128xbf16>
    %45 = vector.shape_cast %44 : vector<1x32x128xbf16> to vector<32x128xbf16>
    %c1_60 = arith.constant 1 : index
    %c0_61 = arith.constant 0 : index
    %c5_62 = arith.constant 5 : index
    %46 = vector.load %arg1[%c1_60, %c0_61, %c5_62] : memref<4x32x256xbf16, #tpu.memory_space<vmem>>, vector<1x32x128xbf16>
    %47 = vector.shape_cast %46 : vector<1x32x128xbf16> to vector<32x128xbf16>
    %c0_63 = arith.constant 0 : index
    %c0_64 = arith.constant 0 : index
    %c6_65 = arith.constant 6 : index
    %48 = vector.load %arg1[%c0_63, %c0_64, %c6_65] : memref<4x32x256xbf16, #tpu.memory_space<vmem>>, vector<1x32x128xbf16>
    %49 = vector.shape_cast %48 : vector<1x32x128xbf16> to vector<32x128xbf16>
    %c2_66 = arith.constant 2 : index
    %c0_67 = arith.constant 0 : index
    %c5_68 = arith.constant 5 : index
    %50 = vector.load %arg1[%c2_66, %c0_67, %c5_68] : memref<4x32x256xbf16, #tpu.memory_space<vmem>>, vector<1x32x128xbf16>
    %51 = vector.shape_cast %50 : vector<1x32x128xbf16> to vector<32x128xbf16>
    %c3_69 = arith.constant 3 : index
    %c0_70 = arith.constant 0 : index
    %c5_71 = arith.constant 5 : index
    %52 = vector.load %arg1[%c3_69, %c0_70, %c5_71] : memref<4x32x256xbf16, #tpu.memory_space<vmem>>, vector<1x32x128xbf16>
    %53 = vector.shape_cast %52 : vector<1x32x128xbf16> to vector<32x128xbf16>
    %c2_72 = arith.constant 2 : index
    %c0_73 = arith.constant 0 : index
    %c6_74 = arith.constant 6 : index
    %54 = vector.load %arg1[%c2_72, %c0_73, %c6_74] : memref<4x32x256xbf16, #tpu.memory_space<vmem>>, vector<1x32x128xbf16>
    %55 = vector.shape_cast %54 : vector<1x32x128xbf16> to vector<32x128xbf16>
    %56 = tpu.concatenate %39, %41, %43, %45, %47, %49, %51, %53, %55 in 0 : vector<32x128xbf16>, vector<32x128xbf16>, vector<32x128xbf16>, vector<32x128xbf16>, vector<32x128xbf16>, vector<32x128xbf16>, vector<32x128xbf16>, vector<32x128xbf16>, vector<32x128xbf16> -> vector<288x128xbf16>
    %c3_75 = arith.constant 3 : index
    %c0_76 = arith.constant 0 : index
    %c0_77 = arith.constant 0 : index
    %57 = vector.load %arg1[%c3_75, %c0_76, %c0_77] : memref<4x32x256xbf16, #tpu.memory_space<vmem>>, vector<1x32x128xbf16>
    %58 = vector.shape_cast %57 : vector<1x32x128xbf16> to vector<32x128xbf16>
    %c2_78 = arith.constant 2 : index
    %c0_79 = arith.constant 0 : index
    %c1_80 = arith.constant 1 : index
    %59 = vector.load %arg1[%c2_78, %c0_79, %c1_80] : memref<4x32x256xbf16, #tpu.memory_space<vmem>>, vector<1x32x128xbf16>
    %60 = vector.shape_cast %59 : vector<1x32x128xbf16> to vector<32x128xbf16>
    %c3_81 = arith.constant 3 : index
    %c0_82 = arith.constant 0 : index
    %c1_83 = arith.constant 1 : index
    %61 = vector.load %arg1[%c3_81, %c0_82, %c1_83] : memref<4x32x256xbf16, #tpu.memory_space<vmem>>, vector<1x32x128xbf16>
    %62 = vector.shape_cast %61 : vector<1x32x128xbf16> to vector<32x128xbf16>
    %c1_84 = arith.constant 1 : index
    %c0_85 = arith.constant 0 : index
    %c5_86 = arith.constant 5 : index
    %63 = vector.load %arg1[%c1_84, %c0_85, %c5_86] : memref<4x32x256xbf16, #tpu.memory_space<vmem>>, vector<1x32x128xbf16>
    %64 = vector.shape_cast %63 : vector<1x32x128xbf16> to vector<32x128xbf16>
    %c0_87 = arith.constant 0 : index
    %c0_88 = arith.constant 0 : index
    %c6_89 = arith.constant 6 : index
    %65 = vector.load %arg1[%c0_87, %c0_88, %c6_89] : memref<4x32x256xbf16, #tpu.memory_space<vmem>>, vector<1x32x128xbf16>
    %66 = vector.shape_cast %65 : vector<1x32x128xbf16> to vector<32x128xbf16>
    %c1_90 = arith.constant 1 : index
    %c0_91 = arith.constant 0 : index
    %c6_92 = arith.constant 6 : index
    %67 = vector.load %arg1[%c1_90, %c0_91, %c6_92] : memref<4x32x256xbf16, #tpu.memory_space<vmem>>, vector<1x32x128xbf16>
    %68 = vector.shape_cast %67 : vector<1x32x128xbf16> to vector<32x128xbf16>
    %c3_93 = arith.constant 3 : index
    %c0_94 = arith.constant 0 : index
    %c5_95 = arith.constant 5 : index
    %69 = vector.load %arg1[%c3_93, %c0_94, %c5_95] : memref<4x32x256xbf16, #tpu.memory_space<vmem>>, vector<1x32x128xbf16>
    %70 = vector.shape_cast %69 : vector<1x32x128xbf16> to vector<32x128xbf16>
    %c2_96 = arith.constant 2 : index
    %c0_97 = arith.constant 0 : index
    %c6_98 = arith.constant 6 : index
    %71 = vector.load %arg1[%c2_96, %c0_97, %c6_98] : memref<4x32x256xbf16, #tpu.memory_space<vmem>>, vector<1x32x128xbf16>
    %72 = vector.shape_cast %71 : vector<1x32x128xbf16> to vector<32x128xbf16>
    %c3_99 = arith.constant 3 : index
    %c0_100 = arith.constant 0 : index
    %c6_101 = arith.constant 6 : index
    %73 = vector.load %arg1[%c3_99, %c0_100, %c6_101] : memref<4x32x256xbf16, #tpu.memory_space<vmem>>, vector<1x32x128xbf16>
    %74 = vector.shape_cast %73 : vector<1x32x128xbf16> to vector<32x128xbf16>
    %75 = tpu.concatenate %58, %60, %62, %64, %66, %68, %70, %72, %74 in 0 : vector<32x128xbf16>, vector<32x128xbf16>, vector<32x128xbf16>, vector<32x128xbf16>, vector<32x128xbf16>, vector<32x128xbf16>, vector<32x128xbf16>, vector<32x128xbf16>, vector<32x128xbf16> -> vector<288x128xbf16>
    %76 = tpu.concatenate %18, %37, %56, %75 in 1 : vector<288x128xbf16>, vector<288x128xbf16>, vector<288x128xbf16>, vector<288x128xbf16> -> vector<288x512xbf16>
    %c0_102 = arith.constant 0 : index
    %c0_103 = arith.constant 0 : index
    %77 = vector.load %arg2[%c0_102, %c0_103] : memref<32x288xbf16, #tpu.memory_space<vmem>>, vector<32x288xbf16>
    %cst = arith.constant dense<0.000000e+00> : vector<32x512xf32>
    %78 = tpu.matmul %77, %76, %cst {dimension_numbers = #tpu.dot_dimension_numbers<[1], [0], [0], [1], [0, 0, 1, 1], [], []>} : vector<32x288xbf16>, vector<288x512xbf16>, vector<32x512xf32> -> vector<32x512xf32>
    %79 = vector.extract_strided_slice %78 {offsets = [0, 0], sizes = [32, 128], strides = [1, 1]} : vector<32x512xf32> to vector<32x128xf32>
    %80 = vector.extract_strided_slice %78 {offsets = [0, 128], sizes = [32, 128], strides = [1, 1]} : vector<32x512xf32> to vector<32x128xf32>
    %81 = arith.maximumf %79, %80 : vector<32x128xf32>
    %82 = vector.extract_strided_slice %78 {offsets = [0, 256], sizes = [32, 128], strides = [1, 1]} : vector<32x512xf32> to vector<32x128xf32>
    %83 = arith.maximumf %81, %82 : vector<32x128xf32>
    %84 = vector.extract_strided_slice %78 {offsets = [0, 384], sizes = [32, 128], strides = [1, 1]} : vector<32x512xf32> to vector<32x128xf32>
    %85 = arith.maximumf %83, %84 : vector<32x128xf32>
    %c0_104 = arith.constant 0 : index
    %c0_105 = arith.constant 0 : index
    %86 = vector.load %arg3[%c0_104, %c0_105] : memref<32x1xf32, #tpu.memory_space<vmem>>, vector<32x1xf32>
    %87 = vector.broadcast %86 : vector<32x1xf32> to vector<32x128xf32>
    %88 = arith.addf %85, %87 : vector<32x128xf32>
    %cst_106 = arith.constant 0.000000e+00 : f32
    %89 = vector.broadcast %cst_106 : f32 to vector<32x128xf32>
    %90 = arith.maximumf %88, %89 : vector<32x128xf32>
    %c0_107 = arith.constant 0 : index
    %c0_108 = arith.constant 0 : index
    %91 = vector.load %arg4[%c0_107, %c0_108] : memref<32x128xf32, #tpu.memory_space<vmem>>, vector<32x128xf32>
    tpu.vector_store %arg4[%c0_107, %c0_108], %90 {strides = array<i32>} : memref<32x128xf32, #tpu.memory_space<vmem>>, vector<32x128xf32>,
    return
  }
  func.func @transform_0(%arg0: i32) -> (i32, i32, i32) {
    %c0_i32 = arith.constant 0 : i32
    %c0_i32_0 = arith.constant 0 : i32
    %c0_i32_1 = arith.constant 0 : i32
    %c0_i32_2 = arith.constant 0 : i32
    return %c0_i32, %c0_i32_0, %c0_i32_1 : i32, i32, i32
  }
  func.func @transform_1(%arg0: i32) -> (i32, i32) {
    %c0_i32 = arith.constant 0 : i32
    %c0_i32_0 = arith.constant 0 : i32
    %c0_i32_1 = arith.constant 0 : i32
    return %c0_i32, %c0_i32_0 : i32, i32
  }
  func.func @transform_2(%arg0: i32) -> (i32, i32) {
    %c0_i32 = arith.constant 0 : i32
    %c0_i32_0 = arith.constant 0 : i32
    %c0_i32_1 = arith.constant 0 : i32
    return %c0_i32, %c0_i32_0 : i32, i32
  }
  func.func @transform_3(%arg0: i32) -> (i32, i32) {
    %c0_i32 = arith.constant 0 : i32
    %c0_i32_0 = arith.constant 0 : i32
    return %c0_i32, %arg0 : i32, i32
  }
}

module attributes {stable_mosaic.version = 11 : i64} {
  func.func @_block_kernel(%arg0: i32, %arg1: memref<4x32x256xbf16, #tpu.memory_space<vmem>>, %arg2: memref<12x288xbf16, #tpu.memory_space<vmem>>, %arg3: memref<12x1xf32, #tpu.memory_space<vmem>>, %arg4: memref<12x128xf32, #tpu.memory_space<vmem>>) attributes {dimension_semantics = [#tpu.dimension_semantics<parallel>], iteration_bounds = array<i64: 1>, scalar_prefetch = 0 : i64, scratch_operands = 0 : i64, tpu.core_type = #tpu.core_type<tc>, window_params = [{pipeline_mode = #tpu.pipeline_mode<synchronous>, transform_indices = @transform_0, window_bounds = array<i64: 4, 32, 256>}, {pipeline_mode = #tpu.pipeline_mode<synchronous>, transform_indices = @transform_1, window_bounds = array<i64: 12, 288>}, {pipeline_mode = #tpu.pipeline_mode<synchronous>, transform_indices = @transform_2, window_bounds = array<i64: 12, 1>}, {transform_indices = @transform_3, window_bounds = array<i64: 12, 128>}]} {
    %c0 = arith.constant 0 : index
    %c0_0 = arith.constant 0 : index
    %c0_1 = arith.constant 0 : index
    %0 = vector.load %arg1[%c0, %c0_0, %c0_1] : memref<4x32x256xbf16, #tpu.memory_space<vmem>>, vector<1x32x128xbf16>
    %1 = vector.shape_cast %0 : vector<1x32x128xbf16> to vector<32x128xbf16>
    %c1 = arith.constant 1 : index
    %c0_2 = arith.constant 0 : index
    %c0_3 = arith.constant 0 : index
    %2 = vector.load %arg1[%c1, %c0_2, %c0_3] : memref<4x32x256xbf16, #tpu.memory_space<vmem>>, vector<1x32x128xbf16>
    %3 = vector.shape_cast %2 : vector<1x32x128xbf16> to vector<32x128xbf16>
    %c0_4 = arith.constant 0 : index
    %c0_5 = arith.constant 0 : index
    %c1_6 = arith.constant 1 : index
    %4 = vector.load %arg1[%c0_4, %c0_5, %c1_6] : memref<4x32x256xbf16, #tpu.memory_space<vmem>>, vector<1x32x128xbf16>
    %5 = vector.shape_cast %4 : vector<1x32x128xbf16> to vector<32x128xbf16>
    %c2 = arith.constant 2 : index
    %c0_7 = arith.constant 0 : index
    %c0_8 = arith.constant 0 : index
    %6 = vector.load %arg1[%c2, %c0_7, %c0_8] : memref<4x32x256xbf16, #tpu.memory_space<vmem>>, vector<1x32x128xbf16>
    %7 = vector.shape_cast %6 : vector<1x32x128xbf16> to vector<32x128xbf16>
    %c3 = arith.constant 3 : index
    %c0_9 = arith.constant 0 : index
    %c0_10 = arith.constant 0 : index
    %8 = vector.load %arg1[%c3, %c0_9, %c0_10] : memref<4x32x256xbf16, #tpu.memory_space<vmem>>, vector<1x32x128xbf16>
    %9 = vector.shape_cast %8 : vector<1x32x128xbf16> to vector<32x128xbf16>
    %c2_11 = arith.constant 2 : index
    %c0_12 = arith.constant 0 : index
    %c1_13 = arith.constant 1 : index
    %10 = vector.load %arg1[%c2_11, %c0_12, %c1_13] : memref<4x32x256xbf16, #tpu.memory_space<vmem>>, vector<1x32x128xbf16>
    %11 = vector.shape_cast %10 : vector<1x32x128xbf16> to vector<32x128xbf16>
    %c0_14 = arith.constant 0 : index
    %c0_15 = arith.constant 0 : index
    %c3_16 = arith.constant 3 : index
    %12 = vector.load %arg1[%c0_14, %c0_15, %c3_16] : memref<4x32x256xbf16, #tpu.memory_space<vmem>>, vector<1x32x128xbf16>
    %13 = vector.shape_cast %12 : vector<1x32x128xbf16> to vector<32x128xbf16>
    %c1_17 = arith.constant 1 : index
    %c0_18 = arith.constant 0 : index
    %c3_19 = arith.constant 3 : index
    %14 = vector.load %arg1[%c1_17, %c0_18, %c3_19] : memref<4x32x256xbf16, #tpu.memory_space<vmem>>, vector<1x32x128xbf16>
    %15 = vector.shape_cast %14 : vector<1x32x128xbf16> to vector<32x128xbf16>
    %c0_20 = arith.constant 0 : index
    %c0_21 = arith.constant 0 : index
    %c4 = arith.constant 4 : index
    %16 = vector.load %arg1[%c0_20, %c0_21, %c4] : memref<4x32x256xbf16, #tpu.memory_space<vmem>>, vector<1x32x128xbf16>
    %17 = vector.shape_cast %16 : vector<1x32x128xbf16> to vector<32x128xbf16>
    %18 = tpu.concatenate %1, %3, %5, %7, %9, %11, %13, %15, %17 in 0 : vector<32x128xbf16>, vector<32x128xbf16>, vector<32x128xbf16>, vector<32x128xbf16>, vector<32x128xbf16>, vector<32x128xbf16>, vector<32x128xbf16>, vector<32x128xbf16>, vector<32x128xbf16> -> vector<288x128xbf16>
    %c1_22 = arith.constant 1 : index
    %c0_23 = arith.constant 0 : index
    %c0_24 = arith.constant 0 : index
    %19 = vector.load %arg1[%c1_22, %c0_23, %c0_24] : memref<4x32x256xbf16, #tpu.memory_space<vmem>>, vector<1x32x128xbf16>
    %20 = vector.shape_cast %19 : vector<1x32x128xbf16> to vector<32x128xbf16>
    %c0_25 = arith.constant 0 : index
    %c0_26 = arith.constant 0 : index
    %c1_27 = arith.constant 1 : index
    %21 = vector.load %arg1[%c0_25, %c0_26, %c1_27] : memref<4x32x256xbf16, #tpu.memory_space<vmem>>, vector<1x32x128xbf16>
    %22 = vector.shape_cast %21 : vector<1x32x128xbf16> to vector<32x128xbf16>
    %c1_28 = arith.constant 1 : index
    %c0_29 = arith.constant 0 : index
    %c1_30 = arith.constant 1 : index
    %23 = vector.load %arg1[%c1_28, %c0_29, %c1_30] : memref<4x32x256xbf16, #tpu.memory_space<vmem>>, vector<1x32x128xbf16>
    %24 = vector.shape_cast %23 : vector<1x32x128xbf16> to vector<32x128xbf16>
    %c3_31 = arith.constant 3 : index
    %c0_32 = arith.constant 0 : index
    %c0_33 = arith.constant 0 : index
    %25 = vector.load %arg1[%c3_31, %c0_32, %c0_33] : memref<4x32x256xbf16, #tpu.memory_space<vmem>>, vector<1x32x128xbf16>
    %26 = vector.shape_cast %25 : vector<1x32x128xbf16> to vector<32x128xbf16>
    %c2_34 = arith.constant 2 : index
    %c0_35 = arith.constant 0 : index
    %c1_36 = arith.constant 1 : index
    %27 = vector.load %arg1[%c2_34, %c0_35, %c1_36] : memref<4x32x256xbf16, #tpu.memory_space<vmem>>, vector<1x32x128xbf16>
    %28 = vector.shape_cast %27 : vector<1x32x128xbf16> to vector<32x128xbf16>
    %c3_37 = arith.constant 3 : index
    %c0_38 = arith.constant 0 : index
    %c1_39 = arith.constant 1 : index
    %29 = vector.load %arg1[%c3_37, %c0_38, %c1_39] : memref<4x32x256xbf16, #tpu.memory_space<vmem>>, vector<1x32x128xbf16>
    %30 = vector.shape_cast %29 : vector<1x32x128xbf16> to vector<32x128xbf16>
    %c1_40 = arith.constant 1 : index
    %c0_41 = arith.constant 0 : index
    %c3_42 = arith.constant 3 : index
    %31 = vector.load %arg1[%c1_40, %c0_41, %c3_42] : memref<4x32x256xbf16, #tpu.memory_space<vmem>>, vector<1x32x128xbf16>
    %32 = vector.shape_cast %31 : vector<1x32x128xbf16> to vector<32x128xbf16>
    %c0_43 = arith.constant 0 : index
    %c0_44 = arith.constant 0 : index
    %c4_45 = arith.constant 4 : index
    %33 = vector.load %arg1[%c0_43, %c0_44, %c4_45] : memref<4x32x256xbf16, #tpu.memory_space<vmem>>, vector<1x32x128xbf16>
    %34 = vector.shape_cast %33 : vector<1x32x128xbf16> to vector<32x128xbf16>
    %c1_46 = arith.constant 1 : index
    %c0_47 = arith.constant 0 : index
    %c4_48 = arith.constant 4 : index
    %35 = vector.load %arg1[%c1_46, %c0_47, %c4_48] : memref<4x32x256xbf16, #tpu.memory_space<vmem>>, vector<1x32x128xbf16>
    %36 = vector.shape_cast %35 : vector<1x32x128xbf16> to vector<32x128xbf16>
    %37 = tpu.concatenate %20, %22, %24, %26, %28, %30, %32, %34, %36 in 0 : vector<32x128xbf16>, vector<32x128xbf16>, vector<32x128xbf16>, vector<32x128xbf16>, vector<32x128xbf16>, vector<32x128xbf16>, vector<32x128xbf16>, vector<32x128xbf16>, vector<32x128xbf16> -> vector<288x128xbf16>
    %c2_49 = arith.constant 2 : index
    %c0_50 = arith.constant 0 : index
    %c0_51 = arith.constant 0 : index
    %38 = vector.load %arg1[%c2_49, %c0_50, %c0_51] : memref<4x32x256xbf16, #tpu.memory_space<vmem>>, vector<1x32x128xbf16>
    %39 = vector.shape_cast %38 : vector<1x32x128xbf16> to vector<32x128xbf16>
    %c3_52 = arith.constant 3 : index
    %c0_53 = arith.constant 0 : index
    %c0_54 = arith.constant 0 : index
    %40 = vector.load %arg1[%c3_52, %c0_53, %c0_54] : memref<4x32x256xbf16, #tpu.memory_space<vmem>>, vector<1x32x128xbf16>
    %41 = vector.shape_cast %40 : vector<1x32x128xbf16> to vector<32x128xbf16>
    %c2_55 = arith.constant 2 : index
    %c0_56 = arith.constant 0 : index
    %c1_57 = arith.constant 1 : index
    %42 = vector.load %arg1[%c2_55, %c0_56, %c1_57] : memref<4x32x256xbf16, #tpu.memory_space<vmem>>, vector<1x32x128xbf16>
    %43 = vector.shape_cast %42 : vector<1x32x128xbf16> to vector<32x128xbf16>
    %c0_58 = arith.constant 0 : index
    %c0_59 = arith.constant 0 : index
    %c3_60 = arith.constant 3 : index
    %44 = vector.load %arg1[%c0_58, %c0_59, %c3_60] : memref<4x32x256xbf16, #tpu.memory_space<vmem>>, vector<1x32x128xbf16>
    %45 = vector.shape_cast %44 : vector<1x32x128xbf16> to vector<32x128xbf16>
    %c1_61 = arith.constant 1 : index
    %c0_62 = arith.constant 0 : index
    %c3_63 = arith.constant 3 : index
    %46 = vector.load %arg1[%c1_61, %c0_62, %c3_63] : memref<4x32x256xbf16, #tpu.memory_space<vmem>>, vector<1x32x128xbf16>
    %47 = vector.shape_cast %46 : vector<1x32x128xbf16> to vector<32x128xbf16>
    %c0_64 = arith.constant 0 : index
    %c0_65 = arith.constant 0 : index
    %c4_66 = arith.constant 4 : index
    %48 = vector.load %arg1[%c0_64, %c0_65, %c4_66] : memref<4x32x256xbf16, #tpu.memory_space<vmem>>, vector<1x32x128xbf16>
    %49 = vector.shape_cast %48 : vector<1x32x128xbf16> to vector<32x128xbf16>
    %c2_67 = arith.constant 2 : index
    %c0_68 = arith.constant 0 : index
    %c3_69 = arith.constant 3 : index
    %50 = vector.load %arg1[%c2_67, %c0_68, %c3_69] : memref<4x32x256xbf16, #tpu.memory_space<vmem>>, vector<1x32x128xbf16>
    %51 = vector.shape_cast %50 : vector<1x32x128xbf16> to vector<32x128xbf16>
    %c3_70 = arith.constant 3 : index
    %c0_71 = arith.constant 0 : index
    %c3_72 = arith.constant 3 : index
    %52 = vector.load %arg1[%c3_70, %c0_71, %c3_72] : memref<4x32x256xbf16, #tpu.memory_space<vmem>>, vector<1x32x128xbf16>
    %53 = vector.shape_cast %52 : vector<1x32x128xbf16> to vector<32x128xbf16>
    %c2_73 = arith.constant 2 : index
    %c0_74 = arith.constant 0 : index
    %c4_75 = arith.constant 4 : index
    %54 = vector.load %arg1[%c2_73, %c0_74, %c4_75] : memref<4x32x256xbf16, #tpu.memory_space<vmem>>, vector<1x32x128xbf16>
    %55 = vector.shape_cast %54 : vector<1x32x128xbf16> to vector<32x128xbf16>
    %56 = tpu.concatenate %39, %41, %43, %45, %47, %49, %51, %53, %55 in 0 : vector<32x128xbf16>, vector<32x128xbf16>, vector<32x128xbf16>, vector<32x128xbf16>, vector<32x128xbf16>, vector<32x128xbf16>, vector<32x128xbf16>, vector<32x128xbf16>, vector<32x128xbf16> -> vector<288x128xbf16>
    %c3_76 = arith.constant 3 : index
    %c0_77 = arith.constant 0 : index
    %c0_78 = arith.constant 0 : index
    %57 = vector.load %arg1[%c3_76, %c0_77, %c0_78] : memref<4x32x256xbf16, #tpu.memory_space<vmem>>, vector<1x32x128xbf16>
    %58 = vector.shape_cast %57 : vector<1x32x128xbf16> to vector<32x128xbf16>
    %c2_79 = arith.constant 2 : index
    %c0_80 = arith.constant 0 : index
    %c1_81 = arith.constant 1 : index
    %59 = vector.load %arg1[%c2_79, %c0_80, %c1_81] : memref<4x32x256xbf16, #tpu.memory_space<vmem>>, vector<1x32x128xbf16>
    %60 = vector.shape_cast %59 : vector<1x32x128xbf16> to vector<32x128xbf16>
    %c3_82 = arith.constant 3 : index
    %c0_83 = arith.constant 0 : index
    %c1_84 = arith.constant 1 : index
    %61 = vector.load %arg1[%c3_82, %c0_83, %c1_84] : memref<4x32x256xbf16, #tpu.memory_space<vmem>>, vector<1x32x128xbf16>
    %62 = vector.shape_cast %61 : vector<1x32x128xbf16> to vector<32x128xbf16>
    %c1_85 = arith.constant 1 : index
    %c0_86 = arith.constant 0 : index
    %c3_87 = arith.constant 3 : index
    %63 = vector.load %arg1[%c1_85, %c0_86, %c3_87] : memref<4x32x256xbf16, #tpu.memory_space<vmem>>, vector<1x32x128xbf16>
    %64 = vector.shape_cast %63 : vector<1x32x128xbf16> to vector<32x128xbf16>
    %c0_88 = arith.constant 0 : index
    %c0_89 = arith.constant 0 : index
    %c4_90 = arith.constant 4 : index
    %65 = vector.load %arg1[%c0_88, %c0_89, %c4_90] : memref<4x32x256xbf16, #tpu.memory_space<vmem>>, vector<1x32x128xbf16>
    %66 = vector.shape_cast %65 : vector<1x32x128xbf16> to vector<32x128xbf16>
    %c1_91 = arith.constant 1 : index
    %c0_92 = arith.constant 0 : index
    %c4_93 = arith.constant 4 : index
    %67 = vector.load %arg1[%c1_91, %c0_92, %c4_93] : memref<4x32x256xbf16, #tpu.memory_space<vmem>>, vector<1x32x128xbf16>
    %68 = vector.shape_cast %67 : vector<1x32x128xbf16> to vector<32x128xbf16>
    %c3_94 = arith.constant 3 : index
    %c0_95 = arith.constant 0 : index
    %c3_96 = arith.constant 3 : index
    %69 = vector.load %arg1[%c3_94, %c0_95, %c3_96] : memref<4x32x256xbf16, #tpu.memory_space<vmem>>, vector<1x32x128xbf16>
    %70 = vector.shape_cast %69 : vector<1x32x128xbf16> to vector<32x128xbf16>
    %c2_97 = arith.constant 2 : index
    %c0_98 = arith.constant 0 : index
    %c4_99 = arith.constant 4 : index
    %71 = vector.load %arg1[%c2_97, %c0_98, %c4_99] : memref<4x32x256xbf16, #tpu.memory_space<vmem>>, vector<1x32x128xbf16>
    %72 = vector.shape_cast %71 : vector<1x32x128xbf16> to vector<32x128xbf16>
    %c3_100 = arith.constant 3 : index
    %c0_101 = arith.constant 0 : index
    %c4_102 = arith.constant 4 : index
    %73 = vector.load %arg1[%c3_100, %c0_101, %c4_102] : memref<4x32x256xbf16, #tpu.memory_space<vmem>>, vector<1x32x128xbf16>
    %74 = vector.shape_cast %73 : vector<1x32x128xbf16> to vector<32x128xbf16>
    %75 = tpu.concatenate %58, %60, %62, %64, %66, %68, %70, %72, %74 in 0 : vector<32x128xbf16>, vector<32x128xbf16>, vector<32x128xbf16>, vector<32x128xbf16>, vector<32x128xbf16>, vector<32x128xbf16>, vector<32x128xbf16>, vector<32x128xbf16>, vector<32x128xbf16> -> vector<288x128xbf16>
    %76 = tpu.concatenate %18, %37, %56, %75 in 1 : vector<288x128xbf16>, vector<288x128xbf16>, vector<288x128xbf16>, vector<288x128xbf16> -> vector<288x512xbf16>
    %c0_103 = arith.constant 0 : index
    %c0_104 = arith.constant 0 : index
    %77 = vector.load %arg2[%c0_103, %c0_104] : memref<12x288xbf16, #tpu.memory_space<vmem>>, vector<12x288xbf16>
    %cst = arith.constant dense<0.000000e+00> : vector<12x512xf32>
    %78 = tpu.matmul %77, %76, %cst {dimension_numbers = #tpu.dot_dimension_numbers<[1], [0], [0], [1], [0, 0, 1, 1], [], []>} : vector<12x288xbf16>, vector<288x512xbf16>, vector<12x512xf32> -> vector<12x512xf32>
    %79 = vector.extract_strided_slice %78 {offsets = [0, 0], sizes = [12, 128], strides = [1, 1]} : vector<12x512xf32> to vector<12x128xf32>
    %80 = vector.extract_strided_slice %78 {offsets = [0, 128], sizes = [12, 128], strides = [1, 1]} : vector<12x512xf32> to vector<12x128xf32>
    %81 = arith.maximumf %79, %80 : vector<12x128xf32>
    %82 = vector.extract_strided_slice %78 {offsets = [0, 256], sizes = [12, 128], strides = [1, 1]} : vector<12x512xf32> to vector<12x128xf32>
    %83 = arith.maximumf %81, %82 : vector<12x128xf32>
    %84 = vector.extract_strided_slice %78 {offsets = [0, 384], sizes = [12, 128], strides = [1, 1]} : vector<12x512xf32> to vector<12x128xf32>
    %85 = arith.maximumf %83, %84 : vector<12x128xf32>
    %c0_105 = arith.constant 0 : index
    %c0_106 = arith.constant 0 : index
    %86 = vector.load %arg3[%c0_105, %c0_106] : memref<12x1xf32, #tpu.memory_space<vmem>>, vector<12x1xf32>
    %87 = vector.broadcast %86 : vector<12x1xf32> to vector<12x128xf32>
    %88 = arith.addf %85, %87 : vector<12x128xf32>
    %cst_107 = arith.constant 0.000000e+00 : f32
    %89 = vector.broadcast %cst_107 : f32 to vector<12x128xf32>
    %90 = arith.maximumf %88, %89 : vector<12x128xf32>
    %c0_108 = arith.constant 0 : index
    %c0_109 = arith.constant 0 : index
    %91 = vector.load %arg4[%c0_108, %c0_109] : memref<12x128xf32, #tpu.memory_space<vmem>>, vector<12x128xf32>
    tpu.vector_store %arg4[%c0_108, %c0_109], %90 {strides = array<i32>} : memref<12x128xf32, #tpu.memory_space<vmem>>, vector<12x128xf32>,
    return
  }
  func.func @transform_0(%arg0: i32) -> (i32, i32, i32) {
    %c0_i32 = arith.constant 0 : i32
    %c0_i32_0 = arith.constant 0 : i32
    %c0_i32_1 = arith.constant 0 : i32
    %c0_i32_2 = arith.constant 0 : i32
    return %c0_i32, %c0_i32_0, %c0_i32_1 : i32, i32, i32
  }
  func.func @transform_1(%arg0: i32) -> (i32, i32) {
    %c0_i32 = arith.constant 0 : i32
    %c0_i32_0 = arith.constant 0 : i32
    %c0_i32_1 = arith.constant 0 : i32
    return %c0_i32, %c0_i32_0 : i32, i32
  }
  func.func @transform_2(%arg0: i32) -> (i32, i32) {
    %c0_i32 = arith.constant 0 : i32
    %c0_i32_0 = arith.constant 0 : i32
    %c0_i32_1 = arith.constant 0 : i32
    return %c0_i32, %c0_i32_0 : i32, i32
  }
  func.func @transform_3(%arg0: i32) -> (i32, i32) {
    %c0_i32 = arith.constant 0 : i32
    %c0_i32_0 = arith.constant 0 : i32
    return %c0_i32, %arg0 : i32, i32
  }
}

</mosaic_0001>

<bundles_post_ra>
// kernel: encoder_forward.4
= control target key start
LH: loop header
LB: loop body
LE: loop exit
PB: predicated region body
PF: predicated region fallthrough
CT: control target
= control target key end

     0   :  { %v35_v0 = vlaneseq  ;;  %v2380_v2 = vmov 1983009808   ;;  %s2381_s20 = smov 127   ;;  %s2382_s23 = smov 111   ;;  %vm444_vm0 = vcmask 1041408   ;;  %vm473_vm3 = vcmask 1044480   ;;  %s4200_s0 = inlined_call_operand.vmem [shape: bf16[4,3,768], index: 0, kind: input, shape index: {}]   ;;  %s4201_s1 = inlined_call_operand.vmem [shape: bf16[16,27], index: 1, kind: input, shape index: {}]   ;;  %s4202_s2 = inlined_call_operand.vmem [shape: f32[16,1], index: 2, kind: input, shape index: {}]   ;;  %s4203_s3 = inlined_call_operand.vmem [shape: f32[16,640], index: 3, kind: output, shape index: {}]  }
   0x1   :  { %v15_v1 = vld [vmem:[%s4200_s0] sm:$0xff]  ;;  %v33_v3 = vunpack.c.l.s4 %v2380_v2  ;;  %v2412_v4 = vld [vmem:[%s4200_s0 + $0x18] sm:$0xff]  ;;  %v2417_v8 = vld.sshfl [vmem:[%s4200_s0 + $0x8] sm:$0x33 pattern:$0x76325410] }
   0x2   :  { %v36_v5 = vshrl.u32 %v35_v0, 7  ;;  %v31_v7 = vcombine.high %v15_v1, %v15_v1  ;;  %v166_v9 = vcombine.high %v2412_v4, %v2412_v4  ;;  %v2426_v11 = vld [vmem:[%s4200_s0 + $0x20] sm:$0xf]  ;;  %v144_v19 = vrot.slane %v2417_v8, 5  ;;  %v2537_v55 = vld [vmem:[%s4200_s0 + $0xc] sm:$0xff]  ;;  %s2383_s28 = smov 110  }
   0x3   :  { %v34_v6 = vunpack.c.0.s8 %v33_v3  ;;  %4342 = vst [vmem:[#allocation2_spill] sm:$0xff] %v2426_v11  ;;  %v2458_v22 = vcombine.high %v2417_v8, %v2417_v8  ;;  %4361 = vst [vmem:[#allocation21_spill] sm:$0xff] %v2537_v55  ;;  %v62_v56 = vcombine.high %v2537_v55, %v2537_v55  ;;  %v2569_v2 = vld.sshfl [vmem:[%s4200_s0 + $0x14] sm:$0x33 pattern:$0x76325410] }
   0x4   :  { %vm445_vm1 = vsmask.f32 1280  ;;  %vm474_vm4 = vsmask.f32 4352  ;;  %vm158_vm5 = vcmask 1039360   ;;  %vm452_vm6 = vcmask 1042432  }
   0x5   :  { %v2421_v10 = vsub.s32 %v34_v6, %v36_v5  ;;  %v145_v32 = vrot.slane %v2458_v22, 5  ;;  %vm2903_vm2 = vmand %vm444_vm0, %vm445_vm1  ;;  %vm481_vm8 = vcmask 1045504   ;;  %vm358_vm9 = vcmask 908288  }
   0x6   :  { %vm2932_vm7 = vmand %vm473_vm3, %vm474_vm4  ;;  %vm510_vm10 = vcmask 1040384   ;;  %vm532_vm11 = vsmask.f32 2304  ;;  %vm438_vm12 = vcmask 900096   ;;  %vm539_vm13 = vcmask 1043456  }
   0x7   :  { %v2429_v12 = vrot.slane %v15_v1, %v2421_v10  ;;  %v2432_v13 = vrot.slane %v31_v7, %v2421_v10  ;;  %v2436_v14 = vrot.slane %v2412_v4, %v2421_v10  ;;  %v2439_v15 = vrot.slane %v166_v9, %v2421_v10  ;;  %vm3098_vm15 = vmand %vm452_vm6, %vm532_vm11 }
   0x8   :  { %v2443_v16 = vrot.slane %v2426_v11, %v2421_v10  ;;  %v2547_v59 = vrot.slane %v2537_v55, %v2421_v10  ;;  %v2550_v60 = vrot.slane %v62_v56, %v2421_v10  ;;  %vm502_vm14 = vcmask 1047552  }
   0x9   :  { %4343 = vst [vmem:[#allocation3_spill] sm:$0xff] %v2436_v14  ;;  %4344 = vst [vmem:[#allocation4_spill] sm:$0xff] %v2439_v15  ;;  %v140_v17 = vrot.slane %v2429_v12, 5  ;;  %v142_v18 = vrot.slane %v2432_v13, 5  ;;  %v2450_v20 = vcombine.high %v2432_v13, %v2432_v13  ;;  %v2454_v21 = vcombine.high %v2429_v12, %v2429_v12 }
   0xa   :  { %4345 = vst [vmem:[#allocation5_spill] sm:$0xff] %v2443_v16  ;;  %v2462_v23 = vcombine.high %v2436_v14, %v2436_v14  ;;  %v2465_v24 = vshll.u32 %v2436_v14, 16  ;;  %v2472_v26 = vcombine.high %v2439_v15, %v2439_v15  ;;  %v2475_v27 = vshll.u32 %v2439_v15, 16  ;;  %4362 = vst [vmem:[#allocation22_spill] sm:$0xff] %v2547_v59 }
   0xb   :  { %146 = vrot.lane.b32.xlu0 %v140_v17, %s2381_s20  ;;  %150 = vrot.lane.b32.xlu1 %v142_v18, %s2381_s20  ;;  %v143_v25 = vrot.slane %v2450_v20, 5  ;;  %v2479_v28 = vcombine.high %v2443_v16, %v2443_v16  ;;  %v141_v31 = vrot.slane %v2454_v21, 5  ;;  %v2496_v37 = vshll.u32 %v2443_v16, 16  ;;  %4363 = vst [vmem:[#allocation23_spill] sm:$0xff] %v2550_v60 }
   0xc   :  { %4346 = vst [vmem:[#allocation6_spill] sm:$0xff] %v2462_v23  ;;  %4347 = vst [vmem:[#allocation7_spill] sm:$0xff] %v2465_v24  ;;  %v2482_v29 = vshll.u32 %v2462_v23, 16  ;;  %v2485_v30 = vshll.u32 %v2472_v26, 16  ;;  %v279_v33 = vrot.slane %v2465_v24, 1  ;;  %v281_v34 = vrot.slane %v2475_v27, 1 }
   0xd   :  { %4348 = vst [vmem:[#allocation8_spill] sm:$0xff] %v2472_v26  ;;  %4349 = vst [vmem:[#allocation9_spill] sm:$0xff] %v2475_v27  ;;  %v2499_v38 = vshll.u32 %v2479_v28, 16  ;;  %v2502_v39 = vshrl.u32 %v2436_v14, 16  ;;  %v286_v42 = vrot.slane %v2496_v37, 1  ;;  %v2512_v46 = vshrl.u32 %v2462_v23, 16 }
   0xe   :  { %4350 = vst [vmem:[#allocation10_spill] sm:$0xff] %v2479_v28  ;;  %4351 = vst [vmem:[#allocation11_spill] sm:$0xff] %v2482_v29  ;;  %v280_v35 = vrot.slane %v2482_v29, 1  ;;  %v282_v36 = vrot.slane %v2485_v30, 1  ;;  %v2515_v47 = vshrl.u32 %v2439_v15, 16  ;;  %v2522_v50 = vshrl.u32 %v2472_v26, 16 }
   0xf   :  { %4352 = vst [vmem:[#allocation12_spill] sm:$0xff] %v2485_v30  ;;  %154 = vrot.lane.b32.xlu0 %v144_v19, %s2381_s20  ;;  %152 = vrot.lane.b32.xlu1 %v143_v25, %s2381_s20  ;;  %4353 = vst [vmem:[#allocation13_spill] sm:$0xff] %v2496_v37  ;;  %v290_v43 = vrot.slane %v2499_v38, 1  ;;  %v291_v45 = vor.u32 %v279_v33, %v2502_v39  ;;  %v2525_v51 = vshrl.u32 %v2443_v16, 16  ;;  %v2532_v54 = vshrl.u32 %v2479_v28, 16 }
  0x10   :  { %4354 = vst [vmem:[#allocation14_spill] sm:$0xff] %v2499_v38  ;;  %4355 = vst [vmem:[#allocation15_spill] sm:$0xff] %v2502_v39  ;;  %v2298_v40 = vpack.i.bf16 %v280_v35, %v279_v33  ;;  %v2303_v41 = vpack.i.bf16 %v282_v36, %v281_v34  ;;  %v292_v48 = vor.u32 %v280_v35, %v2512_v46  ;;  %v340_v58 = vrot.slane %v2429_v12, 7 }
  0x11   :  { %v2308_v44 = vpack.i.bf16 %v290_v43, %v286_v42  ;;  %4356 = vst [vmem:[#allocation16_spill] sm:$0xff] %v2512_v46  ;;  %4357 = vst [vmem:[#allocation17_spill] sm:$0xff] %v2515_v47  ;;  %v293_v49 = vor.u32 %v281_v34, %v2515_v47  ;;  %v294_v52 = vor.u32 %v282_v36, %v2522_v50  ;;  %v341_v62 = vrot.slane %v2454_v21, 7 }
  0x12   :  { %4358 = vst [vmem:[#allocation18_spill] sm:$0xff] %v2522_v50  ;;  %4359 = vst [vmem:[#allocation19_spill] sm:$0xff] %v2525_v51  ;;  %v297_v53 = vor.u32 %v2525_v51, %v286_v42  ;;  %v300_v57 = vor.u32 %v2532_v54, %v290_v43  ;;  %v2554_v61 = vcombine.high %v2547_v59, %v2547_v59  ;;  %v342_v63 = vrot.slane %v2432_v13, 7 }
  0x13   :  { %148 = vrot.lane.b32.xlu0 %v141_v31, %s2381_s20  ;;  %156 = vrot.lane.b32.xlu1 %v145_v32, %s2381_s20  ;;  %4360 = vst [vmem:[#allocation20_spill] sm:$0xff] %v2532_v54  ;;  %v2561_v0 = vshrl.u32 %v2547_v59, 16  ;;  %v2564_v1 = vshll.u32 %v2547_v59, 16  ;;  %v2572_v3 = vshrl.u32 %v2550_v60, 16  ;;  %v2575_v5 = vshll.u32 %v2550_v60, 16 }
  0x14   :  { %4364 = vst [vmem:[#allocation24_spill] sm:$0xff] %v2554_v61  ;;  %v343_v6 = vrot.slane %v2450_v20, 7  ;;  %v2579_v7 = vshrl.u32 %v2554_v61, 16  ;;  %v2582_v9 = vshll.u32 %v2554_v61, 16  ;;  %v2586_v17 = vcombine.high %v2550_v60, %v2550_v60 }
  0x15   :  { %4365 = vst [vmem:[#allocation25_spill] sm:$0xff] %v2561_v0  ;;  %4366 = vst [vmem:[#allocation26_spill] sm:$0xff] %v2572_v3  ;;  %v344_v18 = vrot.slane %v2417_v8, 7  ;;  %v373_v19 = vrot.slane %v2561_v0, 5  ;;  %v374_v25 = vrot.slane %v2564_v1, 6  ;;  %v345_v31 = vrot.slane %v2458_v22, 7 }
  0x16   :  { %4367 = vst [vmem:[#allocation27_spill] sm:$0xff] %v2575_v5  ;;  %4368 = vst [vmem:[#allocation28_spill] sm:$0xff] %v2579_v7  ;;  %v379_v32 = vrot.slane %v2572_v3, 5  ;;  %v380_v33 = vrot.slane %v2575_v5, 6  ;;  %v376_v34 = vrot.slane %v2579_v7, 5  ;;  %v377_v35 = vrot.slane %v2582_v9, 6 }
  0x17   :  { %2299 = vrot.lane.b32.xlu0 %v2298_v40, %s2381_s20  ;;  %2304 = vrot.lane.b32.xlu1 %v2303_v41, %s2381_s20  ;;  %4369 = vst [vmem:[#allocation29_spill] sm:$0xff] %v2586_v17  ;;  %v2599_v36 = vshrl.u32 %v2586_v17, 16  ;;  %v2602_v40 = vshll.u32 %v2586_v17, 16  ;;  %v375_v41 = vor.u32 %v374_v25, %v373_v19  ;;  %v2607_v42 = vshrl.u32 %v2569_v2, 16 }
  0x18   :  { %v2610_v43 = vshll.u32 %v2569_v2, 16  ;;  %v2702_v38 = vshrl.u32 %v2432_v13, 16  ;;  %v2706_v37 = vshll.u32 %v2432_v13, 16  ;;  %vm503_vm0 = vsmask.f32 7424 }
  0x19   :  { %4370 = vst [vmem:[#allocation30_spill] sm:$0xff] %v2599_v36  ;;  %4371 = vst [vmem:[#allocation31_spill] sm:$0xff] %v2602_v40 }
  0x1a   :  { %4372 = vst [vmem:[#allocation32_spill] sm:$0xff] %v2607_v42  ;;  %4373 = vst [vmem:[#allocation33_spill] sm:$0xff] %v2610_v43  ;;  %v391_v56 = vrot.slane %v2610_v43, 6  ;;  %v1047_v26 = vrot.slane %v2706_v37, 4 }
  0x1b   :  { %2309 = vrot.lane.b32.xlu0 %v2308_v44, %s2381_s20  ;;  %313 = vrot.lane.b32.xlu1 %v291_v45, %s2381_s20  ;;  %v2614_v44 = vcombine.high %v2569_v2, %v2569_v2  ;;  %v378_v45 = vor.u32 %v377_v35, %v376_v34  ;;  %v2648_v34 = vshrl.u32 %v2429_v12, 16  ;;  %vm3165_vm1 = vmand %vm502_vm14, %vm503_vm0 }
  0x1d   :  { %v1040_v11 = vrot.slane %v2648_v34, 3 }
  0x1f   :  { %315 = vrot.lane.b32.xlu0 %v292_v48, %s2381_s20  ;;  %317 = vrot.lane.b32.xlu1 %v293_v49, %s2381_s20  ;;  %v381_v48 = vor.u32 %v380_v33, %v379_v32  ;;  %v382_v49 = vrot.slane %v2599_v36, 5  ;;  %v2640_v32 = vshll.u32 %v2429_v12, 16 }
  0x21   :  { %4376 = vst [vmem:[#allocation36_spill] sm:$0xff] %v2640_v32  ;;  %v4204_v35 = vrot.slane %v2640_v32, 1 }
  0x23   :  { %319 = vrot.lane.b32.xlu0 %v294_v52, %s2381_s20  ;;  %321 = vrot.lane.b32.xlu1 %v297_v53, %s2381_s20  ;;  %v383_v52 = vrot.slane %v2602_v40, 6  ;;  %v388_v53 = vrot.slane %v2607_v42, 5 }
  0x25   :  { %v392_v19 = vor.u32 %v391_v56, %v388_v53  ;;  %v424_v53 = vcombine.low %v2432_v13, %v2432_v13 }
  0x27   :  { %323 = vrot.lane.b32.xlu0 %v300_v57, %s2381_s20  ;;  %346 = vrot.lane.b32.xlu1 %v340_v58, %s2382_s23  ;;  %v2623_v57 = vshrl.u32 %v2614_v44, 16  ;;  %v2626_v58 = vshll.u32 %v2614_v44, 16 }
  0x29   :  { %4374 = vst [vmem:[#allocation34_spill] sm:$0xff] %v2623_v57  ;;  %4375 = vst [vmem:[#allocation35_spill] sm:$0xff] %v2626_v58  ;;  %v396_v25 = vrot.slane %v2623_v57, 5 }
  0x2b   :  { %348 = vrot.lane.b32.xlu0 %v341_v62, %s2382_s23  ;;  %350 = vrot.lane.b32.xlu1 %v342_v63, %s2382_s23  ;;  %v2629_v62 = vshll.u32 %v2454_v21, 16  ;;  %v2632_v63 = vshrl.u32 %v2454_v21, 16 }
  0x2d   :  { %v572_v54 = vrot.slane %v2632_v63, 6  ;;  %v575_v57 = vrot.slane %v2629_v62, 7  ;;  %v1043_v42 = vrot.slane %v2632_v63, 3 }
  0x2f   :  { %352 = vrot.lane.b32.xlu0 %v343_v6, %s2382_s23  ;;  %354 = vrot.lane.b32.xlu1 %v344_v18, %s2382_s23  ;;  %v4205_v6 = vrot.slane %v2629_v62, 1  ;;  %v384_v18 = vor.u32 %v383_v52, %v382_v49  ;;  %v2663_v49 = vor.u32 %v4204_v35, %v2648_v34  ;;  %v576_v47 = vor.u32 %v575_v57, %v572_v54 }
  0x31   :  { %v2645_v33 = vor.u32 %v4205_v6, %v2632_v63 }
  0x33   :  { %356 = vrot.lane.b32.xlu0 %v345_v31, %s2382_s23  ;;  %401 = vrot.lane.b32.xlu1 %v375_v41, %s2382_s23  ;;  %v399_v31 = vrot.slane %v2626_v58, 6  ;;  %v1044_v58 = vrot.slane %v2629_v62, 4 }
  0x35   :  { %v400_v41 = vor.u32 %v399_v31, %v396_v25  ;;  %v564_v25 = vrot.slane %v2648_v34, 6  ;;  %v567_v31 = vrot.slane %v2640_v32, 7 }
  0x37   :  { %403 = vrot.lane.b32.xlu0 %v378_v45, %s2382_s23  ;;  %405 = vrot.lane.b32.xlu1 %v381_v48, %s2382_s23  ;;  %v423_v45 = vcombine.low %v2429_v12, %v2429_v12  ;;  %v2658_v48 = vld [vmem:[%s4200_s0 + $0x24] sm:$0xff]  ;;  %v568_v43 = vor.u32 %v567_v31, %v564_v25  ;;  %v2732_v31 = vor.u32 %v1044_v58, %v1043_v42  ;;  %v1041_v42 = vrot.slane %v2640_v32, 4 }
  0x38   :  { %v2667_v52 = vrot.slane %v2658_v48, %v2421_v10  ;;  %v654_v56 = vcombine.high %v2658_v48, %v2658_v48 }
  0x3a   :  { %4377 = vst [vmem:[#allocation37_spill] sm:$0xff] %v2667_v52  ;;  %v2696_v35 = vcombine.high %v2667_v52, %v2667_v52  ;;  %v2699_v6 = vrot.slane %v654_v56, %v2421_v10  ;;  %v1046_v56 = vrot.slane %v2702_v38, 3  ;;  %v2715_v28 = vshrl.u32 %v2667_v52, 16 }
  0x3b   :  { %407 = vrot.lane.b32.xlu0 %v384_v18, %s2382_s23  ;;  %409 = vrot.lane.b32.xlu1 %v392_v19, %s2382_s23  ;;  %v2678_v18 = vld.sshfl [vmem:[%s4200_s0 + $0x2c] sm:$0x33 pattern:$0x76325410] }
  0x3c   :  { %v2682_v19 = vcombine.high %v2678_v18, %v2678_v18  ;;  %4380 = vst [vmem:[#allocation40_spill] sm:$0xff] %v2696_v35  ;;  %4381 = vst [vmem:[#allocation41_spill] sm:$0xff] %v2699_v6  ;;  %v2723_v51 = vshll.u32 %v2696_v35, 16  ;;  %v2730_v25 = vcombine.high %v2699_v6, %v2699_v6  ;;  %v4386_v16 = vshll.u32 %v2678_v18, 16 }
  0x3d   :  { %4382 = vst [vmem:[#allocation42_spill] sm:$0xff] %v2715_v28  ;;  %v2746_v30 = vshrl.u32 %v2696_v35, 16  ;;  %v2749_v50 = vshrl.u32 %v2699_v6, 16 }
  0x3e   :  { %4378 = vst [vmem:[#allocation38_spill] sm:$0xff] %v2682_v19  ;;  %4383 = vst [vmem:[#allocation43_spill] sm:$0xff] %v2723_v51  ;;  %v2736_v55 = vrot.slane %v4386_v16, 1  ;;  %v4246_v57 = vrot.slane %v2723_v51, 1  ;;  %v4392_v16 = vrot.slane %v2629_v62, 1 }
  0x3f   :  { %411 = vrot.lane.b32.xlu0 %v400_v41, %s2382_s23  ;;  %426 = vrot.lane.b32.xlu1 %v423_v45, %s2383_s28  ;;  %v2687_v41 = vshll.u32 %v2667_v52, 16  ;;  %v425_v45 = vcombine.low %v2417_v8, %v2417_v8  ;;  %4385 = vst [vmem:[#allocation45_spill] sm:$0xff] %v2730_v25  ;;  %v4387_v52 = vshll.u32 %v2682_v19, 16  ;;  %4388 = vst [vmem:[#allocation46_spill] sm:$0xff] %v2746_v30 }
  0x40   :  { %4389 = vst [vmem:[#allocation47_spill] sm:$0xff] %v2749_v50 }
  0x41   :  { %4379 = vst [vmem:[#allocation39_spill] sm:$0xff] %v2687_v41  ;;  %v2740_v27 = vrot.slane %v4387_v52, 1  ;;  %v2763_v52 = vshll.u32 %v2730_v25, 16 }
  0x43   :  { %428 = vrot.lane.b32.xlu0 %v2429_v12, %s2383_s28  ;;  %430 = vrot.lane.b32.xlu1 %v424_v53, %s2383_s28  ;;  %v2726_v53 = vshll.u32 %v2699_v6, 16  ;;  %4391 = vst [vmem:[#allocation48_spill] sm:$0xff] %v2763_v52  ;;  %v2766_v6 = vor.u32 %v1041_v42, %v1040_v11  ;;  %v2783_v11 = vshrl.u32 %v2730_v25, 16  ;;  %v4249_v42 = vrot.slane %v2763_v52, 1 }
  0x44   :  { %v840_v25 = vrot.slane %v2632_v63, 5 }
  0x45   :  { %4384 = vst [vmem:[#allocation44_spill] sm:$0xff] %v2726_v53  ;;  %v4245_v58 = vrot.slane %v2726_v53, 1  ;;  %4394 = vst [vmem:[#allocation50_spill] sm:$0xff] %v2783_v11 }
  0x47   :  { %432 = vrot.lane.b32.xlu0 %v2432_v13, %s2383_s28  ;;  %434 = vrot.lane.b32.xlu1 %v425_v45, %s2383_s28  ;;  %v2742_v45 = vor.u32 %v1047_v26, %v1046_v56  ;;  %v4390_v26 = vrot.slane %v2687_v41, 1  ;;  %v4244_v56 = vrot.slane %v2706_v37, 1  ;;  %v767_v35 = vor.u32 %v4245_v58, %v2749_v50 }
  0x48   :  { %v815_v58 = vrot.slane %v2554_v61, 7 }
  0x49   :  { %v765_v54 = vor.u32 %v4390_v26, %v2715_v28  ;;  %v766_v26 = vor.u32 %v4246_v57, %v2746_v30 }
  0x4b   :  { %436 = vrot.lane.b32.xlu0 %v2417_v8, %s2383_s28  ;;  %609 = vrot.lane.b32.xlu1 %v568_v43, %s2381_s20  ;;  %v2772_v43 = vpack.i.bf16 %v4244_v56, %v4392_v16  ;;  %v814_v16 = vrot.slane %v2547_v59, 7  ;;  %v838_v56 = vrot.slane %v2640_v32, 6  ;;  %v4255_v32 = vshrl.u32 %v2678_v18, 16 }
  0x4d   :  { %4393 = vst [vmem:[#allocation49_spill] sm:$0xff] %v2772_v43 }
  0x4f   :  { %611 = vrot.lane.b32.xlu0 %v576_v47, %s2381_s20  ;;  %787 = vrot.lane.b32.xlu1 %v765_v54, %s2381_s20  ;;  %v768_v47 = vor.u32 %v4249_v42, %v2783_v11  ;;  %v837_v54 = vrot.slane %v2648_v34, 5  ;;  %v841_v42 = vrot.slane %v2629_v62, 6  ;;  %v843_v34 = vrot.slane %v2702_v38, 5 }
  0x50   :  { %v2809_v11 = vshll.u32 %v2450_v20, 16 }
  0x51   :  { %v839_v57 = vor.u32 %v838_v56, %v837_v54  ;;  %v842_v63 = vor.u32 %v841_v42, %v840_v25  ;;  %v2828_v25 = vrot.slane %v4255_v32, 5  ;;  %v580_v42 = vrot.slane %v2702_v38, 6 }
  0x52   :  { %v847_v56 = vrot.slane %v2809_v11, 6  ;;  %v591_v32 = vrot.slane %v2809_v11, 7 }
  0x53   :  { %789 = vrot.lane.b32.xlu0 %v766_v26, %s2381_s20  ;;  %791 = vrot.lane.b32.xlu1 %v767_v35, %s2381_s20  ;;  %v816_v26 = vrot.slane %v2550_v60, 7  ;;  %v817_v35 = vrot.slane %v2586_v17, 7  ;;  %4395 = vst [vmem:[#allocation51_spill] sm:$0xff] %v2828_v25  ;;  %v196_v25 = vrot.slane %v2465_v24, 4 }
  0x57   :  { %793 = vrot.lane.b32.xlu0 %v768_v47, %s2381_s20  ;;  %820 = vrot.lane.b32.xlu1 %v814_v16, %s2382_s23  ;;  %v844_v47 = vrot.slane %v2706_v37, 6  ;;  %v2806_v16 = vshrl.u32 %v2450_v20, 16 }
  0x59   :  { %v845_v62 = vor.u32 %v844_v47, %v843_v34  ;;  %v583_v34 = vrot.slane %v2706_v37, 7  ;;  %v4256_v47 = vshrl.u32 %v2682_v19, 16 }
  0x5b   :  { %822 = vrot.lane.b32.xlu0 %v815_v58, %s2382_s23  ;;  %824 = vrot.lane.b32.xlu1 %v816_v26, %s2382_s23  ;;  %v846_v58 = vrot.slane %v2806_v16, 5  ;;  %v2819_v26 = vcombine.low %v2547_v59, %v2547_v59 }
  0x5d   :  { %v848_v54 = vor.u32 %v847_v56, %v846_v58  ;;  %v2844_v58 = vrot.slane %v4256_v47, 5 }
  0x5f   :  { %826 = vrot.lane.b32.xlu0 %v817_v35, %s2382_s23  ;;  %855 = vrot.lane.b32.xlu1 %v839_v57, %s2383_s28  ;;  %v4253_v35 = vmov 0   ;;  %v878_v57 = vcombine.low %v2550_v60, %v2550_v60  ;;  %4398 = vst [vmem:[#allocation53_spill] sm:$0xff] %v2844_v58  ;;  %v201_v58 = vrot.slane %v2512_v46, 3 }
  0x60   :  { %1794 = vmatprep.mubr.bf16.mxu0 %v4253_v35  ;;  %1837 = vmatprep.mubr.bf16.mxu1 %v4253_v35 }
  0x61   :  { %2359 = vset.pattern.permute.xlu1 %v4253_v35  ;;  %2358 = vset.pattern.permute.xlu0 %v4253_v35  ;;  %v588_v35 = vrot.slane %v2806_v16, 6 }
  0x63   :  { %857 = vrot.lane.b32.xlu0 %v842_v63, %s2383_s28  ;;  %859 = vrot.lane.b32.xlu1 %v845_v62, %s2383_s28  ;;  %v4396_v63 = vshll.u32 %v2678_v18, 16  ;;  %v592_v56 = vor.u32 %v591_v32, %v588_v35  ;;  %v634_v32 = vrot.slane %v2586_v17, 5  ;;  %v237_v17 = vcombine.low %v2658_v48, %v2658_v48 }
  0x64   :  { %v193_v48 = vrot.slane %v2502_v39, 3 }
  0x65   :  { %v2840_v62 = vrot.slane %v4396_v63, 6  ;;  %v4399_v63 = vshll.u32 %v2682_v19, 16 }
  0x67   :  { %861 = vrot.lane.b32.xlu0 %v848_v54, %s2383_s28  ;;  %880 = vrot.lane.b32.xlu1 %v2819_v26, %s2383_s28  ;;  %4397 = vst [vmem:[#allocation52_spill] sm:$0xff] %v2840_v62  ;;  %v584_v54 = vor.u32 %v583_v34, %v580_v42  ;;  %v2855_v43 = vrot.slane %v4399_v63, 6  ;;  %v708_v42 = vcombine.low %v2412_v4, %v2412_v4  ;;  %v632_v34 = vrot.slane %v2554_v61, 5 }
  0x68   :  { %v633_v63 = vrot.slane %v2550_v60, 5  ;;  %v2875_v4 = vcombine.low %v2436_v14, %v2436_v14 }
  0x69   :  { %4400 = vst [vmem:[#allocation54_spill] sm:$0xff] %v2855_v43  ;;  %v715_v47 = vrot.slane %v708_v42, %v2421_v10  ;;  %v100_v42 = vrot.slane %v2582_v9, 7  ;;  %v204_v43 = vrot.slane %v2482_v29, 4  ;;  %v197_v29 = vor.u32 %v196_v25, %v193_v48 }
  0x6b   :  { %882 = vrot.lane.b32.xlu0 %v2547_v59, %s2383_s28  ;;  %884 = vrot.lane.b32.xlu1 %v878_v57, %s2383_s28  ;;  %v631_v57 = vrot.slane %v2547_v59, 5  ;;  %v716_v35 = vcombine.low %v715_v47, %v715_v47 }
  0x6f   :  { %886 = vrot.lane.b32.xlu0 %v2550_v60, %s2383_s28  ;;  %613 = vrot.lane.b32.xlu1 %v584_v54, %s2381_s20  ;;  %v92_v54 = vrot.slane %v2564_v1, 7 }
  0x73   :  { %615 = vrot.lane.b32.xlu0 %v592_v56, %s2381_s20  ;;  %637 = vrot.lane.b32.xlu1 %v631_v57, %s2381_s20  ;;  %v89_v56 = vrot.slane %v2561_v0, 6  ;;  %v97_v57 = vrot.slane %v2579_v7, 6  ;;  %v244_v7 = vrot.slane %v237_v17, %v2421_v10  ;;  %v4403_v0 = vmov 0 }
  0x74   :  { %v4404_v0 = vsel %vm2903_vm2, 4294967295, %v4403_v0 }
  0x75   :  { %v93_v61 = vor.u32 %v92_v54, %v89_v56  ;;  %v101_v59 = vor.u32 %v100_v42, %v97_v57  ;;  %4405 = vst [vmem:[#allocation55_spill] sm:$0xff] %v4404_v0  ;;  %v4406_v56 = vrot.slane %v2726_v53, 1  ;;  %v4407_v54 = vrot.slane %v2763_v52, 1  ;;  %v4418_v0 = vld [vmem:[#allocation12_spill] sm:$0xff]  ;;  %v4420_v52 = vld [vmem:[#allocation17_spill] sm:$0xff] }
  0x76   :  { %v4408_v42 = vshrl.u32 %v2678_v18, 16  ;;  %v252_v39 = vcombine.low %v244_v7, %v244_v7 }
  0x77   :  { %639 = vrot.lane.b32.xlu0 %v632_v34, %s2381_s20  ;;  %641 = vrot.lane.b32.xlu1 %v633_v63, %s2381_s20  ;;  %v2318_v57 = vpack.i.bf16 %v4407_v54, %v4406_v56 }
  0x78   :  { %v771_v17 = vor.u32 %v4408_v42, %v2736_v55  ;;  %v819_v42 = vrot.slane %v2614_v44, 7 }
  0x7b   :  { %643 = vrot.lane.b32.xlu0 %v634_v32, %s2381_s20  ;;  %727 = vrot.lane.b32.xlu1 %v716_v35, %s2381_s20  ;;  %v4401_v32 = vrot.slane %v2687_v41, 1  ;;  %v4402_v35 = vrot.slane %v2723_v51, 1 }
  0x7d   :  { %v147_v34 = vpop.permute.xlu0 %146  ;;  %v2883_v63 = vpop.permute.xlu1 %150  ;;  %v2313_v60 = vpack.i.bf16 %v4402_v35, %v4401_v32  ;;  %v447_v32 = vsel %vm2903_vm2, %v2429_v12, %v93_v61  ;;  %v448_v35 = vsel %vm2903_vm2, %v2454_v21, %v101_v59  ;;  %v4412_v59 = vshrl.u32 %v2682_v19, 16 }
  0x7f   :  { %729 = vrot.lane.b32.xlu0 %v715_v47, %s2381_s20  ;;  %731 = vrot.lane.b32.xlu1 %v2875_v4, %s2381_s20  ;;  %v774_v61 = vor.u32 %v4412_v59, %v2740_v27 }
  0x81   :  { %v2898_v47 = vpop.permute.xlu0 %154  ;;  %v2900_v62 = vpop.permute.xlu1 %152 }
  0x83   :  { %733 = vrot.lane.b32.xlu0 %v2436_v14, %s2381_s20  ;;  %2314 = vrot.lane.b32.xlu1 %v2313_v60, %s2381_s20  ;;  %v205_v60 = vor.u32 %v204_v43, %v201_v58 }
  0x85   :  { %v149_v46 = vpop.permute.xlu0 %148  ;;  %v2923_v24 = vpop.permute.xlu1 %156 }
  0x86   :  { %4409 = vst [vmem:[#allocation56_spill] sm:$0xff] %v2923_v24  ;;  %v159_v56 = vsel %vm158_vm5, %v147_v34, %v149_v46  ;;  %v160_v18 = vsel %vm158_vm5, %v149_v46, %v2883_v63  ;;  %v818_v46 = vrot.slane %v2569_v2, 7  ;;  %v105_v24 = vrot.slane %v2572_v3, 6 }
  0x87   :  { %v455_v54 = vsel %vm452_vm6, %v447_v32, %v159_v56  ;;  %v459_v12 = vsel %vm452_vm6, %v448_v35, %v160_v18  ;;  %2319 = vrot.lane.b32.xlu0 %v2318_v57, %s2381_s20  ;;  %795 = vrot.lane.b32.xlu1 %v771_v17, %s2381_s20  ;;  %v2960_v17 = vshrl.u32 %v2417_v8, 16  ;;  %v2979_v18 = vshrl.u32 %v2458_v22, 16 }
  0x88   :  { %v477_v43 = vsel %vm2932_vm7, %v459_v12, %v205_v60  ;;  %v476_v25 = vsel %vm2932_vm7, %v455_v54, %v197_v29  ;;  %v2963_v29 = vshll.u32 %v2417_v8, 16  ;;  %v1167_v60 = vrot.slane %v2462_v23, 7 }
  0x89   :  { %v2946_v58 = vpop.permute.xlu0 %2299  ;;  %v2948_v34 = vpop.permute.xlu1 %2304  ;;  %v2951_v48 = vsel %vm481_vm8, %v477_v43, %v244_v7  ;;  %v2954_v57 = vsel %vm481_vm8, %v476_v25, %v252_v39  ;;  %v4413_v39 = vrot.slane %v2706_v37, 1  ;;  %v849_v56 = vrot.slane %v2960_v17, 5  ;;  %4414 = vst [vmem:[#allocation57_spill] sm:$0xff] %v2979_v18 }
  0x8a   :  { %v850_v8 = vrot.slane %v2963_v29, 6  ;;  %v2982_v54 = vshll.u32 %v2458_v22, 16  ;;  %v852_v59 = vrot.slane %v2979_v18, 5  ;;  %v1192_v25 = vrot.slane %v2746_v30, 5 }
  0x8b   :  { %797 = vrot.lane.b32.xlu0 %v774_v61, %s2381_s20  ;;  %828 = vrot.lane.b32.xlu1 %v818_v46, %s2382_s23  ;;  %v1123_v7 = vor.u32 %v4413_v39, %v2702_v38  ;;  %v1168_v38 = vrot.slane %v2439_v15, 7  ;;  %v596_v3 = vrot.slane %v2960_v17, 6 }
  0x8c   :  { %4415 = vst [vmem:[#allocation58_spill] sm:$0xff] %v2982_v54  ;;  %v853_v61 = vrot.slane %v2982_v54, 6 }
  0x8d   :  { %v2965_v32 = vpop.permute.xlu0 %2309  ;;  %v2967_v35 = vpop.permute.xlu1 %313 }
  0x8e   :  { %v854_v22 = vor.u32 %v853_v61, %v852_v59 }
  0x8f   :  { %830 = vrot.lane.b32.xlu0 %v819_v42, %s2382_s23  ;;  %1141 = vrot.lane.b32.xlu1 %v2645_v33, %s2383_s28  ;;  %v851_v33 = vor.u32 %v850_v8, %v849_v56  ;;  %v1193_v42 = vrot.slane %v2723_v51, 6  ;;  %v1195_v8 = vrot.slane %v2749_v50, 5  ;;  %v108_v51 = vrot.slane %v2575_v5, 7 }
  0x91   :  { %v2984_v12 = vpop.permute.xlu0 %315  ;;  %v2986_v37 = vpop.permute.xlu1 %317  ;;  %v1194_v56 = vor.u32 %v1193_v42, %v1192_v25  ;;  %v1190_v25 = vrot.slane %v2687_v41, 6  ;;  %v636_v41 = vrot.slane %v2614_v44, 5  ;;  %v162_v44 = vsel %vm158_vm5, %v2900_v62, %v2898_v47 }
  0x93   :  { %1143 = vrot.lane.b32.xlu0 %v1123_v7, %s2383_s28  ;;  %1174 = vrot.lane.b32.xlu1 %v1167_v60, %s2382_s23  ;;  %v1166_v60 = vrot.slane %v2436_v14, 7 }
  0x95   :  { %v2993_v46 = vpop.permute.xlu0 %319  ;;  %v2995_v43 = vpop.permute.xlu1 %321 }
  0x97   :  { %1176 = vrot.lane.b32.xlu0 %v1168_v38, %s2382_s23  ;;  %863 = vrot.lane.b32.xlu1 %v851_v33, %s2383_s28  ;;  %v1196_v38 = vrot.slane %v2726_v53, 6  ;;  %v109_v53 = vor.u32 %v108_v51, %v105_v24 }
  0x99   :  { %v3001_v39 = vpop.permute.xlu0 %323  ;;  %v3003_v7 = vpop.permute.xlu1 %346  ;;  %v1197_v61 = vor.u32 %v1196_v38, %v1195_v8 }
  0x9a   :  { %4416 = vst [vmem:[#allocation59_spill] sm:$0xff] %v3001_v39 }
  0x9b   :  { %865 = vrot.lane.b32.xlu0 %v854_v22, %s2383_s28  ;;  %1139 = vrot.lane.b32.xlu1 %v2663_v49, %s2383_s28  ;;  %v879_v22 = vcombine.low %v2569_v2, %v2569_v2  ;;  %v1189_v49 = vrot.slane %v2715_v28, 5  ;;  %v1018_v28 = vrot.slane %v2462_v23, 5  ;;  %v1019_v23 = vrot.slane %v2439_v15, 5 }
  0x9d   :  { %v3011_v33 = vpop.permute.xlu0 %348  ;;  %v3013_v59 = vpop.permute.xlu1 %350  ;;  %v1191_v8 = vor.u32 %v1190_v25, %v1189_v49  ;;  %v449_v49 = vsel %vm2903_vm2, %v2432_v13, %v109_v53  ;;  %v604_v25 = vrot.slane %v2979_v18, 6  ;;  %v209_v18 = vrot.slane %v4420_v52, 3 }
  0x9f   :  { %1172 = vrot.lane.b32.xlu0 %v1166_v60, %s2382_s23  ;;  %1209 = vrot.lane.b32.xlu1 %v1194_v56, %s2382_s23  ;;  %v113_v60 = vrot.slane %v2599_v36, 6  ;;  %v116_v56 = vrot.slane %v2602_v40, 7  ;;  %v1229_v36 = vcombine.low %v2439_v15, %v2439_v15 }
  0xa1   :  { %v3021_v42 = vpop.permute.xlu0 %352  ;;  %v3023_v19 = vpop.permute.xlu1 %354  ;;  %v117_v50 = vor.u32 %v116_v56, %v113_v60  ;;  %v607_v60 = vrot.slane %v2982_v54, 7  ;;  %v635_v56 = vrot.slane %v2569_v2, 5  ;;  %v161_v54 = vsel %vm158_vm5, %v2883_v63, %v2900_v62 }
  0xa3   :  { %1211 = vrot.lane.b32.xlu0 %v1197_v61, %s2382_s23  ;;  %888 = vrot.lane.b32.xlu1 %v879_v22, %s2383_s28  ;;  %v599_v61 = vrot.slane %v2963_v29, 7  ;;  %v450_v24 = vsel %vm2903_vm2, %v2450_v20, %v117_v50  ;;  %v4417_v50 = vld [vmem:[#allocation18_spill] sm:$0xff] }
  0xa4   :  { %v217_v5 = vrot.slane %v4417_v50, 3  ;;  %v4424_v50 = vmov 0 }
  0xa5   :  { %v3031_v38 = vpop.permute.xlu0 %356  ;;  %v402_v30 = vpop.permute.xlu1 %401  ;;  %v600_v51 = vor.u32 %v599_v61, %v596_v3  ;;  %v4419_v3 = vld [vmem:[#allocation2_spill] sm:$0xff]  ;;  %v4425_v50 = vsel %vm3098_vm15, 4294967295, %v4424_v50 }
  0xa6   :  { %v718_v61 = vcombine.low %v4419_v3, %v4419_v3  ;;  %4426 = vst [vmem:[#allocation61_spill] sm:$0xff] %v4425_v50 }
  0xa7   :  { %890 = vrot.lane.b32.xlu0 %v2569_v2, %s2383_s28  ;;  %1207 = vrot.lane.b32.xlu1 %v1191_v8, %s2382_s23  ;;  %v2385_v8 = vmov 65535   ;;  %v4421_v2 = vld [vmem:[#allocation9_spill] sm:$0xff] }
  0xa8   :  { %v1720_v20 = vsel %vm473_vm3, 4294967295, %v2385_v8  ;;  %v212_v39 = vrot.slane %v4421_v2, 4  ;;  %v608_v8 = vor.u32 %v607_v60, %v604_v25  ;;  %v3087_v62 = vrot.slane %v718_v61, %v2421_v10 }
  0xa9   :  { %v404_v40 = vpop.permute.xlu0 %403  ;;  %v406_v22 = vpop.permute.xlu1 %405  ;;  %v3073_v3 = vsel %vm481_vm8, %v1720_v20, 0  ;;  %v3090_v60 = vsel %vm452_vm6, %v449_v49, %v161_v54  ;;  %v359_v20 = vsel %vm358_vm9, %v3003_v7, %v3011_v33  ;;  %v331_v54 = vsel %vm158_vm5, %v2984_v12, %v2986_v37 }
  0xaa   :  { %4422 = vst [vmem:[#allocation2_spill] sm:$0xff] %v3073_v3  ;;  %v413_v49 = vsel %vm358_vm9, %v402_v30, %v404_v40  ;;  %v2302_v7 = vunpack.i.h.bf16 %v2946_v58  ;;  %v361_v30 = vsel %vm358_vm9, %v3013_v59, %v3021_v42  ;;  %vm1715_vm3 = vcmask 220160  }
  0xab   :  { %1233 = vrot.lane.b32.xlu0 %v2436_v14, %s2383_s28  ;;  %1235 = vrot.lane.b32.xlu1 %v1229_v36, %s2383_s28  ;;  %v220_v36 = vrot.slane %v4418_v0, 4  ;;  %v1017_v0 = vrot.slane %v2436_v14, 5  ;;  %v414_v14 = vsel %vm358_vm9, %v404_v40, %v406_v22  ;;  %v362_v40 = vsel %vm358_vm9, %v3021_v42, %v3023_v19 }
  0xac   :  { %v2301_v42 = vunpack.i.l.bf16 %v2946_v58  ;;  %v333_v58 = vsel %vm158_vm5, %v2993_v46, %v2995_v43 }
  0xad   :  { %v408_v13 = vpop.permute.xlu0 %407  ;;  %v3052_v53 = vpop.permute.xlu1 %409  ;;  %v3084_v25 = vor.u32 %v220_v36, %v217_v5  ;;  %v3102_v5 = vor.u32 %v212_v39, %v209_v18  ;;  %v3105_v36 = vsel %vm452_vm6, %v450_v24, %v162_v44  ;;  %v330_v18 = vsel %vm158_vm5, %v2967_v35, %v2984_v12 }
  0xae   :  { %v513_v24 = vsel %vm510_vm10, %v330_v18, %v359_v20  ;;  %v415_v35 = vsel %vm358_vm9, %v406_v22, %v408_v13  ;;  %v332_v20 = vsel %vm158_vm5, %v2986_v37, %v2993_v46  ;;  %v525_v46 = vsel %vm510_vm10, %v333_v58, %v362_v40 }
  0xaf   :  { %1231 = vrot.lane.b32.xlu0 %v2875_v4, %s2383_s28  ;;  %617 = vrot.lane.b32.xlu1 %v600_v51, %s2381_s20  ;;  %v360_v4 = vsel %vm358_vm9, %v3011_v33, %v3013_v59  ;;  %v2306_v33 = vunpack.i.l.bf16 %v2948_v34  ;;  %v534_v59 = vsel %vm3098_vm15, %v513_v24, %v413_v49 }
  0xb0   :  { %v517_v39 = vsel %vm510_vm10, %v331_v54, %v360_v4  ;;  %v416_v4 = vsel %vm358_vm9, %v408_v13, %v3052_v53 }
  0xb1   :  { %v3080_v63 = vpop.permute.xlu0 %411  ;;  %v3082_v51 = vpop.permute.xlu1 %426 }
  0xb2   :  { %4423 = vst [vmem:[#allocation60_spill] sm:$0xff] %v3082_v51 }
  0xb3   :  { %619 = vrot.lane.b32.xlu0 %v608_v8, %s2381_s20  ;;  %645 = vrot.lane.b32.xlu1 %v635_v56, %s2381_s20  ;;  %v535_v8 = vsel %vm3098_vm15, %v517_v39, %v414_v14  ;;  %v326_v39 = vsel %vm158_vm5, %v2302_v7, %v2306_v33 }
  0xb5   :  { %v3126_v56 = vpop.permute.xlu0 %428  ;;  %v431_v61 = vpop.permute.xlu1 %430 }
  0xb6   :  { %4427 = vst [vmem:[#allocation62_spill] sm:$0xff] %v3126_v56  ;;  %v440_v12 = vsel %vm438_vm12, %v3126_v56, %v431_v61  ;;  %v3136_v44 = vsel %vm438_vm12, %v3082_v51, %v3126_v56 }
  0xb7   :  { %4428 = vst [vmem:[#allocation63_spill] sm:$0xff] %v3136_v44  ;;  %647 = vrot.lane.b32.xlu0 %v636_v41, %s2381_s20  ;;  %1025 = vrot.lane.b32.xlu1 %v1018_v28, %s2381_s20  ;;  %v545_v14 = vsel %vm539_vm13, %v535_v8, %v440_v12  ;;  %v542_v22 = vsel %vm539_vm13, %v534_v59, %v3136_v44  ;;  %v4313_v41 = vunpack.i.l.bf16 %v2965_v32  ;;  %v2307_v59 = vunpack.i.h.bf16 %v2948_v34  ;;  %v4449_v44 = vld [vmem:[#allocation48_spill] sm:$0xff] }
  0xb8   :  { %v1724_v54 = vand.u32 %v3073_v3, %v545_v14  ;;  %v1722_v13 = vand.u32 %v3073_v3, %v542_v22  ;;  %v521_v28 = vsel %vm510_vm10, %v332_v20, %v361_v30  ;;  %v537_v8 = vsel %vm3098_vm15, %v525_v46, %v416_v4 }
  0xb9   :  { %v433_v49 = vpop.permute.xlu0 %432  ;;  %v3158_v18 = vpop.permute.xlu1 %434  ;;  %v536_v12 = vsel %vm3098_vm15, %v521_v28, %v415_v35  ;;  %v479_v14 = vsel %vm2932_vm7, %v3105_v36, %v3084_v25  ;;  %v506_v35 = vsel %vm3165_vm1, %v2951_v48, %v326_v39  ;;  %v328_v25 = vsel %vm158_vm5, %v2307_v59, %v4313_v41  ;;  %v4431_v48 = vld [vmem:[#allocation37_spill] sm:$0xff] }
  0xba   :  { %v441_v24 = vsel %vm438_vm12, %v431_v61, %v433_v49  ;;  %1774 = vmatprep.subr.bf16.mxu0 %v1724_v54  ;;  %v442_v30 = vsel %vm438_vm12, %v433_v49, %v3158_v18  ;;  %v726_v36 = vcombine.low %v3087_v62, %v3087_v62  ;;  %v3203_v58 = vcombine.low %v4431_v48, %v4431_v48 }
  0xbb   :  { %1027 = vrot.lane.b32.xlu0 %v1019_v23, %s2381_s20  ;;  %1023 = vrot.lane.b32.xlu1 %v1017_v0, %s2381_s20  ;;  %v551_v40 = vsel %vm539_vm13, %v537_v8, %v442_v30  ;;  %v548_v61 = vsel %vm539_vm13, %v536_v12, %v441_v24  ;;  %v325_v23 = vsel %vm158_vm5, %v2301_v42, %v2302_v7  ;;  %v4432_v7 = vld [vmem:[#allocation21_spill] sm:$0xff]  ;;  %v4433_v24 = vmov 0  }
  0xbc   :  { %1775 = vmatpush1.bf16.msra.mxu0 %v1722_v13  ;;  %v1728_v4 = vand.u32 %v3073_v3, %v551_v40  ;;  %v1726_v0 = vand.u32 %v3073_v3, %v548_v61  ;;  %v1080_v42 = vcombine.low %v4432_v7, %v4432_v7  ;;  %v505_v54 = vsel %vm3165_vm1, %v2954_v57, %v325_v23  ;;  %v3228_v57 = vld [vmem:[%s4201_s1] sm:$0xff]  }
  0xbd   :  { %1776 = vmatprep.subr.bf16.mxu0 %v506_v35  ;;  %v3192_v22 = vpop.permute.xlu0 %436  ;;  %v3194_v20 = vpop.permute.xlu1 %609  ;;  %v496_v13 = vsel %vm481_vm8, %v479_v14, %v4431_v48  ;;  %v478_v28 = vsel %vm2932_vm7, %v3090_v60, %v3102_v5  ;;  %v4435_v12 = vpack.i.bf16 %v2740_v27, %v2736_v55  ;;  %v4436_v14 = vld [vmem:[#allocation49_spill] sm:$0xff]  ;;  %v4437_v55 = vld [vmem:[#allocation8_spill] sm:$0xff]  ;;  %v4310_v7 = vrot.slane %v2582_v9, 1 }
  0xbe   :  { %1817 = vmatprep.subr.bf16.mxu1 %v1728_v4  ;;  %v492_v60 = vsel %vm481_vm8, %v478_v28, %v3203_v58  ;;  %v1087_v5 = vrot.slane %v1080_v42, %v2421_v10  ;;  %v1169_v23 = vrot.slane %v4437_v55, 7 }
  0xbf   :  { %1060 = vrot.lane.b32.xlu0 %v2732_v31, %s2382_s23  ;;  %1062 = vrot.lane.b32.xlu1 %v2742_v45, %s2382_s23  ;;  %v508_v31 = vsel %vm3165_vm1, %v496_v13, %v328_v25  ;;  %v327_v45 = vsel %vm158_vm5, %v2306_v33, %v2307_v59  ;;  %v4312_v59 = vrot.slane %v2963_v29, 1  ;;  %v4439_v13 = vld [vmem:[#allocation25_spill] sm:$0xff] }
  0xc0   :  { %1777 = vmatpush1.bf16.msra.mxu0 %v505_v54  ;;  %1818 = vmatpush1.bf16.msra.mxu1 %v1726_v0  ;;  %v507_v34 = vsel %vm3165_vm1, %v492_v60, %v327_v45  ;;  %v1088_v8 = vcombine.low %v1087_v5, %v1087_v5  ;;  %v4438_v0 = vld [vmem:[#allocation5_spill] sm:$0xff]  ;;  %v363_v60 = vsel %vm358_vm9, %v3023_v19, %v3031_v38 }
  0xc1   :  { %1819 = vmatprep.subr.bf16.mxu1 %v508_v31  ;;  %v3230_v49 = vpop.permute.xlu0 %611  ;;  %v788_v39 = vpop.permute.xlu1 %787  ;;  %v1170_v25 = vrot.slane %v4438_v0, 7  ;;  %v4440_v31 = vld [vmem:[#allocation28_spill] sm:$0xff] }
  0xc2   :  { %v1488_v45 = vor.u32 %v4310_v7, %v4440_v31 }
  0xc3   :  { %735 = vrot.lane.b32.xlu0 %v726_v36, %s2381_s20  ;;  %737 = vrot.lane.b32.xlu1 %v3087_v62, %s2381_s20  ;;  %v4311_v36 = vrot.slane %v2564_v1, 1 }
  0xc4   :  { %1820 = vmatpush1.bf16.msra.mxu1 %v507_v34  ;;  %2282 = vmatmul.mubr.msk.bf16.vlgmr.msra.gmra.mxu0 %vm1715_vm3, %v3228_v57  ;;  %v4441_v34 = vld [vmem:[#allocation58_spill] sm:$0xff] }
  0xc5   :  { %v3242_v33 = vpop.permute.xlu0 %789  ;;  %v3244_v46 = vpop.permute.xlu1 %791  ;;  %1880 = vmatprep.mubr.bf16.mxu0 %v4433_v24  ;;  %v1487_v28 = vor.u32 %v4311_v36, %v4439_v13 }
  0xc7   :  { %1058 = vrot.lane.b32.xlu0 %v2766_v6, %s2382_s23  ;;  %1100 = vrot.lane.b32.xlu1 %v1087_v5, %s2382_s23  ;;  %v1118_v6 = vrot.slane %v2809_v11, 1  ;;  %v4315_v5 = vrot.slane %v4441_v34, 1 }
  0xc8   :  { %2283 = vmatmul.mubr.msk.bf16.vlgmr.msra.gmra.mxu1 %vm1715_vm3, %v3228_v57 }
  0xc9   :  { %v3252_v62 = vpop.permute.xlu0 %793  ;;  %v821_v30 = vpop.permute.xlu1 %820  ;;  %1923 = vmatprep.mubr.bf16.mxu1 %v4433_v24  ;;  %v1124_v35 = vor.u32 %v1118_v6, %v2806_v16 }
  0xca   :  { %4434 = vst [vmem:[#allocation21_spill] sm:$0xff] %v3252_v62 }
  0xcb   :  { %1102 = vrot.lane.b32.xlu0 %v2819_v26, %s2382_s23  ;;  %2324 = vrot.lane.b32.xlu1 %v4435_v12, %s2381_s20  ;;  %v1125_v26 = vor.u32 %v4312_v59, %v2960_v17  ;;  %v4448_v59 = vld [vmem:[#allocation50_spill] sm:$0xff] }
  0xcc   :  { %v1198_v41 = vrot.slane %v4448_v59, 5 }
  0xcd   :  { %v823_v40 = vpop.permute.xlu0 %822  ;;  %v825_v61 = vpop.permute.xlu1 %824 }
  0xcf   :  { %1098 = vrot.lane.b32.xlu0 %v1088_v8, %s2382_s23  ;;  %2329 = vrot.lane.b32.xlu1 %v4436_v14, %s2383_s28  ;;  %v417_v8 = vsel %vm358_vm9, %v3052_v53, %v3080_v63  ;;  %v1532_v53 = vrot.slane %v4431_v48, 7  ;;  %v4444_v63 = vld [vmem:[#allocation40_spill] sm:$0xff] }
  0xd0   :  { %v1533_v7 = vrot.slane %v4444_v63, 7 }
  0xd1   :  { %v3270_v4 = vpop.permute.xlu0 %826  ;;  %v856_v27 = vpop.permute.xlu1 %855 }
  0xd3   :  { %1145 = vrot.lane.b32.xlu0 %v1124_v35, %s2383_s28  ;;  %1147 = vrot.lane.b32.xlu1 %v1125_v26, %s2383_s28  ;;  %v4443_v35 = vld [vmem:[#allocation59_spill] sm:$0xff] }
  0xd4   :  { %v334_v26 = vsel %vm158_vm5, %v2995_v43, %v4443_v35 }
  0xd5   :  { %v858_v42 = vpop.permute.xlu0 %857  ;;  %v860_v54 = vpop.permute.xlu1 %859  ;;  %v529_v19 = vsel %vm510_vm10, %v334_v26, %v363_v60  ;;  %v4447_v60 = vld [vmem:[#allocation57_spill] sm:$0xff] }
  0xd6   :  { %v867_v38 = vsel %vm438_vm12, %v856_v27, %v858_v42  ;;  %v538_v43 = vsel %vm3098_vm15, %v529_v19, %v417_v8  ;;  %v1126_v27 = vor.u32 %v4315_v5, %v4447_v60  ;;  %v1199_v8 = vrot.slane %v4449_v44, 6  ;;  %v4462_v44 = vld [vmem:[#allocation42_spill] sm:$0xff] }
  0xd7   :  { %1178 = vrot.lane.b32.xlu0 %v1169_v23, %s2382_s23  ;;  %1180 = vrot.lane.b32.xlu1 %v1170_v25, %s2382_s23  ;;  %v443_v23 = vsel %vm438_vm12, %v3158_v18, %v3192_v22  ;;  %v832_v25 = vsel %vm358_vm9, %v821_v30, %v823_v40  ;;  %v804_v18 = vsel %vm158_vm5, %v788_v39, %v3242_v33  ;;  %v4445_v22 = vld [vmem:[#allocation36_spill] sm:$0xff]  ;;  %v666_v59 = vrot.slane %v4462_v44, 3 }
  0xd8   :  { %v4446_v30 = vrot.slane %v4445_v22, 1  ;;  %v833_v19 = vsel %vm358_vm9, %v823_v40, %v825_v61  ;;  %v834_v39 = vsel %vm358_vm9, %v825_v61, %v3270_v4  ;;  %v805_v40 = vsel %vm158_vm5, %v3242_v33, %v3244_v46  ;;  %v4472_v44 = vld [vmem:[#allocation56_spill] sm:$0xff] }
  0xd9   :  { %v3293_v12 = vpop.permute.xlu0 %861  ;;  %v881_v14 = vpop.permute.xlu1 %880  ;;  %v806_v61 = vsel %vm158_vm5, %v3244_v46, %v3252_v62  ;;  %v1200_v46 = vor.u32 %v1199_v8, %v1198_v41  ;;  %v4453_v8 = vld [vmem:[#allocation15_spill] sm:$0xff] }
  0xda   :  { %4442 = vst [vmem:[#allocation49_spill] sm:$0xff] %v3293_v12  ;;  %v2333_v35 = vpack.i.bf16 %v1118_v6, %v4446_v30 }
  0xdb   :  { %1505 = vrot.lane.b32.xlu0 %v1487_v28, %s2383_s28  ;;  %1507 = vrot.lane.b32.xlu1 %v1488_v45, %s2383_s28  ;;  %v554_v28 = vsel %vm539_vm13, %v538_v43, %v443_v23  ;;  %v954_v45 = vsel %vm510_vm10, %v804_v18, %v832_v25  ;;  %v868_v23 = vsel %vm438_vm12, %v858_v42, %v860_v54  ;;  %v4452_v18 = vld [vmem:[#allocation10_spill] sm:$0xff] }
  0xdc   :  { %v972_v6 = vsel %vm3098_vm15, %v954_v45, %v867_v38  ;;  %v869_v25 = vsel %vm438_vm12, %v860_v54, %v3293_v12  ;;  %v3344_v54 = vld.sshfl [vmem:[%s4200_s0 + $0x14] sm:$0x3 pattern:$0x76325410]  ;;  %v962_v38 = vsel %vm510_vm10, %v806_v61, %v834_v39  ;;  %v1171_v30 = vrot.slane %v4452_v18, 7 }
  0xdd   :  { %v883_v26 = vpop.permute.xlu0 %882  ;;  %v885_v36 = vpop.permute.xlu1 %884  ;;  %4450 = vst [vmem:[#allocation5_spill] sm:$0xff] %v3344_v54  ;;  %v1730_v45 = vand.u32 %v3073_v3, %v554_v28  ;;  %v1555_v28 = vrot.slane %v4453_v8, 5 }
  0xde   :  { %v892_v22 = vsel %vm438_vm12, %v881_v14, %v883_v26  ;;  %v893_v14 = vsel %vm438_vm12, %v883_v26, %v885_v36 }
  0xdf   :  { %1538 = vrot.lane.b32.xlu0 %v1532_v53, %s2382_s23  ;;  %1540 = vrot.lane.b32.xlu1 %v1533_v7, %s2382_s23  ;;  %v979_v43 = vsel %vm539_vm13, %v972_v6, %v892_v22  ;;  %v958_v7 = vsel %vm510_vm10, %v805_v40, %v833_v19  ;;  %v974_v6 = vsel %vm3098_vm15, %v962_v38, %v869_v25  ;;  %v4454_v22 = vld [vmem:[#allocation7_spill] sm:$0xff]  ;;  %v122_v25 = vshll.u32 %v3344_v54, 16  ;;  %v3372_v40 = vld.sshfl [vmem:[%s4200_s0 + $0x20] sm:$0x3 pattern:$0x76325410] }
  0xe0   :  { %v1732_v42 = vand.u32 %v3073_v3, %v979_v43  ;;  %v973_v26 = vsel %vm3098_vm15, %v958_v7, %v868_v23  ;;  %v1556_v43 = vrot.slane %v4454_v22, 6  ;;  %v119_v23 = vshrl.u32 %v3344_v54, 16  ;;  %4455 = vst [vmem:[#allocation28_spill] sm:$0xff] %v3372_v40  ;;  %v4457_v7 = vld [vmem:[#allocation16_spill] sm:$0xff] }
  0xe1   :  { %v3348_v53 = vpop.permute.xlu0 %886  ;;  %v3350_v33 = vpop.permute.xlu1 %613  ;;  %v982_v39 = vsel %vm539_vm13, %v973_v26, %v893_v14  ;;  %v3380_v14 = vld [vmem:[%s4200_s0 + $0x2c] sm:$0x3]  ;;  %v1558_v38 = vrot.slane %v4457_v7, 5 }
  0xe2   :  { %4451 = vst [vmem:[#allocation25_spill] sm:$0xff] %v3348_v53  ;;  %v894_v19 = vsel %vm438_vm12, %v885_v36, %v3348_v53  ;;  %1860 = vmatprep.subr.bf16.mxu0 %v1732_v42  ;;  %v1734_v61 = vand.u32 %v3073_v3, %v982_v39  ;;  %4456 = vst [vmem:[#allocation58_spill] sm:$0xff] %v3380_v14  ;;  %v1557_v42 = vor.u32 %v1556_v43, %v1555_v28 }
  0xe3   :  { %2334 = vrot.lane.b32.xlu0 %v2333_v35, %s2383_s28  ;;  %1149 = vrot.lane.b32.xlu1 %v1126_v27, %s2383_s28  ;;  %v985_v41 = vsel %vm539_vm13, %v974_v6, %v894_v19  ;;  %v121_v6 = vrot.slane %v119_v23, 6  ;;  %v124_v19 = vrot.slane %v122_v25, 7  ;;  %v226_v39 = vshll.u32 %v3372_v40, 16 }
  0xe4   :  { %1861 = vmatpush1.bf16.msra.mxu0 %v1730_v45  ;;  %v1736_v36 = vand.u32 %v3073_v3, %v985_v41  ;;  %v4458_v45 = vld [vmem:[#allocation11_spill] sm:$0xff]  ;;  %v223_v41 = vshrl.u32 %v3372_v40, 16  ;;  %v254_v51 = vcombine.low %v3380_v14, %v3380_v14 }
  0xe5   :  { %v3374_v35 = vpop.permute.xlu0 %615  ;;  %v638_v27 = vpop.permute.xlu1 %637  ;;  %v1559_v26 = vrot.slane %v4458_v45, 6  ;;  %v2276_v23 = vld.sshfl [vmem:[%s4200_s0 + $0x8] sm:$0x3 pattern:$0x76325410]  ;;  %v125_v25 = vor.u32 %v124_v19, %v121_v6  ;;  %v228_v56 = vrot.slane %v226_v39, 4  ;;  %v1230_v39 = vcombine.low %v4438_v0, %v4438_v0 }
  0xe6   :  { %1903 = vmatprep.subr.bf16.mxu1 %v1736_v36  ;;  %v4463_v14 = vld [vmem:[#allocation39_spill] sm:$0xff]  ;;  %v4468_v6 = vld [vmem:[#allocation54_spill] sm:$0xff]  ;;  %v4469_v19 = vld [vmem:[#allocation53_spill] sm:$0xff] }
  0xe7   :  { %1182 = vrot.lane.b32.xlu0 %v1171_v30, %s2382_s23  ;;  %1213 = vrot.lane.b32.xlu1 %v1200_v46, %s2382_s23  ;;  %v4459_v30 = vld [vmem:[#allocation52_spill] sm:$0xff]  ;;  %v4460_v46 = vld [vmem:[#allocation51_spill] sm:$0xff]  ;;  %v1560_v43 = vor.u32 %v1559_v26, %v1558_v38  ;;  %v669_v2 = vrot.slane %v4463_v14, 4  ;;  %v4466_v26 = vld [vmem:[#allocation46_spill] sm:$0xff] }
  0xe8   :  { %1904 = vmatpush1.bf16.msra.mxu1 %v1734_v61  ;;  %v4461_v28 = vor.u32 %v4459_v30, %v4460_v46  ;;  %v225_v61 = vrot.slane %v223_v41, 3  ;;  %v261_v30 = vrot.slane %v254_v51, %v2421_v10  ;;  %v4464_v46 = vld [vmem:[#allocation47_spill] sm:$0xff]  ;;  %v674_v52 = vrot.slane %v4466_v26, 3  ;;  %v4534_v14 = vld [vmem:[#allocation62_spill] sm:$0xff] }
  0xe9   :  { %v640_v36 = vpop.permute.xlu0 %639  ;;  %v642_v5 = vpop.permute.xlu1 %641  ;;  %v4467_v3 = vld [vmem:[#allocation43_spill] sm:$0xff]  ;;  %v4470_v41 = vor.u32 %v4468_v6, %v4469_v19  ;;  %v1348_v51 = vrot.slane %v4453_v8, 6  ;;  %v2312_v8 = vunpack.i.h.bf16 %v2965_v32 }
  0xea   :  { %v677_v50 = vrot.slane %v4467_v3, 4  ;;  %v163_v3 = vsel %vm158_vm5, %v2898_v47, %v4472_v44  ;;  %v229_v6 = vor.u32 %v228_v56, %v225_v61  ;;  %v649_v19 = vsel %vm158_vm5, %v638_v27, %v640_v36 }
  0xeb   :  { %1215 = vrot.lane.b32.xlu0 %v4461_v28, %s2382_s23  ;;  %1573 = vrot.lane.b32.xlu1 %v1557_v42, %s2383_s28  ;;  %v682_v28 = vrot.slane %v4464_v46, 3  ;;  %v4465_v42 = vld [vmem:[#allocation44_spill] sm:$0xff]  ;;  %v1349_v46 = vrot.slane %v4454_v22, 7  ;;  %v269_v53 = vcombine.low %v261_v30, %v261_v30  ;;  %v670_v22 = vor.u32 %v669_v2, %v666_v59 }
  0xec   :  { %v685_v38 = vrot.slane %v4465_v42, 4  ;;  %v451_v42 = vsel %vm2903_vm2, %v2276_v23, %v125_v25  ;;  %v678_v12 = vor.u32 %v677_v50, %v674_v52  ;;  %v4473_v25 = vld [vmem:[#allocation22_spill] sm:$0xff]  ;;  %v622_v44 = vsel %vm158_vm5, %v3230_v49, %v3350_v33 }
  0xed   :  { %v3398_v40 = vpop.permute.xlu0 %643  ;;  %v728_v54 = vpop.permute.xlu1 %727  ;;  %v471_v23 = vsel %vm452_vm6, %v451_v42, %v163_v3  ;;  %v1350_v56 = vor.u32 %v1349_v46, %v1348_v51  ;;  %v623_v52 = vsel %vm158_vm5, %v3350_v33, %v3374_v35  ;;  %v1351_v2 = vrot.slane %v4457_v7, 6  ;;  %v4476_v42 = vld [vmem:[#allocation23_spill] sm:$0xff] }
  0xee   :  { %v686_v62 = vor.u32 %v685_v38, %v682_v28  ;;  %v650_v3 = vsel %vm158_vm5, %v640_v36, %v642_v5  ;;  %v480_v30 = vsel %vm2932_vm7, %v471_v23, %v229_v6  ;;  %v4474_v28 = vunpack.i.l.bf16 %v2965_v32  ;;  %v4475_v36 = vld [vmem:[#allocation24_spill] sm:$0xff] }
  0xef   :  { %1575 = vrot.lane.b32.xlu0 %v1560_v43, %s2383_s28  ;;  %1217 = vrot.lane.b32.xlu1 %v4470_v41, %s2382_s23  ;;  %v621_v43 = vsel %vm158_vm5, %v3194_v20, %v3230_v49  ;;  %v651_v20 = vsel %vm158_vm5, %v642_v5, %v3398_v40  ;;  %v1352_v49 = vrot.slane %v4458_v45, 7  ;;  %v898_v5 = vsel %vm2903_vm2, %v4475_v36, %v622_v44 }
  0xf0   :  { %v897_v47 = vsel %vm2903_vm2, %v4473_v25, %v621_v43  ;;  %v329_v7 = vsel %vm158_vm5, %v4474_v28, %v2312_v8  ;;  %v908_v32 = vsel %vm452_vm6, %v898_v5, %v650_v3  ;;  %v1022_v28 = vrot.slane %v4452_v18, 5 }
  0xf1   :  { %v730_v41 = vpop.permute.xlu0 %729  ;;  %v732_v26 = vpop.permute.xlu1 %731  ;;  %v904_v50 = vsel %vm452_vm6, %v897_v47, %v649_v19  ;;  %v500_v47 = vsel %vm481_vm8, %v480_v30, %v269_v53  ;;  %v1353_v44 = vor.u32 %v1352_v49, %v1351_v2  ;;  %v1388_v49 = vrot.slane %v4431_v48, 5 }
  0xf2   :  { %v739_v59 = vsel %vm158_vm5, %v728_v54, %v730_v41  ;;  %v899_v54 = vsel %vm2903_vm2, %v4476_v42, %v623_v52  ;;  %v922_v45 = vsel %vm2932_vm7, %v904_v50, %v670_v22  ;;  %v740_v43 = vsel %vm158_vm5, %v730_v41, %v732_v26 }
  0xf3   :  { %1237 = vrot.lane.b32.xlu0 %v2439_v15, %s2383_s28  ;;  %1239 = vrot.lane.b32.xlu1 %v1230_v39, %s2383_s28  ;;  %v912_v38 = vsel %vm452_vm6, %v899_v54, %v651_v20  ;;  %v929_v51 = vsel %vm481_vm8, %v922_v45, %v739_v59  ;;  %v1020_v52 = vrot.slane %v4437_v55, 5  ;;  %v923_v50 = vsel %vm2932_vm7, %v908_v32, %v678_v12 }
  0xf4   :  { %v924_v41 = vsel %vm2932_vm7, %v912_v38, %v686_v62  ;;  %v933_v3 = vsel %vm481_vm8, %v923_v50, %v740_v43  ;;  %v1052_v36 = vrot.slane %v2960_v17, 3  ;;  %v1053_v5 = vrot.slane %v2963_v29, 4 }
  0xf5   :  { %v3445_v27 = vpop.permute.xlu0 %733  ;;  %v2315_v61 = vpop.permute.xlu1 %2314  ;;  %v1411_v18 = vrot.slane %v4439_v13, 3  ;;  %v1412_v45 = vrot.slane %v2564_v1, 4  ;;  %v1414_v17 = vrot.slane %v4440_v31, 3  ;;  %v1415_v32 = vrot.slane %v2582_v9, 4 }
  0xf6   :  { %v2317_v33 = vunpack.i.h.bf16 %v2315_v61  ;;  %v2316_v46 = vunpack.i.l.bf16 %v2315_v61  ;;  %v741_v6 = vsel %vm158_vm5, %v732_v26, %v3445_v27  ;;  %v509_v26 = vsel %vm3165_vm1, %v500_v47, %v329_v7 }
  0xf7   :  { %1597 = vrot.lane.b32.xlu0 %v3203_v58, %s2383_s28  ;;  %1599 = vrot.lane.b32.xlu1 %v4431_v48, %s2383_s28  ;;  %v937_v2 = vsel %vm481_vm8, %v924_v41, %v741_v6  ;;  %v1021_v61 = vrot.slane %v4438_v0, 5  ;;  %v1050_v7 = vrot.slane %v2809_v11, 4  ;;  %v1055_v43 = vrot.slane %v4447_v60, 3 }
  0xf8   :  { %v799_v39 = vsel %vm158_vm5, %v2316_v46, %v2317_v33  ;;  %v1389_v46 = vrot.slane %v4444_v63, 5  ;;  %v1416_v13 = vor.u32 %v1415_v32, %v1414_v17  ;;  %v1056_v6 = vrot.slane %v4441_v34, 4  ;;  %v4484_v32 = vld [vmem:[#allocation27_spill] sm:$0xff]  ;;  %v4509_v63 = vld [vmem:[#allocation50_spill] sm:$0xff] }
  0xf9   :  { %v3472_v58 = vpop.permute.xlu0 %2319  ;;  %v3474_v19 = vpop.permute.xlu1 %795  ;;  %v947_v8 = vsel %vm3165_vm1, %v929_v51, %v799_v39  ;;  %v1413_v51 = vor.u32 %v1412_v45, %v1411_v18  ;;  %v4482_v18 = vrot.slane %v2582_v9, 1  ;;  %v4483_v45 = vrot.slane %v4441_v34, 1 }
  0xfa   :  { %v4332_v22 = vunpack.i.h.bf16 %v3472_v58  ;;  %v2321_v23 = vunpack.i.l.bf16 %v3472_v58  ;;  %1862 = vmatprep.subr.bf16.mxu0 %v947_v8  ;;  %v2373_v8 = vld [vmem:[%s4200_s0 + $0x14] sm:$0xf]  ;;  %v1057_v60 = vor.u32 %v1056_v6, %v1055_v43  ;;  %v690_v48 = vrot.slane %v4509_v63, 3 }
  0xfb   :  { %1241 = vrot.lane.b32.xlu0 %v4438_v0, %s2383_s28  ;;  %1366 = vrot.lane.b32.xlu1 %v1350_v56, %s2381_s20  ;;  %v1049_v0 = vrot.slane %v2806_v16, 3  ;;  %v1054_v16 = vor.u32 %v1053_v5, %v1052_v36  ;;  %v1089_v31 = vcombine.low %v2373_v8, %v2373_v8  ;;  %v4480_v36 = vld [vmem:[#allocation21_spill] sm:$0xff] }
  0xfc   :  { %1863 = vmatpush1.bf16.msra.mxu0 %v509_v26  ;;  %v801_v53 = vsel %vm158_vm5, %v2321_v23, %v4332_v22  ;;  %v800_v56 = vsel %vm158_vm5, %v2317_v33, %v2321_v23  ;;  %v2374_v23 = vld [vmem:[%s4200_s0] sm:$0xff] }
  0xfd   :  { %v3497_v20 = vpop.permute.xlu0 %797  ;;  %v829_v59 = vpop.permute.xlu1 %828  ;;  %v949_v62 = vsel %vm3165_vm1, %v937_v2, %v801_v53  ;;  %v948_v12 = vsel %vm3165_vm1, %v933_v3, %v800_v56  ;;  %v1051_v11 = vor.u32 %v1050_v7, %v1049_v0  ;;  %v1451_v47 = vcombine.low %v2374_v23, %v2374_v23 }
  0xfe   :  { %1905 = vmatprep.subr.bf16.mxu1 %v949_v62  ;;  %v1096_v41 = vrot.slane %v1089_v31, %v2421_v10  ;;  %v4479_v0 = vrot.slane %v2564_v1, 1 }
  0xff   :  { %1368 = vrot.lane.b32.xlu0 %v1353_v44, %s2381_s20  ;;  %1029 = vrot.lane.b32.xlu1 %v1020_v52, %s2381_s20  ;;  %v1458_v52 = vrot.slane %v1451_v47, %v2421_v10  ;;  %v4487_v47 = vld [vmem:[#allocation2_spill] sm:$0xff] }
 0x100   :  { %1906 = vmatpush1.bf16.msra.mxu1 %v948_v12  ;;  %2284 = vmatmul.mubr.msk.bf16.vlgmr.msra.gmra.mxu0 %vm1715_vm3, %v3228_v57  ;;  %v1097_v2 = vcombine.low %v1096_v41, %v1096_v41  ;;  %v835_v12 = vsel %vm358_vm9, %v3270_v4, %v829_v59  ;;  %v807_v4 = vsel %vm158_vm5, %v4480_v36, %v3474_v19  ;;  %v4491_v36 = vld [vmem:[#allocation33_spill] sm:$0xff] }
 0x101   :  { %v831_v30 = vpop.permute.xlu0 %830  ;;  %v3509_v33 = vpop.permute.xlu1 %1141  ;;  %1966 = vmatprep.mubr.bf16.mxu0 %v4433_v24  ;;  %v1459_v56 = vcombine.low %v1458_v52, %v1458_v52 }
 0x103   :  { %1031 = vrot.lane.b32.xlu0 %v1021_v61, %s2381_s20  ;;  %1394 = vrot.lane.b32.xlu1 %v1388_v49, %s2381_s20  ;;  %v836_v61 = vsel %vm358_vm9, %v829_v59, %v831_v30  ;;  %v4477_v49 = vld [vmem:[#allocation49_spill] sm:$0xff]  ;;  %v808_v59 = vsel %vm158_vm5, %v3474_v19, %v3497_v20 }
 0x104   :  { %2285 = vmatmul.mubr.msk.bf16.vlgmr.msra.gmra.mxu1 %vm1715_vm3, %v3228_v57  ;;  %v4481_v30 = vld [vmem:[#allocation25_spill] sm:$0xff]  ;;  %v970_v1 = vsel %vm510_vm10, %v808_v59, %v836_v61  ;;  %v4490_v61 = vld [vmem:[#allocation30_spill] sm:$0xff] }
 0x105   :  { %v3522_v42 = vpop.permute.xlu0 %1143  ;;  %v3524_v54 = vpop.permute.xlu1 %1174  ;;  %2009 = vmatprep.mubr.bf16.mxu1 %v4433_v24 }
 0x106   :  { %v1157_v23 = vsel %vm438_vm12, %v3509_v33, %v3522_v42 }
 0x107   :  { %1396 = vrot.lane.b32.xlu0 %v1389_v46, %s2381_s20  ;;  %1033 = vrot.lane.b32.xlu1 %v1022_v28, %s2381_s20 }
 0x109   :  { %v3533_v38 = vpop.permute.xlu0 %1176  ;;  %v864_v39 = vpop.permute.xlu1 %863 }
 0x10a   :  { %v870_v46 = vsel %vm438_vm12, %v4477_v49, %v864_v39  ;;  %v1185_v19 = vsel %vm358_vm9, %v3524_v54, %v3533_v38 }
 0x10b   :  { %1064 = vrot.lane.b32.xlu0 %v1051_v11, %s2382_s23  ;;  %1066 = vrot.lane.b32.xlu1 %v1054_v16, %s2382_s23  ;;  %v2343_v11 = vpack.i.bf16 %v4483_v45, %v4482_v18 }
 0x10d   :  { %v866_v44 = vpop.permute.xlu0 %865  ;;  %v1140_v26 = vpop.permute.xlu1 %1139 }
 0x10e   :  { %v871_v28 = vsel %vm438_vm12, %v864_v39, %v866_v44  ;;  %v4331_v39 = vrot.slane %v4484_v32, 1  ;;  %v1156_v59 = vsel %vm438_vm12, %v1140_v26, %v3509_v33  ;;  %v4493_v33 = vld [vmem:[#allocation32_spill] sm:$0xff] }
 0x10f   :  { %1429 = vrot.lane.b32.xlu0 %v1413_v51, %s2382_s23  ;;  %1431 = vrot.lane.b32.xlu1 %v1416_v13, %s2382_s23  ;;  %v4485_v51 = vld [vmem:[#allocation31_spill] sm:$0xff]  ;;  %v976_v34 = vsel %vm3098_vm15, %v970_v1, %v871_v28 }
 0x110   :  { %v4330_v43 = vrot.slane %v4485_v51, 1 }
 0x111   :  { %v1173_v50 = vpop.permute.xlu0 %1172  ;;  %v1210_v53 = vpop.permute.xlu1 %1209 }
 0x113   :  { %1068 = vrot.lane.b32.xlu0 %v1057_v60, %s2382_s23  ;;  %1104 = vrot.lane.b32.xlu1 %v4473_v25, %s2382_s23  ;;  %v4478_v25 = vrot.slane %v2963_v29, 1  ;;  %v966_v29 = vsel %vm510_vm10, %v807_v4, %v835_v12  ;;  %v1309_v60 = vsel %vm510_vm10, %v1157_v23, %v1185_v19  ;;  %v4329_v4 = vrot.slane %v4491_v36, 1  ;;  %v4497_v23 = vld [vmem:[#allocation17_spill] sm:$0xff] }
 0x114   :  { %v975_v9 = vsel %vm3098_vm15, %v966_v29, %v870_v46  ;;  %v4494_v29 = vld [vmem:[#allocation34_spill] sm:$0xff] }
 0x115   :  { %v3552_v3 = vpop.permute.xlu0 %1211  ;;  %v889_v62 = vpop.permute.xlu1 %888  ;;  %v2338_v7 = vpack.i.bf16 %v4479_v0, %v4478_v25  ;;  %v1491_v26 = vor.u32 %v4329_v4, %v4493_v33 }
 0x116   :  { %v895_v5 = vsel %vm438_vm12, %v4481_v30, %v889_v62  ;;  %v1220_v6 = vsel %vm358_vm9, %v1210_v53, %v3552_v3 }
 0x117   :  { %1106 = vrot.lane.b32.xlu0 %v1097_v2, %s2382_s23  ;;  %1469 = vrot.lane.b32.xlu1 %v1459_v56, %s2383_s28  ;;  %v988_v8 = vsel %vm539_vm13, %v975_v9, %v895_v5  ;;  %v1324_v49 = vsel %vm3098_vm15, %v1309_v60, %v1220_v6  ;;  %v4495_v9 = vld [vmem:[#allocation41_spill] sm:$0xff] }
 0x118   :  { %v1738_v46 = vand.u32 %v4487_v47, %v988_v8  ;;  %v4498_v60 = vld [vmem:[#allocation9_spill] sm:$0xff] }
 0x119   :  { %v891_v16 = vpop.permute.xlu0 %890  ;;  %v1208_v17 = vpop.permute.xlu1 %1207 }
 0x11a   :  { %v896_v13 = vsel %vm438_vm12, %v889_v62, %v891_v16  ;;  %v4489_v62 = vld [vmem:[#allocation26_spill] sm:$0xff]  ;;  %v1219_v25 = vsel %vm358_vm9, %v1208_v17, %v1210_v53 }
 0x11b   :  { %v991_v31 = vsel %vm539_vm13, %v976_v34, %v896_v13  ;;  %1471 = vrot.lane.b32.xlu0 %v1458_v52, %s2383_s28  ;;  %1108 = vrot.lane.b32.xlu1 %v1096_v41, %s2382_s23  ;;  %v1489_v12 = vor.u32 %v4331_v39, %v4489_v62  ;;  %v1490_v52 = vor.u32 %v4330_v43, %v4490_v61  ;;  %v1534_v34 = vrot.slane %v4495_v9, 7  ;;  %v4496_v13 = vld [vmem:[#allocation45_spill] sm:$0xff] }
 0x11c   :  { %v1740_v44 = vand.u32 %v4487_v47, %v991_v31  ;;  %v1184_v41 = vsel %vm358_vm9, %v1173_v50, %v3524_v54  ;;  %v4492_v54 = vld [vmem:[#allocation35_spill] sm:$0xff]  ;;  %v1535_v6 = vrot.slane %v4496_v13, 7 }
 0x11d   :  { %v1234_v2 = vpop.permute.xlu0 %1233  ;;  %v3601_v56 = vpop.permute.xlu1 %1235  ;;  %v4328_v50 = vrot.slane %v4492_v54, 1  ;;  %v1305_v5 = vsel %vm510_vm10, %v1156_v59, %v1184_v41  ;;  %v4500_v41 = vld [vmem:[#allocation12_spill] sm:$0xff] }
 0x11e   :  { %4488 = vst [vmem:[#allocation59_spill] sm:$0xff] %v3601_v56  ;;  %v1244_v28 = vsel %vm438_vm12, %v1234_v2, %v3601_v56  ;;  %1946 = vmatprep.subr.bf16.mxu0 %v1740_v44  ;;  %v1561_v44 = vrot.slane %v4497_v23, 5  ;;  %v4510_v56 = vld [vmem:[#allocation48_spill] sm:$0xff] }
 0x11f   :  { %v1333_v0 = vsel %vm539_vm13, %v1324_v49, %v1244_v28  ;;  %2339 = vrot.lane.b32.xlu0 %v2338_v7, %s2383_s28  ;;  %2344 = vrot.lane.b32.xlu1 %v2343_v11, %s2383_s28  ;;  %v1323_v7 = vsel %vm3098_vm15, %v1305_v5, %v1219_v25  ;;  %v1492_v1 = vor.u32 %v4328_v50, %v4494_v29  ;;  %v1565_v49 = vrot.slane %v4500_v41, 6  ;;  %v4501_v25 = vld [vmem:[#allocation38_spill] sm:$0xff] }
 0x120   :  { %1947 = vmatpush1.bf16.msra.mxu0 %v1738_v46  ;;  %v1744_v30 = vand.u32 %v4487_v47, %v1333_v0  ;;  %v3656_v46 = vld.sshfl [vmem:[%s4200_s0 + $0x2c] sm:$0x33 pattern:$0x76325410]  ;;  %v1537_v0 = vrot.slane %v4501_v25, 7  ;;  %v4502_v5 = vld [vmem:[#allocation58_spill] sm:$0xff] }
 0x121   :  { %v1232_v18 = vpop.permute.xlu0 %1231  ;;  %v3626_v53 = vpop.permute.xlu1 %617  ;;  %v1536_v28 = vrot.slane %v3656_v46, 7  ;;  %v4506_v50 = vld [vmem:[#allocation14_spill] sm:$0xff]  ;;  %v693_v20 = vrot.slane %v4510_v56, 4 }
 0x122   :  { %v1243_v45 = vsel %vm438_vm12, %v1232_v18, %v1234_v2  ;;  %1989 = vmatprep.subr.bf16.mxu1 %v1744_v30  ;;  %v1562_v2 = vrot.slane %v4498_v60, 6  ;;  %v3666_v18 = vrot.slane %v4502_v5, %v2421_v10  ;;  %v1571_v4 = vrot.slane %v4506_v50, 6  ;;  %v4507_v5 = vld [vmem:[#allocation46_spill] sm:$0xff] }
 0x123   :  { %v1330_v11 = vsel %vm539_vm13, %v1323_v7, %v1243_v45  ;;  %1509 = vrot.lane.b32.xlu0 %v1489_v12, %s2383_s28  ;;  %1511 = vrot.lane.b32.xlu1 %v1490_v52, %s2383_s28  ;;  %v4499_v12 = vld [vmem:[#allocation18_spill] sm:$0xff]  ;;  %v1000_v22 = vrot.slane %v4507_v5, 6 }
 0x124   :  { %v1742_v16 = vand.u32 %v4487_v47, %v1330_v11  ;;  %v1564_v52 = vrot.slane %v4499_v12, 5  ;;  %v1563_v7 = vor.u32 %v1562_v2, %v1561_v44  ;;  %v4503_v11 = vld [vmem:[#allocation19_spill] sm:$0xff] }
 0x125   :  { %v620_v17 = vpop.permute.xlu0 %619  ;;  %v646_v19 = vpop.permute.xlu1 %645  ;;  %v4508_v44 = vld [vmem:[#allocation43_spill] sm:$0xff] }
 0x126   :  { %1990 = vmatpush1.bf16.msra.mxu1 %v1742_v16  ;;  %v1566_v45 = vor.u32 %v1565_v49, %v1564_v52  ;;  %v1001_v2 = vrot.slane %v4508_v44, 7  ;;  %v4341_v52 = vshrl.u32 %v3666_v18, 16  ;;  %v4340_v49 = vshll.u32 %v3666_v18, 16 }
 0x127   :  { %1513 = vrot.lane.b32.xlu0 %v1491_v26, %s2383_s28  ;;  %1515 = vrot.lane.b32.xlu1 %v1492_v1, %s2383_s28  ;;  %v1567_v26 = vrot.slane %v4503_v11, 5  ;;  %v4504_v1 = vld [vmem:[#allocation13_spill] sm:$0xff] }
 0x128   :  { %v1568_v16 = vrot.slane %v4504_v1, 6  ;;  %v1002_v47 = vor.u32 %v1001_v2, %v1000_v22  ;;  %v698_v5 = vrot.slane %v4341_v52, 3  ;;  %v701_v44 = vrot.slane %v4340_v49, 4  ;;  %v4511_v49 = vld [vmem:[#allocation29_spill] sm:$0xff] }
 0x129   :  { %v648_v8 = vpop.permute.xlu0 %647  ;;  %v3645_v31 = vpop.permute.xlu1 %1025  ;;  %v1354_v22 = vrot.slane %v4497_v23, 6 }
 0x12a   :  { %v653_v2 = vsel %vm158_vm5, %v646_v19, %v648_v8  ;;  %v702_v52 = vor.u32 %v701_v44, %v698_v5 }
 0x12b   :  { %1542 = vrot.lane.b32.xlu0 %v1534_v34, %s2382_s23  ;;  %1544 = vrot.lane.b32.xlu1 %v1535_v6, %s2382_s23  ;;  %v4505_v34 = vld [vmem:[#allocation20_spill] sm:$0xff] }
 0x12c   :  { %v1570_v6 = vrot.slane %v4505_v34, 5 }
 0x12d   :  { %v3660_v59 = vpop.permute.xlu0 %1027  ;;  %v3662_v30 = vpop.permute.xlu1 %1023 }
 0x12f   :  { %1546 = vrot.lane.b32.xlu0 %v1536_v28, %s2382_s23  ;;  %1548 = vrot.lane.b32.xlu1 %v1537_v0, %s2382_s23  ;;  %v1569_v28 = vor.u32 %v1568_v16, %v1567_v26  ;;  %v1572_v0 = vor.u32 %v1571_v4, %v1570_v6  ;;  %v1595_v4 = vcombine.low %v4495_v9, %v4495_v9  ;;  %v1357_v6 = vrot.slane %v4499_v12, 6  ;;  %v4513_v12 = vld [vmem:[#allocation6_spill] sm:$0xff] }
 0x130   :  { %v625_v26 = vsel %vm158_vm5, %v3626_v53, %v620_v17  ;;  %v652_v16 = vsel %vm158_vm5, %v3398_v40, %v646_v19  ;;  %v1596_v19 = vcombine.low %v3656_v46, %v3656_v46 }
 0x131   :  { %v3674_v43 = vpop.permute.xlu0 %1060  ;;  %v3676_v39 = vpop.permute.xlu1 %1062 }
 0x133   :  { %1577 = vrot.lane.b32.xlu0 %v1563_v7, %s2383_s28  ;;  %1579 = vrot.lane.b32.xlu1 %v1566_v45, %s2383_s28  ;;  %v624_v7 = vsel %vm158_vm5, %v3374_v35, %v3626_v53  ;;  %v1355_v45 = vrot.slane %v4498_v60, 7  ;;  %v1358_v35 = vrot.slane %v4500_v41, 7  ;;  %v694_v60 = vor.u32 %v693_v20, %v690_v48  ;;  %v4512_v53 = vld [vmem:[#allocation5_spill] sm:$0xff] }
 0x134   :  { %v900_v23 = vsel %vm2903_vm2, %v4511_v49, %v624_v7  ;;  %v901_v40 = vsel %vm2903_vm2, %v4512_v53, %v625_v26  ;;  %v1249_v48 = vsel %vm2903_vm2, %v4513_v12, %v1002_v47  ;;  %v1361_v26 = vrot.slane %v4504_v1, 7 }
 0x135   :  { %v736_v55 = vpop.permute.xlu0 %735  ;;  %v738_v15 = vpop.permute.xlu1 %737  ;;  %v916_v17 = vsel %vm452_vm6, %v900_v23, %v652_v16  ;;  %v920_v8 = vsel %vm452_vm6, %v901_v40, %v653_v2  ;;  %v1356_v20 = vor.u32 %v1355_v45, %v1354_v22  ;;  %v1359_v41 = vor.u32 %v1358_v35, %v1357_v6 }
 0x136   :  { %v742_v49 = vsel %vm158_vm5, %v3445_v27, %v736_v55  ;;  %v743_v5 = vsel %vm158_vm5, %v736_v55, %v738_v15  ;;  %v925_v16 = vsel %vm2932_vm7, %v916_v17, %v694_v60  ;;  %v1363_v47 = vrot.slane %v4505_v34, 6 }
 0x137   :  { %1581 = vrot.lane.b32.xlu0 %v1569_v28, %s2383_s28  ;;  %1583 = vrot.lane.b32.xlu1 %v1572_v0, %s2383_s28  ;;  %v1036_v27 = vsel %vm158_vm5, %v3645_v31, %v3660_v59  ;;  %v1071_v15 = vsel %vm358_vm9, %v3674_v43, %v3676_v39  ;;  %v926_v55 = vsel %vm2932_vm7, %v920_v8, %v702_v52  ;;  %v4514_v45 = vunpack.i.h.bf16 %v3472_v58 }
 0x138   :  { %v941_v1 = vsel %vm481_vm8, %v925_v16, %v742_v49  ;;  %v945_v22 = vsel %vm481_vm8, %v926_v55, %v743_v5  ;;  %v1259_v40 = vsel %vm452_vm6, %v1249_v48, %v1036_v27  ;;  %v1418_v55 = vrot.slane %v4484_v32, 4 }
 0x139   :  { %v3706_v28 = vpop.permute.xlu0 %1058  ;;  %v3708_v0 = vpop.permute.xlu1 %1100 }
 0x13b   :  { %1601 = vrot.lane.b32.xlu0 %v1595_v4, %s2383_s28  ;;  %1603 = vrot.lane.b32.xlu1 %v4495_v9, %s2383_s28  ;;  %v1360_v4 = vrot.slane %v4503_v11, 6  ;;  %v1364_v11 = vrot.slane %v4506_v50, 7 }
 0x13d   :  { %v3729_v44 = vpop.permute.xlu0 %1102  ;;  %v2325_v7 = vpop.permute.xlu1 %2324  ;;  %v1362_v8 = vor.u32 %v1361_v26, %v1360_v4  ;;  %v1365_v12 = vor.u32 %v1364_v11, %v1363_v47  ;;  %v1391_v4 = vrot.slane %v4496_v13, 5  ;;  %v4516_v47 = vld [vmem:[#allocation39_spill] sm:$0xff]  ;;  %v1392_v11 = vrot.slane %v3656_v46, 5 }
 0x13e   :  { %v2327_v2 = vunpack.i.h.bf16 %v2325_v7  ;;  %v2326_v23 = vunpack.i.l.bf16 %v2325_v7  ;;  %v1111_v35 = vsel %vm358_vm9, %v3708_v0, %v3729_v44  ;;  %v998_v27 = vrot.slane %v4516_v47, 7 }
 0x13f   :  { %1605 = vrot.lane.b32.xlu0 %v1596_v19, %s2383_s28  ;;  %1607 = vrot.lane.b32.xlu1 %v3656_v46, %s2383_s28  ;;  %v1274_v19 = vsel %vm2932_vm7, %v1259_v40, %v1071_v15  ;;  %v1417_v15 = vrot.slane %v4489_v62, 3  ;;  %v2376_v40 = vld [vmem:[%s4200_s0 + $0x8] sm:$0xf] }
 0x140   :  { %v803_v34 = vsel %vm158_vm5, %v2326_v23, %v2327_v2  ;;  %v802_v6 = vsel %vm158_vm5, %v4514_v45, %v2326_v23  ;;  %v1284_v49 = vsel %vm481_vm8, %v1274_v19, %v1111_v35  ;;  %v4515_v2 = vld [vmem:[#allocation42_spill] sm:$0xff]  ;;  %v1460_v19 = vcombine.low %v2376_v40, %v2376_v40 }
 0x141   :  { %v1099_v60 = vpop.permute.xlu0 %1098  ;;  %v3757_v53 = vpop.permute.xlu1 %2329  ;;  %v951_v50 = vsel %vm3165_vm1, %v945_v22, %v803_v34  ;;  %v950_v52 = vsel %vm3165_vm1, %v941_v1, %v802_v6  ;;  %v997_v23 = vrot.slane %v4515_v2, 6  ;;  %v1393_v1 = vrot.slane %v4501_v25, 5 }
 0x142   :  { %v2332_v17 = vunpack.i.h.bf16 %v3757_v53  ;;  %v2331_v58 = vunpack.i.l.bf16 %v3757_v53  ;;  %1948 = vmatprep.subr.bf16.mxu0 %v951_v50  ;;  %v1420_v34 = vrot.slane %v4490_v61, 3  ;;  %v1421_v22 = vrot.slane %v4485_v51, 4 }
 0x143   :  { %1370 = vrot.lane.b32.xlu0 %v1356_v20, %s2381_s20  ;;  %1372 = vrot.lane.b32.xlu1 %v1359_v41, %s2381_s20  ;;  %v1390_v41 = vrot.slane %v4495_v9, 5  ;;  %v999_v35 = vor.u32 %v998_v27, %v997_v23  ;;  %v1419_v62 = vor.u32 %v1418_v55, %v1417_v15  ;;  %v1423_v50 = vrot.slane %v4493_v33, 3  ;;  %v4517_v33 = vld [vmem:[#allocation3_spill] sm:$0xff] }
 0x144   :  { %1949 = vmatpush1.bf16.msra.mxu0 %v950_v52  ;;  %v1152_v48 = vsel %vm438_vm12, %v2331_v58, %v2332_v17  ;;  %v1424_v52 = vrot.slane %v4491_v36, 4  ;;  %v1422_v46 = vor.u32 %v1421_v22, %v1420_v34  ;;  %v1426_v25 = vrot.slane %v4494_v29, 3 }
 0x145   :  { %v3776_v5 = vpop.permute.xlu0 %1145  ;;  %v3778_v7 = vpop.permute.xlu1 %1147  ;;  %v1299_v20 = vsel %vm3165_vm1, %v1284_v49, %v1152_v48  ;;  %v1427_v61 = vrot.slane %v4492_v54, 4  ;;  %v1248_v48 = vsel %vm2903_vm2, %v4517_v33, %v999_v35  ;;  %v1110_v2 = vsel %vm358_vm9, %v1099_v60, %v3708_v0 }
 0x146   :  { %1991 = vmatprep.subr.bf16.mxu1 %v1299_v20  ;;  %v1425_v49 = vor.u32 %v1424_v52, %v1423_v50  ;;  %v1035_v20 = vsel %vm158_vm5, %v3662_v30, %v3645_v31  ;;  %v4518_v55 = vrot.slane %v4484_v32, 1  ;;  %v4520_v34 = vrot.slane %v4491_v36, 1  ;;  %v2222_v32 = vld [vmem:[%s4202_s2] sm:$0xff] }
 0x147   :  { %1374 = vrot.lane.b32.xlu0 %v1362_v8, %s2381_s20  ;;  %1376 = vrot.lane.b32.xlu1 %v1365_v12, %s2381_s20  ;;  %v1428_v29 = vor.u32 %v1427_v61, %v1426_v25  ;;  %v1255_v27 = vsel %vm452_vm6, %v1248_v48, %v1035_v20  ;;  %v4521_v22 = vrot.slane %v4492_v54, 1  ;;  %v1158_v25 = vsel %vm438_vm12, %v3522_v42, %v3776_v5  ;;  %v4523_v42 = vld [vmem:[#allocation59_spill] sm:$0xff] }
 0x148   :  { %2286 = vmatmul.mubr.msk.bf16.vlgmr.msra.gmra.mxu0 %vm1715_vm3, %v3228_v57  ;;  %v1159_v61 = vsel %vm438_vm12, %v3776_v5, %v3778_v7 }
 0x149   :  { %v3788_v26 = vpop.permute.xlu0 %1178  ;;  %v3790_v16 = vpop.permute.xlu1 %1180  ;;  %2052 = vmatprep.mubr.bf16.mxu0 %v4433_v24 }
 0x14a   :  { %v1187_v50 = vsel %vm358_vm9, %v3788_v26, %v3790_v16 }
 0x14b   :  { %1398 = vrot.lane.b32.xlu0 %v1390_v41, %s2381_s20  ;;  %1400 = vrot.lane.b32.xlu1 %v1391_v4, %s2381_s20  ;;  %v1467_v41 = vrot.slane %v1460_v19, %v2421_v10  ;;  %v1070_v4 = vsel %vm358_vm9, %v3706_v28, %v3674_v43  ;;  %v1317_v40 = vsel %vm510_vm10, %v1159_v61, %v1187_v50  ;;  %v4525_v61 = vld [vmem:[#allocation47_spill] sm:$0xff] }
 0x14c   :  { %v1273_v30 = vsel %vm2932_vm7, %v1255_v27, %v1070_v4 }
 0x14d   :  { %v3803_v45 = vpop.permute.xlu0 %1505  ;;  %v3805_v6 = vpop.permute.xlu1 %1507  ;;  %v1468_v10 = vcombine.low %v1467_v41, %v1467_v41  ;;  %v1280_v43 = vsel %vm481_vm8, %v1273_v30, %v1110_v2  ;;  %v4524_v2 = vld [vmem:[#allocation2_spill] sm:$0xff] }
 0x14e   :  { %v1522_v4 = vsel %vm438_vm12, %v3803_v45, %v3805_v6 }
 0x14f   :  { %1402 = vrot.lane.b32.xlu0 %v1392_v11, %s2381_s20  ;;  %1404 = vrot.lane.b32.xlu1 %v1393_v1, %s2381_s20  ;;  %v4519_v11 = vrot.slane %v4485_v51, 1  ;;  %v2223_v51 = vld [vmem:[%s4202_s2 + $0x8] sm:$0xff] }
 0x151   :  { %v1539_v8 = vpop.permute.xlu0 %1538  ;;  %v3816_v12 = vpop.permute.xlu1 %1540  ;;  %v2348_v1 = vpack.i.bf16 %v4519_v11, %v4518_v55 }
 0x153   :  { %1433 = vrot.lane.b32.xlu0 %v1419_v62, %s2382_s23  ;;  %1435 = vrot.lane.b32.xlu1 %v1422_v46, %s2382_s23 }
 0x155   :  { %v3832_v23 = vpop.permute.xlu0 %2334  ;;  %v1150_v47 = vpop.permute.xlu1 %1149 }
 0x156   :  { %v2336_v31 = vunpack.i.l.bf16 %v3832_v23  ;;  %v1160_v11 = vsel %vm438_vm12, %v3778_v7, %v1150_v47 }
 0x157   :  { %1437 = vrot.lane.b32.xlu0 %v1425_v49, %s2382_s23  ;;  %1439 = vrot.lane.b32.xlu1 %v1428_v29, %s2382_s23 }
 0x158   :  { %v1151_v28 = vsel %vm438_vm12, %v2336_v31, %v2331_v58  ;;  %v2353_v58 = vpack.i.bf16 %v4521_v22, %v4520_v34 }
 0x159   :  { %v1183_v0 = vpop.permute.xlu0 %1182  ;;  %v1214_v60 = vpop.permute.xlu1 %1213  ;;  %v1298_v15 = vsel %vm3165_vm1, %v1280_v43, %v1151_v28 }
 0x15a   :  { %1992 = vmatpush1.bf16.msra.mxu1 %v1298_v15  ;;  %v1221_v52 = vsel %vm358_vm9, %v3552_v3, %v1214_v60  ;;  %v1188_v28 = vsel %vm358_vm9, %v3790_v16, %v1183_v0 }
 0x15b   :  { %1473 = vrot.lane.b32.xlu0 %v1468_v10, %s2383_s28  ;;  %1475 = vrot.lane.b32.xlu1 %v1467_v41, %s2383_s28  ;;  %v1321_v34 = vsel %vm510_vm10, %v1160_v11, %v1188_v28 }
 0x15d   :  { %v1216_v35 = vpop.permute.xlu0 %1215  ;;  %v1574_v62 = vpop.permute.xlu1 %1573  ;;  %2287 = vmatmul.mubr.msk.bf16.vlgmr.msra.gmra.mxu1 %vm1715_vm3, %v3228_v57  ;;  %v1186_v57 = vsel %vm358_vm9, %v3533_v38, %v3788_v26  ;;  %v1550_v26 = vsel %vm358_vm9, %v1539_v8, %v3816_v12 }
 0x15e   :  { %2095 = vmatprep.mubr.bf16.mxu1 %v4433_v24  ;;  %v1222_v46 = vsel %vm358_vm9, %v1214_v60, %v1216_v35  ;;  %v1313_v38 = vsel %vm510_vm10, %v1158_v25, %v1186_v57  ;;  %v1670_v30 = vsel %vm510_vm10, %v1522_v4, %v1550_v26 }
 0x15f   :  { %2349 = vrot.lane.b32.xlu0 %v2348_v1, %s2383_s28  ;;  %2354 = vrot.lane.b32.xlu1 %v2353_v58, %s2383_s28  ;;  %v1325_v48 = vsel %vm3098_vm15, %v1313_v38, %v1221_v52  ;;  %v1326_v49 = vsel %vm3098_vm15, %v1317_v40, %v1222_v46  ;;  %v1003_v38 = vrot.slane %v4525_v61, 6  ;;  %v4526_v40 = vld [vmem:[#allocation44_spill] sm:$0xff] }
 0x160   :  { %v1004_v26 = vrot.slane %v4526_v40, 7 }
 0x161   :  { %v3867_v36 = vpop.permute.xlu0 %1575  ;;  %v1218_v54 = vpop.permute.xlu1 %1217 }
 0x162   :  { %v1585_v29 = vsel %vm438_vm12, %v1574_v62, %v3867_v36  ;;  %v1223_v45 = vsel %vm358_vm9, %v1216_v35, %v1218_v54 }
 0x163   :  { %2226 = vperm.xlu0 %2358, %v2222_v32   ;;  %2231 = vperm.xlu1 %2359, %v2223_v51   ;;  %v1688_v60 = vsel %vm3098_vm15, %v1670_v30, %v1585_v29  ;;  %v1327_v22 = vsel %vm3098_vm15, %v1321_v34, %v1223_v45  ;;  %v2337_v34 = vunpack.i.h.bf16 %v3832_v23 }
 0x165   :  { %v1238_v3 = vpop.permute.xlu0 %1237  ;;  %v1240_v19 = vpop.permute.xlu1 %1239 }
 0x166   :  { %v1245_v20 = vsel %vm438_vm12, %v4523_v42, %v1238_v3  ;;  %v1246_v5 = vsel %vm438_vm12, %v1238_v3, %v1240_v19  ;;  %v1006_v3 = vrot.slane %v4509_v63, 6  ;;  %v4528_v42 = vshll.u32 %v3666_v18, 16 }
 0x167   :  { %v1336_v41 = vsel %vm539_vm13, %v1325_v48, %v1245_v20  ;;  %v1339_v8 = vsel %vm539_vm13, %v1326_v49, %v1246_v5  ;;  %v4527_v48 = vshrl.u32 %v3666_v18, 16 }
 0x168   :  { %v1746_v27 = vand.u32 %v4524_v2, %v1336_v41  ;;  %v1748_v31 = vand.u32 %v4524_v2, %v1339_v8  ;;  %v1010_v20 = vrot.slane %v4528_v42, 7  ;;  %v1005_v41 = vor.u32 %v1004_v26, %v1003_v38 }
 0x169   :  { %v1598_v10 = vpop.permute.xlu0 %1597  ;;  %v3905_v43 = vpop.permute.xlu1 %1599  ;;  %v1009_v49 = vrot.slane %v4527_v48, 6 }
 0x16a   :  { %v1609_v15 = vsel %vm438_vm12, %v1598_v10, %v3905_v43  ;;  %2032 = vmatprep.subr.bf16.mxu0 %v1748_v31  ;;  %v4529_v10 = vld [vmem:[#allocation4_spill] sm:$0xff] }
 0x16b   :  { %v1695_v55 = vsel %vm539_vm13, %v1688_v60, %v1609_v15  ;;  %2033 = vmatpush1.bf16.msra.mxu0 %v1746_v27  ;;  %v1011_v4 = vor.u32 %v1010_v20, %v1009_v49  ;;  %v1250_v63 = vsel %vm2903_vm2, %v4529_v10, %v1005_v41  ;;  %v4531_v60 = vld [vmem:[#allocation28_spill] sm:$0xff] }
 0x16c   :  { %v1752_v1 = vand.u32 %v4524_v2, %v1695_v55 }
 0x16d   :  { %v1242_v16 = vpop.permute.xlu0 %1241  ;;  %v1367_v0 = vpop.permute.xlu1 %1366  ;;  %v1252_v15 = vsel %vm2903_vm2, %v4531_v60, %v1011_v4 }
 0x16e   :  { %v1247_v58 = vsel %vm438_vm12, %v1240_v19, %v1242_v16  ;;  %2075 = vmatprep.subr.bf16.mxu1 %v1752_v1  ;;  %v1007_v19 = vrot.slane %v4510_v56, 7  ;;  %v4530_v56 = vld [vmem:[#allocation8_spill] sm:$0xff] }
 0x16f   :  { %v1342_v35 = vsel %vm539_vm13, %v1327_v22, %v1247_v58  ;;  %v4532_v22 = vld [vmem:[#allocation37_spill] sm:$0xff] }
 0x170   :  { %v1750_v62 = vand.u32 %v4524_v2, %v1342_v35  ;;  %v1008_v8 = vor.u32 %v1007_v19, %v1006_v3 }
 0x171   :  { %v3924_v32 = vpop.permute.xlu0 %1368  ;;  %v1030_v51 = vpop.permute.xlu1 %1029 }
 0x172   :  { %2076 = vmatpush1.bf16.msra.mxu1 %v1750_v62  ;;  %v1378_v30 = vsel %vm158_vm5, %v1367_v0, %v3924_v32  ;;  %v1251_v28 = vsel %vm2903_vm2, %v4530_v56, %v1008_v8  ;;  %v1037_v45 = vsel %vm158_vm5, %v3660_v59, %v1030_v51  ;;  %v1153_v56 = vsel %vm438_vm12, %v2332_v17, %v2337_v34 }
 0x173   :  { %v1614_v58 = vsel %vm2903_vm2, %v4532_v22, %v1378_v30 }
 0x175   :  { %v1032_v7 = vpop.permute.xlu0 %1031  ;;  %v1395_v47 = vpop.permute.xlu1 %1394 }
 0x176   :  { %v1038_v55 = vsel %vm158_vm5, %v1030_v51, %v1032_v7  ;;  %v1263_v51 = vsel %vm452_vm6, %v1250_v63, %v1037_v45 }
 0x179   :  { %v3926_v54 = vpop.permute.xlu0 %1396  ;;  %v1034_v57 = vpop.permute.xlu1 %1033 }
 0x17a   :  { %v1406_v11 = vsel %vm158_vm5, %v1395_v47, %v3926_v54  ;;  %v1039_v1 = vsel %vm158_vm5, %v1032_v7, %v1034_v57  ;;  %v1267_v7 = vsel %vm452_vm6, %v1251_v28, %v1038_v55  ;;  %v4012_v55 = vld [vmem:[%s4201_s1] sm:$0xff]  }
 0x17b   :  { %v1621_v23 = vsel %vm452_vm6, %v1614_v58, %v1406_v11  ;;  %v1271_v47 = vsel %vm452_vm6, %v1252_v15, %v1039_v1 }
 0x17d   :  { %v1065_v50 = vpop.permute.xlu0 %1064  ;;  %v1067_v52 = vpop.permute.xlu1 %1066 }
 0x17e   :  { %v1072_v35 = vsel %vm358_vm9, %v3676_v39, %v1065_v50  ;;  %v1073_v59 = vsel %vm358_vm9, %v1065_v50, %v1067_v52 }
 0x17f   :  { %v1276_v38 = vsel %vm2932_vm7, %v1267_v7, %v1073_v59 }
 0x181   :  { %v1430_v46 = vpop.permute.xlu0 %1429  ;;  %v3928_v25 = vpop.permute.xlu1 %1431 }
 0x182   :  { %v1441_v57 = vsel %vm358_vm9, %v1430_v46, %v3928_v25 }
 0x183   :  { %v1639_v42 = vsel %vm2932_vm7, %v1621_v23, %v1441_v57 }
 0x185   :  { %v1069_v5 = vpop.permute.xlu0 %1068  ;;  %v1105_v29 = vpop.permute.xlu1 %1104 }
 0x186   :  { %v1074_v62 = vsel %vm358_vm9, %v1067_v52, %v1069_v5  ;;  %v1112_v61 = vsel %vm358_vm9, %v3729_v44, %v1105_v29  ;;  %v1275_v52 = vsel %vm2932_vm7, %v1263_v51, %v1072_v35 }
 0x187   :  { %v1277_v40 = vsel %vm2932_vm7, %v1271_v47, %v1074_v62  ;;  %v1288_v20 = vsel %vm481_vm8, %v1275_v52, %v1112_v61 }
 0x188   :  { %v1300_v60 = vsel %vm3165_vm1, %v1288_v20, %v1153_v56  ;;  %v4060_v56 = vpop.f32.mrf.mxu1 }
 0x189   :  { %v1107_v27 = vpop.permute.xlu0 %1106  ;;  %v1470_v31 = vpop.permute.xlu1 %1469 }
 0x18a   :  { %v1113_v39 = vsel %vm358_vm9, %v1105_v29, %v1107_v27  ;;  %v4062_v33 = vpop.f32.mrf.mxu1 }
 0x18b   :  { %v1292_v29 = vsel %vm481_vm8, %v1276_v38, %v1113_v39 }
 0x18d   :  { %v3956_v16 = vpop.permute.xlu0 %1471  ;;  %v1109_v0 = vpop.permute.xlu1 %1108 }
 0x18e   :  { %v1114_v50 = vsel %vm358_vm9, %v1107_v27, %v1109_v0  ;;  %v1477_v26 = vsel %vm438_vm12, %v1470_v31, %v3956_v16 }
 0x18f   :  { %v1296_v5 = vsel %vm481_vm8, %v1277_v40, %v1114_v50  ;;  %v1646_v4 = vsel %vm481_vm8, %v1639_v42, %v1477_v26 }
 0x191   :  { %v2340_v46 = vpop.permute.xlu0 %2339  ;;  %v3983_v3 = vpop.permute.xlu1 %2344 }
 0x192   :  { %v2342_v44 = vunpack.i.h.bf16 %v2340_v46  ;;  %v2341_v19 = vunpack.i.l.bf16 %v2340_v46  ;;  %v2347_v48 = vunpack.i.h.bf16 %v3983_v3  ;;  %v2346_v49 = vunpack.i.l.bf16 %v3983_v3 }
 0x194   :  { %v1154_v41 = vsel %vm438_vm12, %v2337_v34, %v2341_v19  ;;  %v1517_v8 = vsel %vm438_vm12, %v2342_v44, %v2346_v49  ;;  %v1155_v27 = vsel %vm438_vm12, %v2341_v19, %v2347_v48 }
 0x195   :  { %v1510_v31 = vpop.permute.xlu0 %1509  ;;  %v1512_v30 = vpop.permute.xlu1 %1511  ;;  %v1301_v10 = vsel %vm3165_vm1, %v1292_v29, %v1154_v41  ;;  %v1663_v63 = vsel %vm3165_vm1, %v1646_v4, %v1517_v8  ;;  %v1302_v28 = vsel %vm3165_vm1, %v1296_v5, %v1155_v27 }
 0x196   :  { %2034 = vmatprep.subr.bf16.mxu0 %v1301_v10  ;;  %2077 = vmatprep.subr.bf16.mxu1 %v1663_v63  ;;  %v1524_v7 = vsel %vm438_vm12, %v1510_v31, %v1512_v30 }
 0x197   :  { %2035 = vmatpush1.bf16.msra.mxu0 %v1300_v60  ;;  %2078 = vmatpush1.bf16.msra.mxu1 %v1302_v28 }
 0x199   :  { %v1514_v15 = vpop.permute.xlu0 %1513  ;;  %v1516_v45 = vpop.permute.xlu1 %1515 }
 0x19a   :  { %2288 = vmatmul.mubr.msk.bf16.vlgmr.msra.gmra.mxu0 %vm1715_vm3, %v4012_v55  ;;  %2289 = vmatmul.mubr.msk.bf16.vlgmr.msra.gmra.mxu1 %vm1715_vm3, %v4012_v55  ;;  %v1525_v44 = vsel %vm438_vm12, %v1512_v30, %v1514_v15  ;;  %v1526_v19 = vsel %vm438_vm12, %v1514_v15, %v1516_v45 }
 0x19b   :  { %2138 = vmatprep.mubr.bf16.mxu0 %v4433_v24  ;;  %2181 = vmatprep.mubr.bf16.mxu1 %v4433_v24  ;;  %v1523_v24 = vsel %vm438_vm12, %v3805_v6, %v1510_v31 }
 0x19d   :  { %v1543_v53 = vpop.permute.xlu0 %1542  ;;  %v1545_v17 = vpop.permute.xlu1 %1544 }
 0x19e   :  { %v1551_v35 = vsel %vm358_vm9, %v3816_v12, %v1543_v53  ;;  %v1552_v59 = vsel %vm358_vm9, %v1543_v53, %v1545_v17  ;;  %v4064_v53 = vpop.f32.mrf.mxu0 }
 0x19f   :  { %v1674_v23 = vsel %vm510_vm10, %v1523_v24, %v1551_v35  ;;  %v1678_v47 = vsel %vm510_vm10, %v1524_v7, %v1552_v59 }
 0x1a1   :  { %v1547_v11 = vpop.permute.xlu0 %1546  ;;  %v1549_v1 = vpop.permute.xlu1 %1548 }
 0x1a2   :  { %v1553_v57 = vsel %vm358_vm9, %v1545_v17, %v1547_v11  ;;  %v1554_v12 = vsel %vm358_vm9, %v1547_v11, %v1549_v1  ;;  %v4066_v17 = vpop.f32.mrf.mxu1 }
 0x1a3   :  { %v1686_v20 = vsel %vm510_vm10, %v1526_v19, %v1554_v12 }
 0x1a5   :  { %v1578_v34 = vpop.permute.xlu0 %1577  ;;  %v1580_v0 = vpop.permute.xlu1 %1579 }
 0x1a6   :  { %v1586_v62 = vsel %vm438_vm12, %v3867_v36, %v1578_v34  ;;  %v1587_v51 = vsel %vm438_vm12, %v1578_v34, %v1580_v0  ;;  %v4068_v34 = vpop.f32.mrf.mxu0 }
 0x1a7   :  { %v1689_v36 = vsel %vm3098_vm15, %v1674_v23, %v1586_v62  ;;  %v1690_v50 = vsel %vm3098_vm15, %v1678_v47, %v1587_v51 }
 0x1a9   :  { %v1582_v22 = vpop.permute.xlu0 %1581  ;;  %v1584_v58 = vpop.permute.xlu1 %1583 }
 0x1aa   :  { %v1588_v38 = vsel %vm438_vm12, %v1580_v0, %v1582_v22  ;;  %v1589_v40 = vsel %vm438_vm12, %v1582_v22, %v1584_v58  ;;  %v4070_v0 = vpop.f32.mrf.mxu1  ;;  %v4072_v58 = vpop.f32.mrf.mxu0 }
 0x1ab   :  { %v1692_v8 = vsel %vm3098_vm15, %v1686_v20, %v1589_v40 }
 0x1ac   :  { %v4082_v23 = vpop.f32.mrf.mxu0 }
 0x1ad   :  { %v1602_v61 = vpop.permute.xlu0 %1601  ;;  %v1604_v39 = vpop.permute.xlu1 %1603 }
 0x1ae   :  { %v1610_v6 = vsel %vm438_vm12, %v3905_v43, %v1602_v61  ;;  %v1611_v52 = vsel %vm438_vm12, %v1602_v61, %v1604_v39  ;;  %v1682_v43 = vsel %vm510_vm10, %v1525_v44, %v1553_v57 }
 0x1af   :  { %v1698_v26 = vsel %vm539_vm13, %v1689_v36, %v1610_v6  ;;  %v1701_v46 = vsel %vm539_vm13, %v1690_v50, %v1611_v52  ;;  %v1691_v41 = vsel %vm3098_vm15, %v1682_v43, %v1588_v38 }
 0x1b0   :  { %v1754_v48 = vand.u32 %v4524_v2, %v1698_v26  ;;  %v1756_v42 = vand.u32 %v4524_v2, %v1701_v46  ;;  %v4533_v46 = vld [vmem:[#allocation40_spill] sm:$0xff] }
 0x1b1   :  { %v1606_v5 = vpop.permute.xlu0 %1605  ;;  %v1608_v29 = vpop.permute.xlu1 %1607 }
 0x1b2   :  { %v1612_v4 = vsel %vm438_vm12, %v1604_v39, %v1606_v5  ;;  %v1613_v27 = vsel %vm438_vm12, %v1606_v5, %v1608_v29  ;;  %2118 = vmatprep.subr.bf16.mxu0 %v1756_v42 }
 0x1b3   :  { %v1704_v31 = vsel %vm539_vm13, %v1691_v41, %v1612_v4  ;;  %v1707_v30 = vsel %vm539_vm13, %v1692_v8, %v1613_v27  ;;  %2119 = vmatpush1.bf16.msra.mxu0 %v1754_v48 }
 0x1b4   :  { %v1758_v10 = vand.u32 %v4524_v2, %v1704_v31  ;;  %v1760_v63 = vand.u32 %v4524_v2, %v1707_v30  ;;  %v4535_v31 = vld [vmem:[#allocation60_spill] sm:$0xff] }
 0x1b5   :  { %v1371_v28 = vpop.permute.xlu0 %1370  ;;  %v1373_v60 = vpop.permute.xlu1 %1372  ;;  %v1478_v30 = vsel %vm438_vm12, %v3956_v16, %v4535_v31 }
 0x1b6   :  { %2161 = vmatprep.subr.bf16.mxu1 %v1760_v63  ;;  %v1379_v39 = vsel %vm158_vm5, %v3924_v32, %v1371_v28  ;;  %v1380_v36 = vsel %vm158_vm5, %v1371_v28, %v1373_v60 }
 0x1b7   :  { %2162 = vmatpush1.bf16.msra.mxu1 %v1758_v10  ;;  %v1615_v44 = vsel %vm2903_vm2, %v4533_v46, %v1379_v39  ;;  %v1616_v32 = vsel %vm2903_vm2, %v4495_v9, %v1380_v36 }
 0x1b9   :  { %v1375_v15 = vpop.permute.xlu0 %1374  ;;  %v1377_v45 = vpop.permute.xlu1 %1376 }
 0x1ba   :  { %v1381_v50 = vsel %vm158_vm5, %v1373_v60, %v1375_v15  ;;  %v1382_v6 = vsel %vm158_vm5, %v1375_v15, %v1377_v45 }
 0x1bb   :  { %v1617_v43 = vsel %vm2903_vm2, %v4496_v13, %v1381_v50  ;;  %v1618_v20 = vsel %vm2903_vm2, %v3666_v18, %v1382_v6 }
 0x1bd   :  { %v1399_v11 = vpop.permute.xlu0 %1398  ;;  %v1401_v1 = vpop.permute.xlu1 %1400 }
 0x1be   :  { %v1407_v52 = vsel %vm158_vm5, %v3926_v54, %v1399_v11  ;;  %v1408_v38 = vsel %vm158_vm5, %v1399_v11, %v1401_v1 }
 0x1bf   :  { %v1625_v9 = vsel %vm452_vm6, %v1615_v44, %v1407_v52 }
 0x1c1   :  { %v1403_v2 = vpop.permute.xlu0 %1402  ;;  %v1405_v22 = vpop.permute.xlu1 %1404 }
 0x1c2   :  { %v1409_v40 = vsel %vm158_vm5, %v1401_v1, %v1403_v2  ;;  %v1410_v26 = vsel %vm158_vm5, %v1403_v2, %v1405_v22  ;;  %v4536_v22 = vld [vmem:[#allocation63_spill] sm:$0xff] }
 0x1c3   :  { %v1633_v41 = vsel %vm452_vm6, %v1617_v43, %v1409_v40  ;;  %v1637_v8 = vsel %vm452_vm6, %v1618_v20, %v1410_v26  ;;  %v1882_v26 = vpop.f32.mrf.mxu0 }
 0x1c4   :  { %v4074_v35 = vpop.f32.mrf.mxu1 }
 0x1c5   :  { %v1434_v59 = vpop.permute.xlu0 %1433  ;;  %v1436_v62 = vpop.permute.xlu1 %1435  ;;  %v2193_v51 = vmax.f32 %v4068_v34, %v4074_v35 }
 0x1c6   :  { %v4078_v24 = vpop.f32.mrf.mxu1  ;;  %v1442_v19 = vsel %vm358_vm9, %v3928_v25, %v1434_v59  ;;  %v1443_v48 = vsel %vm358_vm9, %v1434_v59, %v1436_v62  ;;  %v1629_v25 = vsel %vm452_vm6, %v1616_v32, %v1408_v38  ;;  %v1884_v46 = vpop.f32.mrf.mxu0 }
 0x1c7   :  { %v2194_v7 = vmax.f32 %v4060_v56, %v4078_v24  ;;  %v1640_v4 = vsel %vm2932_vm7, %v1625_v9, %v1442_v19  ;;  %v1641_v13 = vsel %vm2932_vm7, %v1629_v25, %v1443_v48  ;;  %v2192_v32 = vmax.f32 %v4064_v53, %v1884_v46 }
 0x1c8   :  { %v4084_v47 = vpop.f32.mrf.mxu1  ;;  %v1653_v59 = vsel %vm481_vm8, %v1641_v13, %v4536_v22  ;;  %v1650_v16 = vsel %vm481_vm8, %v1640_v4, %v1478_v30  ;;  %v1886_v44 = vpop.f32.mrf.mxu0 }
 0x1c9   :  { %v1438_v57 = vpop.permute.xlu0 %1437  ;;  %v1440_v12 = vpop.permute.xlu1 %1439  ;;  %v2198_v61 = vmax.f32 %v4082_v23, %v4084_v47 }
 0x1ca   :  { %v1444_v5 = vsel %vm358_vm9, %v1436_v62, %v1438_v57  ;;  %v1445_v29 = vsel %vm358_vm9, %v1438_v57, %v1440_v12  ;;  %v1931_v3 = vpop.f32.mrf.mxu1  ;;  %v1888_v19 = vpop.f32.mrf.mxu0 }
 0x1cb   :  { %v1642_v10 = vsel %vm2932_vm7, %v1633_v41, %v1444_v5  ;;  %v1643_v63 = vsel %vm2932_vm7, %v1637_v8, %v1445_v29  ;;  %v2197_v48 = vmax.f32 %v4072_v58, %v1888_v19 }
 0x1cd   :  { %v1474_v54 = vpop.permute.xlu0 %1473  ;;  %v1476_v42 = vpop.permute.xlu1 %1475 }
 0x1ce   :  { %v1479_v18 = vsel %vm438_vm12, %v4534_v14, %v1474_v54  ;;  %v1480_v27 = vsel %vm438_vm12, %v1474_v54, %v1476_v42 }
 0x1cf   :  { %v1657_v2 = vsel %vm481_vm8, %v1642_v10, %v1479_v18  ;;  %v1661_v62 = vsel %vm481_vm8, %v1643_v63, %v1480_v27  ;;  %v2199_v63 = vmax.f32 %v4066_v17, %v1931_v3 }
 0x1d1   :  { %v2350_v28 = vpop.permute.xlu0 %2349  ;;  %v2355_v60 = vpop.permute.xlu1 %2354 }
 0x1d2   :  { %v2352_v15 = vunpack.i.h.bf16 %v2350_v28  ;;  %v2351_v45 = vunpack.i.l.bf16 %v2350_v28  ;;  %v2357_v11 = vunpack.i.h.bf16 %v2355_v60  ;;  %v2356_v1 = vunpack.i.l.bf16 %v2355_v60 }
 0x1d4   :  { %v1519_v23 = vsel %vm438_vm12, %v2351_v45, %v2352_v15  ;;  %v1521_v21 = vsel %vm438_vm12, %v2356_v1, %v2357_v11  ;;  %v1518_v47 = vsel %vm438_vm12, %v2346_v49, %v2351_v45  ;;  %v1520_v57 = vsel %vm438_vm12, %v2352_v15, %v2356_v1 }
 0x1d5   :  { %v1665_v12 = vsel %vm3165_vm1, %v1653_v59, %v1519_v23  ;;  %v1667_v39 = vsel %vm3165_vm1, %v1661_v62, %v1521_v21  ;;  %v1664_v36 = vsel %vm3165_vm1, %v1650_v16, %v1518_v47  ;;  %v1666_v50 = vsel %vm3165_vm1, %v1657_v2, %v1520_v57 }
 0x1d6   :  { %2120 = vmatprep.subr.bf16.mxu0 %v1665_v12  ;;  %2163 = vmatprep.subr.bf16.mxu1 %v1667_v39 }
 0x1d7   :  { %2121 = vmatpush1.bf16.msra.mxu0 %v1664_v36  ;;  %2164 = vmatpush1.bf16.msra.mxu1 %v1666_v50 }
 0x1da   :  { %2290 = vmatmul.mubr.msk.bf16.vlgmr.msra.gmra.mxu0 %vm1715_vm3, %v4012_v55  ;;  %2291 = vmatmul.mubr.msk.bf16.vlgmr.msra.gmra.mxu1 %vm1715_vm3, %v4012_v55 }
 0x1de   :  { %v2227_v43 = vpop.permute.xlu0 %2226  ;;  %v2232_v29 = vpop.permute.xlu1 %2231 }
 0x208   :  { %v1968_v58 = vpop.f32.mrf.mxu0 }
 0x209   :  { %v2195_v27 = vmax.f32 %v4062_v33, %v1968_v58 }
 0x20a   :  { %v1970_v41 = vpop.f32.mrf.mxu0 }
 0x20b   :  { %v2196_v31 = vmax.f32 %v1882_v26, %v1970_v41 }
 0x20c   :  { %v1972_v8 = vpop.f32.mrf.mxu0 }
 0x20d   :  { %v2200_v28 = vmax.f32 %v4070_v0, %v1972_v8 }
 0x20e   :  { %v1974_v4 = vpop.f32.mrf.mxu0 }
 0x20f   :  { %v2201_v60 = vmax.f32 %v1886_v44, %v1974_v4 }
 0x21d   :  { %v2011_v49 = vpop.f32.mrf.mxu1 }
 0x21e   :  { %v2202_v55 = vmax.f32 %v2192_v32, %v2011_v49 }
 0x21f   :  { %v2013_v6 = vpop.f32.mrf.mxu1 }
 0x220   :  { %v2203_v52 = vmax.f32 %v2193_v51, %v2013_v6 }
 0x221   :  { %v2015_v38 = vpop.f32.mrf.mxu1 }
 0x222   :  { %v2207_v20 = vmax.f32 %v2197_v48, %v2015_v38 }
 0x223   :  { %v2017_v37 = vpop.f32.mrf.mxu1 }
 0x224   :  { %v4159_v40 = vmax.f32 %v2198_v61, %v2017_v37 }
 0x25a   :  { %v2097_v54 = vpop.f32.mrf.mxu1  ;;  %v2054_v13 = vpop.f32.mrf.mxu0 }
 0x25b   :  { %v2204_v11 = vmax.f32 %v2194_v7, %v2054_v13  ;;  %v2206_v1 = vmax.f32 %v2196_v31, %v2097_v54 }
 0x25c   :  { %v2099_v42 = vpop.f32.mrf.mxu1  ;;  %v2056_v14 = vpop.f32.mrf.mxu0 }
 0x25d   :  { %v2212_v5 = vmax.f32 %v2202_v55, %v2099_v42  ;;  %v2205_v10 = vmax.f32 %v2195_v27, %v2056_v14 }
 0x25e   :  { %v2101_v34 = vpop.f32.mrf.mxu1  ;;  %v2058_v18 = vpop.f32.mrf.mxu0 }
 0x25f   :  { %v2234_v35 = vadd.f32 %v2227_v43, %v2212_v5  ;;  %v2209_v47 = vmax.f32 %v2199_v63, %v2058_v18  ;;  %v2211_v57 = vmax.f32 %v2201_v60, %v2101_v34 }
 0x260   :  { %v2103_v51 = vpop.f32.mrf.mxu1  ;;  %v2060_v30 = vpop.f32.mrf.mxu0 }
 0x261   :  { %v2217_v61 = vmax.f32 %v2207_v20, %v2103_v51  ;;  %v2244_v9 = vmax.f32 %v2234_v35, 0.0  ;;  %v2210_v17 = vmax.f32 %v2200_v28, %v2060_v30 }
 0x263   :  { %2254 = vst [vmem:[%s4203_s3] sm:$0xff] %v2244_v9  ;;  %v2239_v53 = vadd.f32 %v2232_v29, %v2217_v61 }
 0x265   :  { %v2249_v25 = vmax.f32 %v2239_v53, 0.0 }
 0x267   :  { %2259 = vst [vmem:[%s4203_s3 + $0x28] sm:$0xff] %v2249_v25 }
 0x29a   :  { %v2140_v15 = vpop.f32.mrf.mxu0  ;;  %v2183_v45 = vpop.f32.mrf.mxu1 }
 0x29b   :  { %v2213_v2 = vmax.f32 %v2203_v52, %v2140_v15  ;;  %v2215_v22 = vmax.f32 %v2205_v10, %v2183_v45 }
 0x29c   :  { %v2142_v59 = vpop.f32.mrf.mxu0  ;;  %v2185_v62 = vpop.f32.mrf.mxu1 }
 0x29d   :  { %v2235_v33 = vadd.f32 %v2227_v43, %v2213_v2  ;;  %v2237_v16 = vadd.f32 %v2227_v43, %v2215_v22  ;;  %v2214_v23 = vmax.f32 %v2204_v11, %v2142_v59  ;;  %v2216_v21 = vmax.f32 %v2206_v1, %v2185_v62 }
 0x29e   :  { %v2144_v0 = vpop.f32.mrf.mxu0  ;;  %v2187_v12 = vpop.f32.mrf.mxu1 }
 0x29f   :  { %v2245_v39 = vmax.f32 %v2235_v33, 0.0  ;;  %v2247_v36 = vmax.f32 %v2237_v16, 0.0  ;;  %v2236_v50 = vadd.f32 %v2227_v43, %v2214_v23  ;;  %v2238_v3 = vadd.f32 %v2227_v43, %v2216_v21 }
 0x2a0   :  { %v2218_v56 = vmax.f32 %v4159_v40, %v2144_v0  ;;  %v2220_v24 = vmax.f32 %v2210_v17, %v2187_v12  ;;  %v2146_v7 = vpop.f32.mrf.mxu0  ;;  %v2189_v49 = vpop.f32.mrf.mxu1 }
 0x2a1   :  { %2255 = vst [vmem:[%s4203_s3 + $0x8] sm:$0xff] %v2245_v39  ;;  %2257 = vst [vmem:[%s4203_s3 + $0x18] sm:$0xff] %v2247_v36  ;;  %v2246_v6 = vmax.f32 %v2236_v50, 0.0  ;;  %v2248_v52 = vmax.f32 %v2238_v3, 0.0  ;;  %v2219_v38 = vmax.f32 %v2209_v47, %v2146_v7  ;;  %v2221_v37 = vmax.f32 %v2211_v57, %v2189_v49 }
 0x2a2   :  { %v2240_v26 = vadd.f32 %v2232_v29, %v2218_v56  ;;  %v2242_v46 = vadd.f32 %v2232_v29, %v2220_v24 }
 0x2a3   :  { %2256 = vst [vmem:[%s4203_s3 + $0x10] sm:$0xff] %v2246_v6  ;;  %2258 = vst [vmem:[%s4203_s3 + $0x20] sm:$0xff] %v2248_v52  ;;  %v2241_v40 = vadd.f32 %v2232_v29, %v2219_v38  ;;  %v2243_v44 = vadd.f32 %v2232_v29, %v2221_v37 }
 0x2a4   :  { %v2250_v32 = vmax.f32 %v2240_v26, 0.0  ;;  %v2252_v19 = vmax.f32 %v2242_v46, 0.0 }
 0x2a5   :  { %v2251_v48 = vmax.f32 %v2241_v40, 0.0  ;;  %v2253_v55 = vmax.f32 %v2243_v44, 0.0 }
 0x2a6   :  { %2260 = vst [vmem:[%s4203_s3 + $0x30] sm:$0xff] %v2250_v32  ;;  %2262 = vst [vmem:[%s4203_s3 + $0x40] sm:$0xff] %v2252_v19 }
 0x2a7   :  { %2261 = vst [vmem:[%s4203_s3 + $0x38] sm:$0xff] %v2251_v48  ;;  %2263 = vst [vmem:[%s4203_s3 + $0x48] sm:$0xff] %v2253_v55 }

// kernel: encoder_forward.5
= control target key start
LH: loop header
LB: loop body
LE: loop exit
PB: predicated region body
PF: predicated region fallthrough
CT: control target
= control target key end

     0   :  { %s598_s16 = smov 119   ;;  %s599_s23 = smov 118   ;;  %vm239_vm0 = vcmask 130048   ;;  %v601_v13 = vmov 0   ;;  %vm109_vm1 = vcmask 973824   ;;  %vm135_vm2 = vcmask 965632   ;;  %s890_s0 = inlined_call_operand.vmem [shape: bf16[4,16,384], index: 0, kind: input, shape index: {}]   ;;  %s891_s1 = inlined_call_operand.vmem [shape: bf16[32,144], index: 1, kind: input, shape index: {}]   ;;  %s892_s2 = inlined_call_operand.vmem [shape: f32[32,1], index: 2, kind: input, shape index: {}]   ;;  %s893_s3 = inlined_call_operand.vmem [shape: f32[32,256], index: 3, kind: output, shape index: {}]  }
   0x1   :  { %v625_v0 = vld [vmem:[%s890_s0 + $0x1c] ss:$12 sps:$4 sm:$0xff]   ;;  %v630_v1 = vld [vmem:[%s890_s0 + $0x18] ss:$12 sps:$4 sm:$0xff]   ;;  %v579_v2 = vld [vmem:[%s890_s0 + $0x20] ss:$12 sps:$4 sm:$0xff]   ;;  %574 = vset.pattern.permute.xlu0 %v601_v13  ;;  %575 = vset.pattern.permute.xlu1 %v601_v13 }
   0x2   :  { %121 = vrot.lane.b32.xlu0 %v625_v0, %s598_s16  ;;  %119 = vrot.lane.b32.xlu1 %v630_v1, %s598_s16  ;;  %v642_v3 = vld [vmem:[%s890_s0 + $0x4] ss:$12 sps:$4 sm:$0xff]   ;;  %v582_v4 = vld [vmem:[%s890_s0 + $0x8] ss:$12 sps:$4 sm:$0xff]   ;;  %s600_s30 = smov 127   ;;  %vm63_vm3 = vcmask 1039360  }
   0x3   :  { %v653_v5 = vld [vmem:[%s890_s0] ss:$12 sps:$4 sm:$0xff]   ;;  %v586_v7 = vld [vmem:[%s890_s0 + $0x38] ss:$12 sps:$4 sm:$0xff]   ;;  %v675_v8 = vld [vmem:[%s890_s0 + $0x30] ss:$12 sps:$4 sm:$0xff]  }
   0x4   :  { %v664_v6 = vld [vmem:[%s890_s0 + $0x34] ss:$12 sps:$4 sm:$0xff]   ;;  %v680_v9 = vld [vmem:[%s890_s0 + $0x4c] ss:$12 sps:$4 sm:$0xff]   ;;  %v590_v10 = vld [vmem:[%s890_s0 + $0x50] ss:$12 sps:$4 sm:$0xff]  }
   0x5   :  { %v690_v11 = vld [vmem:[%s890_s0 + $0x48] ss:$12 sps:$4 sm:$0xff]   ;;  %v699_v12 = vld [vmem:[%s891_s1 + $0x4] ss:$8 sps:$4 sm:$0xff]   ;;  %v485_v17 = vld [vmem:[%s892_s2 + $0x18] sm:$0xff] }
   0x6   :  { %123 = vrot.lane.b32.xlu0 %v579_v2, %s598_s16  ;;  %131 = vrot.lane.b32.xlu1 %v642_v3, %s599_s23  ;;  %v482_v14 = vld [vmem:[%s892_s2] sm:$0xff]  ;;  %v483_v15 = vld [vmem:[%s892_s2 + $0x8] sm:$0xff] }
   0x7   :  { %562 = vmatprep.mubr.msk.bf16.mxu0 %vm239_vm0, %v699_v12  ;;  %564 = vmatprep.mubr.msk.bf16.mxu1 %vm239_vm0, %v699_v12  ;;  %v484_v16 = vld [vmem:[%s892_s2 + $0x10] sm:$0xff]  ;;  %v805_v56 = vld [vmem:[%s891_s1] ss:$8 sps:$4 sm:$0xff]  }
   0x8   :  { %v812_v58 = vld [vmem:[%s891_s1 + $0x14] ss:$8 sps:$4 sm:$0xff]  }
   0xa   :  { %133 = vrot.lane.b32.xlu0 %v582_v4, %s599_s23  ;;  %129 = vrot.lane.b32.xlu1 %v653_v5, %s599_s23 }
   0xe   :  { %105 = vrot.lane.b32.xlu0 %v642_v3, %s598_s16  ;;  %107 = vrot.lane.b32.xlu1 %v582_v4, %s598_s16 }
  0x12   :  { %103 = vrot.lane.b32.xlu0 %v653_v5, %s598_s16  ;;  %95 = vrot.lane.b32.xlu1 %v664_v6, %s600_s30 }
  0x16   :  { %97 = vrot.lane.b32.xlu0 %v586_v7, %s600_s30  ;;  %93 = vrot.lane.b32.xlu1 %v675_v8, %s600_s30 }
  0x1a   :  { %159 = vrot.lane.b32.xlu0 %v680_v9, %s600_s30  ;;  %161 = vrot.lane.b32.xlu1 %v590_v10, %s600_s30 }
  0x1e   :  { %157 = vrot.lane.b32.xlu0 %v690_v11, %s600_s30  ;;  %59 = vrot.lane.b32.xlu1 %v642_v3, %s600_s30 }
  0x22   :  { %61 = vrot.lane.b32.xlu0 %v582_v4, %s600_s30  ;;  %57 = vrot.lane.b32.xlu1 %v653_v5, %s600_s30 }
  0x26   :  { %144 = vrot.lane.b32.xlu0 %v625_v0, %s600_s30  ;;  %146 = vrot.lane.b32.xlu1 %v579_v2, %s600_s30 }
  0x2a   :  { %142 = vrot.lane.b32.xlu0 %v630_v1, %s600_s30  ;;  %169 = vrot.lane.b32.xlu1 %v625_v0, %s599_s23 }
  0x2e   :  { %171 = vrot.lane.b32.xlu0 %v579_v2, %s599_s23  ;;  %167 = vrot.lane.b32.xlu1 %v630_v1, %s599_s23 }
  0x32   :  { %189 = vrot.lane.b32.xlu0 %v680_v9, %s598_s16  ;;  %191 = vrot.lane.b32.xlu1 %v590_v10, %s598_s16 }
  0x36   :  { %187 = vrot.lane.b32.xlu0 %v690_v11, %s598_s16  ;;  %199 = vrot.lane.b32.xlu1 %v664_v6, %s599_s23 }
  0x3a   :  { %201 = vrot.lane.b32.xlu0 %v586_v7, %s599_s23  ;;  %197 = vrot.lane.b32.xlu1 %v675_v8, %s599_s23 }
  0x3e   :  { %179 = vrot.lane.b32.xlu0 %v664_v6, %s598_s16  ;;  %181 = vrot.lane.b32.xlu1 %v586_v7, %s598_s16 }
  0x42   :  { %177 = vrot.lane.b32.xlu0 %v675_v8, %s598_s16  ;;  %209 = vrot.lane.b32.xlu1 %v680_v9, %s599_s23 }
  0x46   :  { %211 = vrot.lane.b32.xlu0 %v590_v10, %s599_s23  ;;  %207 = vrot.lane.b32.xlu1 %v690_v11, %s599_s23 }
  0x4a   :  { %488 = vperm.xlu0 %574, %v482_v14   ;;  %493 = vperm.xlu1 %575, %v483_v15  }
  0x4e   :  { %498 = vperm.xlu1 %575, %v484_v16   ;;  %503 = vperm.xlu0 %574, %v485_v17  }
  0x74   :  { %v122_v18 = vpop.permute.xlu0 %121  ;;  %v120_v19 = vpop.permute.xlu1 %119 }
  0x75   :  { %v747_v23 = vsel %vm109_vm1, %v120_v19, %v122_v18 }
  0x78   :  { %v124_v20 = vpop.permute.xlu0 %123  ;;  %v132_v22 = vpop.permute.xlu1 %131 }
  0x79   :  { %v744_v21 = vsel %vm109_vm1, %v122_v18, %v124_v20 }
  0x7a   :  { %246 = vmatprep.subr.bf16.mxu0 %v744_v21 }
  0x7b   :  { %247 = vmatpush1.bf16.msra.mxu0 %v747_v23 }
  0x7c   :  { %v134_v24 = vpop.permute.xlu0 %133  ;;  %v130_v26 = vpop.permute.xlu1 %129 }
  0x7d   :  { %v752_v25 = vsel %vm135_vm2, %v132_v22, %v134_v24  ;;  %v755_v27 = vsel %vm135_vm2, %v130_v26, %v132_v22 }
  0x7e   :  { %299 = vmatprep.subr.bf16.mxu1 %v752_v25 }
  0x7f   :  { %300 = vmatpush1.bf16.msra.mxu1 %v755_v27 }
  0x80   :  { %v106_v28 = vpop.permute.xlu0 %105  ;;  %301 = vmatprep.subr.bf16.mxu1 %v744_v21  ;;  %v108_v29 = vpop.permute.xlu1 %107 }
  0x81   :  { %v761_v30 = vsel %vm109_vm1, %v106_v28, %v108_v29 }
  0x82   :  { %248 = vmatprep.subr.bf16.mxu0 %v761_v30 }
  0x83   :  { %302 = vmatpush1.bf16.msra.mxu1 %v747_v23 }
  0x84   :  { %v104_v31 = vpop.permute.xlu0 %103  ;;  %v96_v32 = vpop.permute.xlu1 %95 }
  0x85   :  { %v766_v33 = vsel %vm109_vm1, %v104_v31, %v106_v28 }
  0x86   :  { %249 = vmatpush1.bf16.msra.mxu0 %v766_v33 }
  0x88   :  { %v98_v34 = vpop.permute.xlu0 %97  ;;  %v94_v36 = vpop.permute.xlu1 %93 }
  0x89   :  { %v770_v35 = vsel %vm63_vm3, %v96_v32, %v98_v34  ;;  %v773_v37 = vsel %vm63_vm3, %v94_v36, %v96_v32 }
  0x8a   :  { %250 = vmatprep.subr.bf16.mxu0 %v770_v35 }
  0x8b   :  { %251 = vmatpush1.bf16.msra.mxu0 %v773_v37 }
  0x8c   :  { %v160_v38 = vpop.permute.xlu0 %159  ;;  %252 = vmatprep.subr.bf16.mxu0 %v680_v9  ;;  %v162_v39 = vpop.permute.xlu1 %161 }
  0x8d   :  { %v779_v40 = vsel %vm63_vm3, %v160_v38, %v162_v39 }
  0x8e   :  { %303 = vmatprep.subr.bf16.mxu1 %v779_v40 }
  0x8f   :  { %253 = vmatpush1.bf16.msra.mxu0 %v690_v11 }
  0x90   :  { %v158_v41 = vpop.permute.xlu0 %157  ;;  %254 = vmatprep.subr.bf16.mxu0 %v664_v6  ;;  %v60_v42 = vpop.permute.xlu1 %59 }
  0x91   :  { %v785_v43 = vsel %vm63_vm3, %v158_v41, %v160_v38 }
  0x92   :  { %304 = vmatpush1.bf16.msra.mxu1 %v785_v43 }
  0x93   :  { %255 = vmatpush1.bf16.msra.mxu0 %v675_v8  ;;  %305 = vmatprep.subr.bf16.mxu1 %v770_v35 }
  0x94   :  { %v62_v44 = vpop.permute.xlu0 %61  ;;  %v58_v45 = vpop.permute.xlu1 %57 }
  0x95   :  { %v65_v46 = vsel %vm63_vm3, %v60_v42, %v62_v44  ;;  %v64_v47 = vsel %vm63_vm3, %v58_v45, %v60_v42 }
  0x96   :  { %256 = vmatprep.subr.bf16.mxu0 %v65_v46  ;;  %306 = vmatpush1.bf16.msra.mxu1 %v773_v37 }
  0x97   :  { %257 = vmatpush1.bf16.msra.mxu0 %v64_v47  ;;  %307 = vmatprep.subr.bf16.mxu1 %v680_v9 }
  0x98   :  { %v145_v48 = vpop.permute.xlu0 %144  ;;  %258 = vmatprep.subr.bf16.mxu0 %v625_v0  ;;  %v147_v49 = vpop.permute.xlu1 %146 }
  0x99   :  { %v149_v50 = vsel %vm63_vm3, %v145_v48, %v147_v49 }
  0x9a   :  { %308 = vmatpush1.bf16.msra.mxu1 %v690_v11 }
  0x9b   :  { %259 = vmatpush1.bf16.msra.mxu0 %v630_v1  ;;  %309 = vmatprep.subr.bf16.mxu1 %v149_v50 }
  0x9c   :  { %v143_v51 = vpop.permute.xlu0 %142  ;;  %260 = vmatprep.subr.bf16.mxu0 %v642_v3  ;;  %v170_v52 = vpop.permute.xlu1 %169 }
  0x9d   :  { %v148_v53 = vsel %vm63_vm3, %v143_v51, %v145_v48 }
  0x9e   :  { %310 = vmatpush1.bf16.msra.mxu1 %v148_v53 }
  0x9f   :  { %261 = vmatpush1.bf16.msra.mxu0 %v653_v5  ;;  %311 = vmatprep.subr.bf16.mxu1 %v65_v46 }
  0xa0   :  { %v172_v54 = vpop.permute.xlu0 %171  ;;  %276 = vmatprep.subr.bf16.mxu0 %v752_v25  ;;  %v168_v55 = vpop.permute.xlu1 %167 }
  0xa1   :  { %v174_v61 = vsel %vm135_vm2, %v170_v52, %v172_v54  ;;  %v173_v2 = vsel %vm135_vm2, %v168_v55, %v170_v52 }
  0xa2   :  { %312 = vmatpush1.bf16.msra.mxu1 %v64_v47 }
  0xa3   :  { %277 = vmatpush2.bf16.msra.mxu0 %v755_v27  ;;  %313 = vmatprep.subr.bf16.mxu1 %v625_v0 }
  0xa4   :  { %v190_v57 = vpop.permute.xlu0 %189  ;;  %v192_v59 = vpop.permute.xlu1 %191 }
  0xa5   :  { %v194_v60 = vsel %vm109_vm1, %v190_v57, %v192_v59 }
  0xa6   :  { %314 = vmatpush1.bf16.msra.mxu1 %v630_v1  ;;  %279 = vmatmul.mubr.bf16.vlgmr.msra.gmra.mxu0 %v805_v56  ;;  %v597_v1 = vld [vmem:[%s891_s1 + $0x10] ss:$8 sps:$4 sm:$0xff]  }
  0xa7   :  { %352 = vmatprep.subr.bf16.mxu0 %v194_v60  ;;  %329 = vmatprep.subr.bf16.mxu1 %v174_v61 }
  0xa8   :  { %v188_v62 = vpop.permute.xlu0 %187  ;;  %563 = vmatprep.mubr.msk.bf16.mxu0 %vm239_vm0, %v812_v58  ;;  %v200_v0 = vpop.permute.xlu1 %199 }
  0xa9   :  { %v193_v63 = vsel %vm109_vm1, %v188_v62, %v190_v57 }
  0xaa   :  { %330 = vmatpush2.bf16.msra.mxu1 %v173_v2  ;;  %353 = vmatpush1.bf16.msra.mxu0 %v193_v63 }
  0xac   :  { %v202_v3 = vpop.permute.xlu0 %201  ;;  %v198_v4 = vpop.permute.xlu1 %197 }
  0xad   :  { %332 = vmatmul.mubr.bf16.vlgmr.msra.gmra.mxu1 %v805_v56  ;;  %v204_v5 = vsel %vm135_vm2, %v200_v0, %v202_v3  ;;  %v203_v7 = vsel %vm135_vm2, %v198_v4, %v200_v0 }
  0xae   :  { %405 = vmatprep.subr.bf16.mxu1 %v204_v5  ;;  %565 = vmatprep.mubr.msk.bf16.mxu1 %vm239_vm0, %v812_v58 }
  0xaf   :  { %406 = vmatpush1.bf16.msra.mxu1 %v203_v7  ;;  %289 = vmatmul.mubr.bf16.gmra.mxu0 %v597_v1 }
  0xb0   :  { %v180_v10 = vpop.permute.xlu0 %179  ;;  %407 = vmatprep.subr.bf16.mxu1 %v194_v60  ;;  %566 = vmatprep.mubr.msk.bf16.mxu0 %vm239_vm0, %v699_v12  ;;  %v182_v13 = vpop.permute.xlu1 %181 }
  0xb1   :  { %v184_v14 = vsel %vm109_vm1, %v180_v10, %v182_v13 }
  0xb2   :  { %354 = vmatprep.subr.bf16.mxu0 %v184_v14 }
  0xb3   :  { %408 = vmatpush1.bf16.msra.mxu1 %v193_v63 }
  0xb4   :  { %v178_v15 = vpop.permute.xlu0 %177  ;;  %409 = vmatprep.subr.bf16.mxu1 %v174_v61 }
  0xb5   :  { %v183_v16 = vsel %vm109_vm1, %v178_v15, %v180_v10  ;;  %342 = vmatmul.mubr.bf16.gmra.mxu1 %v597_v1 }
  0xb6   :  { %355 = vmatpush1.bf16.msra.mxu0 %v183_v16  ;;  %568 = vmatprep.mubr.msk.bf16.mxu1 %vm239_vm0, %v699_v12  ;;  %v210_v12 = vpop.permute.xlu1 %209 }
  0xb7   :  { %356 = vmatprep.subr.bf16.mxu0 %v752_v25  ;;  %410 = vmatpush1.bf16.msra.mxu1 %v173_v2 }
  0xb8   :  { %411 = vmatprep.subr.bf16.mxu1 %v752_v25  ;;  %v212_v17 = vpop.permute.xlu0 %211 }
  0xb9   :  { %v214_v19 = vsel %vm135_vm2, %v210_v12, %v212_v17 }
  0xba   :  { %357 = vmatpush1.bf16.msra.mxu0 %v755_v27  ;;  %v208_v18 = vpop.permute.xlu1 %207 }
  0xbb   :  { %358 = vmatprep.subr.bf16.mxu0 %v744_v21  ;;  %412 = vmatpush1.bf16.msra.mxu1 %v755_v27  ;;  %v213_v20 = vsel %vm135_vm2, %v208_v18, %v210_v12 }
  0xbc   :  { %413 = vmatprep.subr.bf16.mxu1 %v744_v21 }
  0xbe   :  { %359 = vmatpush1.bf16.msra.mxu0 %v747_v23 }
  0xbf   :  { %360 = vmatprep.subr.bf16.mxu0 %v761_v30  ;;  %414 = vmatpush1.bf16.msra.mxu1 %v747_v23 }
  0xc0   :  { %415 = vmatprep.subr.bf16.mxu1 %v779_v40 }
  0xc2   :  { %361 = vmatpush1.bf16.msra.mxu0 %v766_v33 }
  0xc3   :  { %362 = vmatprep.subr.bf16.mxu0 %v770_v35  ;;  %416 = vmatpush1.bf16.msra.mxu1 %v785_v43 }
  0xc4   :  { %417 = vmatprep.subr.bf16.mxu1 %v770_v35 }
  0xc5   :  { %v489_v41 = vpop.permute.xlu0 %488  ;;  %v494_v47 = vpop.permute.xlu1 %493 }
  0xc6   :  { %363 = vmatpush1.bf16.msra.mxu0 %v773_v37 }
  0xc7   :  { %418 = vmatpush1.bf16.msra.mxu1 %v773_v37  ;;  %364 = vmatprep.subr.bf16.mxu0 %v680_v9 }
  0xc8   :  { %419 = vmatprep.subr.bf16.mxu1 %v680_v9 }
  0xc9   :  { %v499_v4 = vpop.permute.xlu1 %498 }
  0xca   :  { %365 = vmatpush1.bf16.msra.mxu0 %v690_v11 }
  0xcb   :  { %420 = vmatpush1.bf16.msra.mxu1 %v690_v11  ;;  %366 = vmatprep.subr.bf16.mxu0 %v664_v6 }
  0xcc   :  { %435 = vmatprep.subr.bf16.mxu1 %v214_v19 }
  0xce   :  { %367 = vmatpush1.bf16.msra.mxu0 %v675_v8 }
  0xcf   :  { %382 = vmatprep.subr.bf16.mxu0 %v204_v5  ;;  %436 = vmatpush2.bf16.msra.mxu1 %v213_v20 }
  0xd2   :  { %383 = vmatpush2.bf16.msra.mxu0 %v203_v7  ;;  %438 = vmatmul.mubr.bf16.vlgmr.msra.gmra.mxu1 %v805_v56 }
  0xd3   :  { %569 = vmatprep.mubr.msk.bf16.mxu1 %vm239_vm0, %v812_v58 }
  0xd5   :  { %385 = vmatmul.mubr.bf16.vlgmr.msra.gmra.mxu0 %v805_v56 }
  0xd6   :  { %567 = vmatprep.mubr.msk.bf16.mxu0 %vm239_vm0, %v812_v58 }
  0xda   :  { %448 = vmatmul.mubr.bf16.gmra.mxu1 %v597_v1 }
  0xdd   :  { %395 = vmatmul.mubr.bf16.gmra.mxu0 %v597_v1 }
 0x166   :  { %v280_v9 = vpop.f32.mrf.mxu0 }
 0x168   :  { %v282_v21 = vpop.f32.mrf.mxu0 }
 0x16a   :  { %v284_v22 = vpop.f32.mrf.mxu0 }
 0x16c   :  { %v286_v25 = vpop.f32.mrf.mxu0 }
 0x16d   :  { %v333_v6 = vpop.f32.mrf.mxu1 }
 0x16e   :  { %v458_v34 = vmax.f32 %v280_v9, %v333_v6 }
 0x16f   :  { %v335_v11 = vpop.f32.mrf.mxu1  ;;  %v290_v26 = vpop.f32.mrf.mxu0 }
 0x170   :  { %v459_v37 = vmax.f32 %v282_v21, %v335_v11 }
 0x171   :  { %v337_v8 = vpop.f32.mrf.mxu1  ;;  %v292_v28 = vpop.f32.mrf.mxu0 }
 0x172   :  { %v460_v42 = vmax.f32 %v284_v22, %v337_v8  ;;  %v504_v22 = vpop.permute.xlu0 %503 }
 0x173   :  { %v339_v23 = vpop.f32.mrf.mxu1  ;;  %v294_v30 = vpop.f32.mrf.mxu0 }
 0x174   :  { %v461_v48 = vmax.f32 %v286_v25, %v339_v23 }
 0x175   :  { %v343_v24 = vpop.f32.mrf.mxu1  ;;  %v296_v33 = vpop.f32.mrf.mxu0 }
 0x176   :  { %v462_v53 = vmax.f32 %v290_v26, %v343_v24 }
 0x177   :  { %v345_v27 = vpop.f32.mrf.mxu1 }
 0x178   :  { %v463_v59 = vmax.f32 %v292_v28, %v345_v27 }
 0x179   :  { %v347_v29 = vpop.f32.mrf.mxu1 }
 0x17a   :  { %v464_v1 = vmax.f32 %v294_v30, %v347_v29 }
 0x17b   :  { %v349_v31 = vpop.f32.mrf.mxu1 }
 0x17c   :  { %v465_v14 = vmax.f32 %v296_v33, %v349_v31 }
 0x192   :  { %v439_v32 = vpop.f32.mrf.mxu1 }
 0x194   :  { %v441_v35 = vpop.f32.mrf.mxu1 }
 0x195   :  { %v386_v36 = vpop.f32.mrf.mxu0 }
 0x196   :  { %v466_v38 = vmax.f32 %v458_v34, %v386_v36  ;;  %v443_v39 = vpop.f32.mrf.mxu1 }
 0x197   :  { %v388_v40 = vpop.f32.mrf.mxu0 }
 0x198   :  { %v474_v43 = vmax.f32 %v466_v38, %v439_v32  ;;  %v467_v44 = vmax.f32 %v459_v37, %v388_v40  ;;  %v445_v45 = vpop.f32.mrf.mxu1 }
 0x199   :  { %v390_v46 = vpop.f32.mrf.mxu0 }
 0x19a   :  { %v475_v49 = vmax.f32 %v467_v44, %v441_v35  ;;  %v506_v50 = vadd.f32 %v489_v41, %v474_v43  ;;  %v468_v51 = vmax.f32 %v460_v42, %v390_v46  ;;  %v449_v52 = vpop.f32.mrf.mxu1 }
 0x19b   :  { %v392_v54 = vpop.f32.mrf.mxu0 }
 0x19c   :  { %v507_v55 = vadd.f32 %v489_v41, %v475_v49  ;;  %v514_v56 = vmax.f32 %v506_v50, 0.0  ;;  %v476_v57 = vmax.f32 %v468_v51, %v443_v39  ;;  %v469_v58 = vmax.f32 %v461_v48, %v392_v54  ;;  %v451_v60 = vpop.f32.mrf.mxu1 }
 0x19d   :  { %v396_v61 = vpop.f32.mrf.mxu0 }
 0x19e   :  { %v515_v62 = vmax.f32 %v507_v55, 0.0  ;;  %522 = vst [vmem:[%s893_s3] sm:$0xff] %v514_v56  ;;  %v477_v63 = vmax.f32 %v469_v58, %v445_v45  ;;  %v470_v0 = vmax.f32 %v462_v53, %v396_v61  ;;  %v508_v2 = vadd.f32 %v494_v47, %v476_v57  ;;  %v453_v15 = vpop.f32.mrf.mxu1 }
 0x19f   :  { %v398_v3 = vpop.f32.mrf.mxu0 }
 0x1a0   :  { %523 = vst [vmem:[%s893_s3 + $0x8] sm:$0xff] %v515_v62  ;;  %v509_v5 = vadd.f32 %v494_v47, %v477_v63  ;;  %v516_v7 = vmax.f32 %v508_v2, 0.0  ;;  %v471_v10 = vmax.f32 %v463_v59, %v398_v3  ;;  %v478_v13 = vmax.f32 %v470_v0, %v449_v52  ;;  %v455_v8 = vpop.f32.mrf.mxu1 }
 0x1a1   :  { %v400_v16 = vpop.f32.mrf.mxu0 }
 0x1a2   :  { %v517_v12 = vmax.f32 %v509_v5, 0.0  ;;  %524 = vst [vmem:[%s893_s3 + $0x10] sm:$0xff] %v516_v7  ;;  %v472_v17 = vmax.f32 %v464_v1, %v400_v16  ;;  %v479_v18 = vmax.f32 %v471_v10, %v451_v60  ;;  %v510_v19 = vadd.f32 %v499_v4, %v478_v13 }
 0x1a3   :  { %v402_v20 = vpop.f32.mrf.mxu0 }
 0x1a4   :  { %525 = vst [vmem:[%s893_s3 + $0x18] sm:$0xff] %v517_v12  ;;  %v511_v6 = vadd.f32 %v499_v4, %v479_v18  ;;  %v518_v9 = vmax.f32 %v510_v19, 0.0  ;;  %v480_v11 = vmax.f32 %v472_v17, %v453_v15  ;;  %v473_v21 = vmax.f32 %v465_v14, %v402_v20 }
 0x1a6   :  { %v519_v23 = vmax.f32 %v511_v6, 0.0  ;;  %526 = vst [vmem:[%s893_s3 + $0x20] sm:$0xff] %v518_v9  ;;  %v512_v24 = vadd.f32 %v504_v22, %v480_v11  ;;  %v481_v25 = vmax.f32 %v473_v21, %v455_v8 }
 0x1a8   :  { %527 = vst [vmem:[%s893_s3 + $0x28] sm:$0xff] %v519_v23  ;;  %v520_v26 = vmax.f32 %v512_v24, 0.0  ;;  %v513_v27 = vadd.f32 %v504_v22, %v481_v25 }
 0x1aa   :  { %528 = vst [vmem:[%s893_s3 + $0x30] sm:$0xff] %v520_v26  ;;  %v521_v28 = vmax.f32 %v513_v27, 0.0 }
 0x1ac   :  { %529 = vst [vmem:[%s893_s3 + $0x38] sm:$0xff] %v521_v28 }

// kernel: encoder_forward.6
= control target key start
LH: loop header
LB: loop body
LE: loop exit
PB: predicated region body
PF: predicated region fallthrough
CT: control target
= control target key end

     0   :  { %s722_s14 = smov 122   ;;  %s723_s15 = smov 127   ;;  %v724_v12 = vmov 0   ;;  %vm94_vm0 = vcmask 1039360   ;;  %vm200_vm1 = vcmask 998400   ;;  %vm159_vm2 = vcmask 1006592   ;;  %s1006_s0 = inlined_call_operand.vmem [shape: bf16[4,32,256], index: 0, kind: input, shape index: {}]   ;;  %s1007_s1 = inlined_call_operand.vmem [shape: bf16[32,288], index: 1, kind: input, shape index: {}]   ;;  %s1008_s2 = inlined_call_operand.vmem [shape: f32[32,1], index: 2, kind: input, shape index: {}]   ;;  %s1009_s3 = inlined_call_operand.vmem [shape: f32[32,128], index: 3, kind: output, shape index: {}]  }
   0x1   :  { %v682_v0 = vld [vmem:[%s1006_s0 + $0x30] ss:$8 sps:$4 sm:$0xff]   ;;  %v684_v1 = vld [vmem:[%s1006_s0 + $0x34] ss:$8 sps:$4 sm:$0xff]   ;;  %v688_v4 = vld [vmem:[%s1006_s0 + $0x24] ss:$8 sps:$4 sm:$0xff]   ;;  %439 = vmatprep.mubr.bf16.mxu1 %v724_v12  ;;  %680 = vset.pattern.permute.xlu0 %v724_v12 }
   0x2   :  { %253 = vrot.lane.b32.xlu1 %v682_v0, %s722_s14  ;;  %213 = vrot.lane.b32.xlu0 %v682_v0, %s723_s15  ;;  %v685_v2 = vld [vmem:[%s1006_s0 + $0x14] ss:$8 sps:$4 sm:$0xff]   ;;  %v687_v3 = vld [vmem:[%s1006_s0 + $0x10] ss:$8 sps:$4 sm:$0xff]   ;;  %s725_s11 = smov 123   ;;  %vm347_vm3 = vcmask 261120  }
   0x3   :  { %v690_v5 = vld [vmem:[%s1006_s0 + $0x20] ss:$8 sps:$4 sm:$0xff]   ;;  %v773_v6 = vld [vmem:[%s1006_s0 + $0x70] ss:$8 sps:$4 sm:$0xff]   ;;  %v691_v10 = vld [vmem:[%s1006_s0 + $0x4] ss:$8 sps:$4 sm:$0xff]   ;;  %681 = vset.pattern.permute.xlu1 %v724_v12 }
   0x4   :  { %v778_v7 = vld [vmem:[%s1006_s0 + $0x50] ss:$8 sps:$4 sm:$0xff]   ;;  %v785_v8 = vld [vmem:[%s1006_s0 + $0x60] ss:$8 sps:$4 sm:$0xff]   ;;  %354 = vmatprep.subr.bf16.mxu0 %v773_v6  ;;  %v694_v13 = vld [vmem:[%s1006_s0 + $0x74] ss:$8 sps:$4 sm:$0xff]  }
   0x5   :  { %355 = vmatpush1.bf16.msra.mxu0 %v778_v7  ;;  %v792_v9 = vld [vmem:[%s1006_s0 + $0x40] ss:$8 sps:$4 sm:$0xff]   ;;  %v696_v14 = vld [vmem:[%s1006_s0 + $0x70] ss:$8 sps:$4 sm:$0xff]   ;;  %v697_v15 = vld [vmem:[%s1006_s0 + $0x54] ss:$8 sps:$4 sm:$0xff]  }
   0x6   :  { %255 = vrot.lane.b32.xlu1 %v684_v1, %s722_s14  ;;  %215 = vrot.lane.b32.xlu0 %v684_v1, %s723_s15  ;;  %v693_v11 = vld [vmem:[%s1006_s0] ss:$8 sps:$4 sm:$0xff]   ;;  %v699_v16 = vld [vmem:[%s1006_s0 + $0x50] ss:$8 sps:$4 sm:$0xff]  }
   0x7   :  { %356 = vmatprep.subr.bf16.mxu0 %v785_v8  ;;  %v700_v17 = vld [vmem:[%s1006_s0 + $0x64] ss:$8 sps:$4 sm:$0xff]   ;;  %v702_v18 = vld [vmem:[%s1006_s0 + $0x60] ss:$8 sps:$4 sm:$0xff]   ;;  %v580_v24 = vld [vmem:[%s1008_s2 + $0x10] sm:$0xff] }
   0x8   :  { %v703_v19 = vld [vmem:[%s1006_s0 + $0x44] ss:$8 sps:$4 sm:$0xff]   ;;  %v705_v20 = vld [vmem:[%s1006_s0 + $0x40] ss:$8 sps:$4 sm:$0xff]   ;;  %v581_v25 = vld [vmem:[%s1008_s2 + $0x18] sm:$0xff] }
   0x9   :  { %357 = vmatpush1.bf16.msra.mxu0 %v792_v9  ;;  %v856_v21 = vld [vmem:[%s1007_s1 + $0x4] ss:$12 sps:$4 sm:$0xff]   ;;  %v579_v23 = vld [vmem:[%s1008_s2 + $0x8] sm:$0xff] }
   0xa   :  { %92 = vrot.lane.b32.xlu1 %v685_v2, %s723_s15  ;;  %90 = vrot.lane.b32.xlu0 %v687_v3, %s723_s15  ;;  %v578_v22 = vld [vmem:[%s1008_s2] sm:$0xff]  ;;  %v710_v47 = vld [vmem:[%s1006_s0 + $0x30] ss:$8 sps:$4 sm:$0xff]  }
   0xb   :  { %386 = vmatprep.mubr.bf16.mxu0 %v856_v21  ;;  %v912_v51 = vld [vmem:[%s1007_s1 + $0x8] ss:$12 sps:$4 sm:$0xff]   ;;  %v712_v56 = vld [vmem:[%s1006_s0 + $0x10] ss:$8 sps:$4 sm:$0xff]   ;;  %v932_v60 = vld [vmem:[%s1007_s1 + $0x20] ss:$12 sps:$4 sm:$0xff]  }
   0xc   :  { %v711_v52 = vld [vmem:[%s1006_s0 + $0x20] ss:$8 sps:$4 sm:$0xff]  }
   0xd   :  { %v714_v61 = vld [vmem:[%s1006_s0] ss:$8 sps:$4 sm:$0xff]  }
   0xe   :  { %198 = vrot.lane.b32.xlu1 %v685_v2, %s722_s14  ;;  %196 = vrot.lane.b32.xlu0 %v687_v3, %s722_s14 }
  0x12   :  { %211 = vrot.lane.b32.xlu1 %v688_v4, %s723_s15  ;;  %209 = vrot.lane.b32.xlu0 %v690_v5, %s723_s15 }
  0x16   :  { %251 = vrot.lane.b32.xlu1 %v688_v4, %s722_s14  ;;  %249 = vrot.lane.b32.xlu0 %v690_v5, %s722_s14 }
  0x1a   :  { %88 = vrot.lane.b32.xlu1 %v691_v10, %s723_s15  ;;  %86 = vrot.lane.b32.xlu0 %v693_v11, %s723_s15 }
  0x1e   :  { %194 = vrot.lane.b32.xlu1 %v691_v10, %s722_s14  ;;  %192 = vrot.lane.b32.xlu0 %v693_v11, %s722_s14 }
  0x22   :  { %186 = vrot.lane.b32.xlu1 %v684_v1, %s725_s11  ;;  %184 = vrot.lane.b32.xlu0 %v682_v0, %s725_s11 }
  0x26   :  { %157 = vrot.lane.b32.xlu1 %v685_v2, %s725_s11  ;;  %155 = vrot.lane.b32.xlu0 %v687_v3, %s725_s11 }
  0x2a   :  { %182 = vrot.lane.b32.xlu1 %v688_v4, %s725_s11  ;;  %180 = vrot.lane.b32.xlu0 %v690_v5, %s725_s11 }
  0x2e   :  { %153 = vrot.lane.b32.xlu1 %v691_v10, %s725_s11  ;;  %151 = vrot.lane.b32.xlu0 %v693_v11, %s725_s11 }
  0x32   :  { %243 = vrot.lane.b32.xlu1 %v694_v13, %s723_s15  ;;  %241 = vrot.lane.b32.xlu0 %v696_v14, %s723_s15 }
  0x36   :  { %145 = vrot.lane.b32.xlu1 %v697_v15, %s723_s15  ;;  %143 = vrot.lane.b32.xlu0 %v699_v16, %s723_s15 }
  0x3a   :  { %239 = vrot.lane.b32.xlu1 %v700_v17, %s723_s15  ;;  %237 = vrot.lane.b32.xlu0 %v702_v18, %s723_s15 }
  0x3e   :  { %141 = vrot.lane.b32.xlu1 %v703_v19, %s723_s15  ;;  %139 = vrot.lane.b32.xlu0 %v705_v20, %s723_s15 }
  0x42   :  { %291 = vrot.lane.b32.xlu1 %v697_v15, %s722_s14  ;;  %289 = vrot.lane.b32.xlu0 %v699_v16, %s722_s14 }
  0x46   :  { %279 = vrot.lane.b32.xlu1 %v694_v13, %s725_s11  ;;  %277 = vrot.lane.b32.xlu0 %v696_v14, %s725_s11 }
  0x4a   :  { %287 = vrot.lane.b32.xlu1 %v703_v19, %s722_s14  ;;  %285 = vrot.lane.b32.xlu0 %v705_v20, %s722_s14 }
  0x4e   :  { %275 = vrot.lane.b32.xlu1 %v700_v17, %s725_s11  ;;  %273 = vrot.lane.b32.xlu0 %v702_v18, %s725_s11 }
  0x52   :  { %267 = vrot.lane.b32.xlu1 %v697_v15, %s725_s11  ;;  %265 = vrot.lane.b32.xlu0 %v699_v16, %s725_s11 }
  0x56   :  { %263 = vrot.lane.b32.xlu1 %v703_v19, %s725_s11  ;;  %261 = vrot.lane.b32.xlu0 %v705_v20, %s725_s11 }
  0x5a   :  { %303 = vrot.lane.b32.xlu1 %v694_v13, %s722_s14  ;;  %301 = vrot.lane.b32.xlu0 %v696_v14, %s722_s14 }
  0x5e   :  { %299 = vrot.lane.b32.xlu1 %v700_v17, %s722_s14  ;;  %297 = vrot.lane.b32.xlu0 %v702_v18, %s722_s14 }
  0x62   :  { %584 = vperm.xlu0 %680, %v578_v22   ;;  %589 = vperm.xlu1 %681, %v579_v23  }
  0x66   :  { %594 = vperm.xlu1 %681, %v580_v24   ;;  %599 = vperm.xlu0 %680, %v581_v25  }
  0x74   :  { %v254_v26 = vpop.permute.xlu1 %253  ;;  %v214_v27 = vpop.permute.xlu0 %213 }
  0x78   :  { %v256_v28 = vpop.permute.xlu1 %255  ;;  %v216_v29 = vpop.permute.xlu0 %215 }
  0x79   :  { %v218_v30 = vsel %vm94_vm0, %v214_v27, %v216_v29  ;;  %v889_v31 = vsel %vm200_vm1, %v254_v26, %v256_v28  ;;  %v715_v27 = vld [vmem:[%s1007_s1] ss:$12 sps:$4 sm:$0xff]   ;;  %v718_v28 = vld [vmem:[%s1007_s1 + $0x1c] ss:$12 sps:$4 sm:$0xff]  }
  0x7a   :  { %358 = vmatprep.subr.bf16.mxu0 %v218_v30  ;;  %419 = vmatprep.subr.bf16.mxu1 %v889_v31 }
  0x7c   :  { %v93_v32 = vpop.permute.xlu1 %92  ;;  %v91_v33 = vpop.permute.xlu0 %90 }
  0x7d   :  { %v96_v34 = vsel %vm94_vm0, %v91_v33, %v93_v32 }
  0x7e   :  { %359 = vmatpush1.bf16.msra.mxu0 %v96_v34 }
  0x80   :  { %v199_v35 = vpop.permute.xlu1 %198  ;;  %v197_v36 = vpop.permute.xlu0 %196 }
  0x81   :  { %v894_v37 = vsel %vm200_vm1, %v197_v36, %v199_v35  ;;  %v720_v35 = vld [vmem:[%s1007_s1 + $0x18] ss:$12 sps:$4 sm:$0xff]  }
  0x82   :  { %420 = vmatpush1.bf16.msra.mxu1 %v894_v37 }
  0x84   :  { %v212_v38 = vpop.permute.xlu1 %211  ;;  %v210_v39 = vpop.permute.xlu0 %209 }
  0x85   :  { %v217_v40 = vsel %vm94_vm0, %v210_v39, %v212_v38 }
  0x86   :  { %360 = vmatprep.subr.bf16.mxu0 %v217_v40 }
  0x88   :  { %v252_v41 = vpop.permute.xlu1 %251  ;;  %v250_v42 = vpop.permute.xlu0 %249 }
  0x89   :  { %v899_v43 = vsel %vm200_vm1, %v250_v42, %v252_v41 }
  0x8a   :  { %421 = vmatprep.subr.bf16.mxu1 %v899_v43 }
  0x8c   :  { %v89_v44 = vpop.permute.xlu1 %88  ;;  %v87_v45 = vpop.permute.xlu0 %86 }
  0x8d   :  { %v95_v46 = vsel %vm94_vm0, %v87_v45, %v89_v44 }
  0x8e   :  { %361 = vmatpush1.bf16.msra.mxu0 %v95_v46 }
  0x8f   :  { %362 = vmatprep.subr.bf16.mxu0 %v96_v34 }
  0x90   :  { %v195_v48 = vpop.permute.xlu1 %194  ;;  %v193_v49 = vpop.permute.xlu0 %192 }
  0x91   :  { %v907_v50 = vsel %vm200_vm1, %v193_v49, %v195_v48 }
  0x92   :  { %363 = vmatpush1.bf16.msra.mxu0 %v710_v47  ;;  %422 = vmatpush1.bf16.msra.mxu1 %v907_v50 }
  0x93   :  { %364 = vmatprep.subr.bf16.mxu0 %v95_v46 }
  0x94   :  { %v187_v53 = vpop.permute.xlu1 %186  ;;  %v185_v54 = vpop.permute.xlu0 %184 }
  0x95   :  { %v919_v55 = vsel %vm159_vm2, %v185_v54, %v187_v53  ;;  %672 = vmatmul.mubr.msk.bf16.vlgmr.msra.gmra.mxu1 %vm347_vm3, %v912_v51 }
  0x96   :  { %365 = vmatpush1.bf16.msra.mxu0 %v711_v52  ;;  %460 = vmatprep.subr.bf16.mxu1 %v919_v55 }
  0x97   :  { %366 = vmatprep.subr.bf16.mxu0 %v710_v47  ;;  %449 = vmatprep.mubr.bf16.mxu1 %v724_v12 }
  0x98   :  { %v158_v57 = vpop.permute.xlu1 %157  ;;  %v156_v58 = vpop.permute.xlu0 %155 }
  0x99   :  { %v161_v59 = vsel %vm159_vm2, %v156_v58, %v158_v57 }
  0x9a   :  { %367 = vmatpush1.bf16.msra.mxu0 %v712_v56  ;;  %461 = vmatpush1.bf16.msra.mxu1 %v161_v59 }
  0x9b   :  { %368 = vmatprep.subr.bf16.mxu0 %v711_v52 }
  0x9c   :  { %v183_v62 = vpop.permute.xlu1 %182  ;;  %v181_v63 = vpop.permute.xlu0 %180 }
  0x9d   :  { %v938_v0 = vsel %vm159_vm2, %v181_v63, %v183_v62  ;;  %673 = vmatmul.mubr.msk.bf16.gmra.mxu1 %vm347_vm3, %v932_v60 }
  0x9e   :  { %369 = vmatpush1.bf16.msra.mxu0 %v714_v61  ;;  %462 = vmatprep.subr.bf16.mxu1 %v938_v0 }
  0x9f   :  { %370 = vmatprep.subr.bf16.mxu0 %v894_v37  ;;  %492 = vmatprep.mubr.bf16.mxu1 %v856_v21 }
  0xa0   :  { %v154_v1 = vpop.permute.xlu1 %153  ;;  %v152_v2 = vpop.permute.xlu0 %151 }
  0xa1   :  { %v160_v3 = vsel %vm159_vm2, %v152_v2, %v154_v1 }
  0xa2   :  { %371 = vmatpush2.bf16.msra.mxu0 %v919_v55  ;;  %463 = vmatpush1.bf16.msra.mxu1 %v160_v3 }
  0xa3   :  { %372 = vmatprep.subr.bf16.mxu0 %v907_v50 }
  0xa4   :  { %v244_v4 = vpop.permute.xlu1 %243  ;;  %v242_v5 = vpop.permute.xlu0 %241 }
  0xa5   :  { %v246_v10 = vsel %vm94_vm0, %v242_v5, %v244_v4 }
  0xa6   :  { %373 = vmatpush2.bf16.msra.mxu0 %v938_v0  ;;  %464 = vmatprep.subr.bf16.mxu1 %v246_v10 }
  0xa7   :  { %374 = vmatprep.subr.bf16.mxu0 %v919_v55 }
  0xa8   :  { %v146_v11 = vpop.permute.xlu1 %145  ;;  %v144_v13 = vpop.permute.xlu0 %143 }
  0xa9   :  { %v148_v14 = vsel %vm94_vm0, %v144_v13, %v146_v11 }
  0xaa   :  { %375 = vmatpush2.bf16.msra.mxu0 %v161_v59  ;;  %465 = vmatpush1.bf16.msra.mxu1 %v148_v14 }
  0xab   :  { %376 = vmatprep.subr.bf16.mxu0 %v938_v0 }
  0xac   :  { %v240_v15 = vpop.permute.xlu1 %239  ;;  %v238_v16 = vpop.permute.xlu0 %237 }
  0xad   :  { %v245_v17 = vsel %vm94_vm0, %v238_v16, %v240_v15 }
  0xae   :  { %377 = vmatpush2.bf16.msra.mxu0 %v160_v3  ;;  %466 = vmatprep.subr.bf16.mxu1 %v245_v17 }
  0xaf   :  { %378 = vmatprep.subr.bf16.mxu0 %v246_v10 }
  0xb0   :  { %v142_v18 = vpop.permute.xlu1 %141  ;;  %v140_v19 = vpop.permute.xlu0 %139 }
  0xb1   :  { %v147_v20 = vsel %vm94_vm0, %v140_v19, %v142_v18 }
  0xb2   :  { %379 = vmatpush2.bf16.msra.mxu0 %v148_v14  ;;  %467 = vmatpush1.bf16.msra.mxu1 %v147_v20 }
  0xb3   :  { %380 = vmatprep.subr.bf16.mxu0 %v245_v17  ;;  %468 = vmatprep.subr.bf16.mxu1 %v148_v14 }
  0xb4   :  { %v292_v21 = vpop.permute.xlu1 %291  ;;  %v290_v22 = vpop.permute.xlu0 %289 }
  0xb6   :  { %381 = vmatpush2.bf16.msra.mxu0 %v147_v20  ;;  %469 = vmatpush1.bf16.msra.mxu1 %v773_v6 }
  0xb7   :  { %382 = vmatprep.subr.bf16.mxu0 %v148_v14  ;;  %470 = vmatprep.subr.bf16.mxu1 %v147_v20 }
  0xb8   :  { %v280_v23 = vpop.permute.xlu1 %279  ;;  %v278_v24 = vpop.permute.xlu0 %277 }
  0xba   :  { %383 = vmatpush2.bf16.msra.mxu0 %v773_v6  ;;  %471 = vmatpush1.bf16.msra.mxu1 %v785_v8 }
  0xbb   :  { %384 = vmatprep.subr.bf16.mxu0 %v147_v20  ;;  %472 = vmatprep.subr.bf16.mxu1 %v773_v6  ;;  %v294_v6 = vsel %vm200_vm1, %v290_v22, %v292_v21 }
  0xbc   :  { %v288_v25 = vpop.permute.xlu1 %287  ;;  %v286_v26 = vpop.permute.xlu0 %285 }
  0xbd   :  { %v293_v34 = vsel %vm200_vm1, %v286_v26, %v288_v25 }
  0xbe   :  { %385 = vmatpush2.bf16.msra.mxu0 %v785_v8  ;;  %473 = vmatpush1.bf16.msra.mxu1 %v778_v7  ;;  %v282_v7 = vsel %vm159_vm2, %v278_v24, %v280_v23 }
  0xbf   :  { %474 = vmatprep.subr.bf16.mxu1 %v785_v8 }
  0xc0   :  { %v276_v29 = vpop.permute.xlu1 %275  ;;  %v274_v30 = vpop.permute.xlu0 %273 }
  0xc1   :  { %387 = vmatmul.mubr.bf16.vlgmr.msra.gmra.mxu0 %v715_v27  ;;  %v281_v8 = vsel %vm159_vm2, %v274_v30, %v276_v29 }
  0xc2   :  { %475 = vmatpush1.bf16.msra.mxu1 %v792_v9  ;;  %396 = vmatprep.mubr.bf16.mxu0 %v718_v28 }
  0xc3   :  { %476 = vmatprep.subr.bf16.mxu1 %v294_v6 }
  0xc4   :  { %v268_v32 = vpop.permute.xlu1 %267  ;;  %v266_v33 = vpop.permute.xlu0 %265 }
  0xc5   :  { %v270_v38 = vsel %vm159_vm2, %v266_v33, %v268_v32 }
  0xc6   :  { %477 = vmatpush2.bf16.msra.mxu1 %v282_v7 }
  0xc7   :  { %478 = vmatprep.subr.bf16.mxu1 %v293_v34 }
  0xc8   :  { %v264_v36 = vpop.permute.xlu1 %263  ;;  %v262_v9 = vpop.permute.xlu0 %261 }
  0xc9   :  { %397 = vmatmul.mubr.bf16.gmra.mxu0 %v720_v35  ;;  %v269_v42 = vsel %vm159_vm2, %v262_v9, %v264_v36 }
  0xca   :  { %479 = vmatpush2.bf16.msra.mxu1 %v281_v8  ;;  %545 = vmatprep.mubr.bf16.mxu0 %v724_v12 }
  0xcb   :  { %480 = vmatprep.subr.bf16.mxu1 %v282_v7 }
  0xcc   :  { %v304_v39 = vpop.permute.xlu1 %303  ;;  %v302_v40 = vpop.permute.xlu0 %301 }
  0xcd   :  { %v306_v41 = vsel %vm200_vm1, %v302_v40, %v304_v39 }
  0xce   :  { %481 = vmatpush2.bf16.msra.mxu1 %v270_v38  ;;  %525 = vmatprep.subr.bf16.mxu0 %v306_v41 }
  0xcf   :  { %482 = vmatprep.subr.bf16.mxu1 %v281_v8  ;;  %526 = vmatpush1.bf16.msra.mxu0 %v294_v6 }
  0xd0   :  { %v300_v44 = vpop.permute.xlu1 %299  ;;  %v298_v45 = vpop.permute.xlu0 %297 }
  0xd1   :  { %v305_v46 = vsel %vm200_vm1, %v298_v45, %v300_v44 }
  0xd2   :  { %483 = vmatpush2.bf16.msra.mxu1 %v269_v42  ;;  %527 = vmatprep.subr.bf16.mxu0 %v305_v46 }
  0xd3   :  { %484 = vmatprep.subr.bf16.mxu1 %v889_v31  ;;  %528 = vmatpush1.bf16.msra.mxu0 %v293_v34 }
  0xd6   :  { %485 = vmatpush2.bf16.msra.mxu1 %v894_v37  ;;  %674 = vmatmul.mubr.msk.bf16.vlgmr.msra.gmra.mxu0 %vm347_vm3, %v912_v51 }
  0xd7   :  { %486 = vmatprep.subr.bf16.mxu1 %v899_v43  ;;  %555 = vmatprep.mubr.bf16.mxu0 %v724_v12 }
  0xda   :  { %487 = vmatpush2.bf16.msra.mxu1 %v907_v50 }
  0xdb   :  { %488 = vmatprep.subr.bf16.mxu1 %v894_v37 }
  0xdd   :  { %v585_v18 = vpop.permute.xlu0 %584  ;;  %v590_v22 = vpop.permute.xlu1 %589 }
  0xde   :  { %489 = vmatpush2.bf16.msra.mxu1 %v919_v55  ;;  %675 = vmatmul.mubr.msk.bf16.gmra.mxu0 %vm347_vm3, %v932_v60 }
  0xdf   :  { %490 = vmatprep.subr.bf16.mxu1 %v907_v50 }
  0xe1   :  { %v595_v39 = vpop.permute.xlu1 %594 }
  0xe2   :  { %491 = vmatpush2.bf16.msra.mxu1 %v938_v0 }
  0xe5   :  { %493 = vmatmul.mubr.bf16.vlgmr.msra.gmra.mxu1 %v715_v27 }
  0xe6   :  { %502 = vmatprep.mubr.bf16.mxu1 %v718_v28 }
  0xed   :  { %503 = vmatmul.mubr.bf16.gmra.mxu1 %v720_v35 }
 0x155   :  { %v441_v48 = vpop.f32.mrf.mxu1 }
 0x157   :  { %v443_v37 = vpop.f32.mrf.mxu1 }
 0x159   :  { %v445_v53 = vpop.f32.mrf.mxu1 }
 0x15b   :  { %v447_v55 = vpop.f32.mrf.mxu1 }
 0x15d   :  { %v451_v56 = vpop.f32.mrf.mxu1 }
 0x15f   :  { %v453_v50 = vpop.f32.mrf.mxu1 }
 0x161   :  { %v455_v59 = vpop.f32.mrf.mxu1 }
 0x163   :  { %v457_v62 = vpop.f32.mrf.mxu1 }
 0x181   :  { %v388_v31 = vpop.f32.mrf.mxu0 }
 0x182   :  { %v442_v0 = vadd.f32 %v441_v48, %v388_v31 }
 0x183   :  { %v390_v43 = vpop.f32.mrf.mxu0 }
 0x184   :  { %v444_v61 = vadd.f32 %v443_v37, %v390_v43 }
 0x185   :  { %v392_v47 = vpop.f32.mrf.mxu0 }
 0x186   :  { %v566_v2 = vmax.f32 %v442_v0, %v444_v61  ;;  %v446_v11 = vadd.f32 %v445_v53, %v392_v47 }
 0x187   :  { %v394_v12 = vpop.f32.mrf.mxu0 }
 0x188   :  { %v448_v3 = vadd.f32 %v447_v55, %v394_v12 }
 0x189   :  { %v398_v49 = vpop.f32.mrf.mxu0 }
 0x18a   :  { %v452_v15 = vadd.f32 %v451_v56, %v398_v49  ;;  %v567_v19 = vmax.f32 %v446_v11, %v448_v3  ;;  %v600_v49 = vpop.permute.xlu0 %599 }
 0x18b   :  { %v400_v51 = vpop.f32.mrf.mxu0 }
 0x18c   :  { %v454_v16 = vadd.f32 %v453_v50, %v400_v51 }
 0x18d   :  { %v402_v52 = vpop.f32.mrf.mxu0 }
 0x18e   :  { %v568_v28 = vmax.f32 %v452_v15, %v454_v16  ;;  %v456_v29 = vadd.f32 %v455_v59, %v402_v52 }
 0x18f   :  { %v404_v54 = vpop.f32.mrf.mxu0 }
 0x190   :  { %v458_v6 = vadd.f32 %v457_v62, %v404_v54 }
 0x192   :  { %v569_v40 = vmax.f32 %v456_v29, %v458_v6 }
 0x196   :  { %v547_v57 = vpop.f32.mrf.mxu0 }
 0x198   :  { %v549_v58 = vpop.f32.mrf.mxu0 }
 0x19a   :  { %v551_v60 = vpop.f32.mrf.mxu0 }
 0x19c   :  { %v553_v63 = vpop.f32.mrf.mxu0 }
 0x19e   :  { %v557_v10 = vpop.f32.mrf.mxu0 }
 0x1a0   :  { %v559_v23 = vpop.f32.mrf.mxu0 }
 0x1a2   :  { %v561_v7 = vpop.f32.mrf.mxu0 }
 0x1a4   :  { %v563_v45 = vpop.f32.mrf.mxu0 }
 0x1a5   :  { %v494_v1 = vpop.f32.mrf.mxu1 }
 0x1a6   :  { %v548_v4 = vadd.f32 %v547_v57, %v494_v1 }
 0x1a7   :  { %v496_v5 = vpop.f32.mrf.mxu1 }
 0x1a8   :  { %v570_v13 = vmax.f32 %v566_v2, %v548_v4  ;;  %v550_v14 = vadd.f32 %v549_v58, %v496_v5 }
 0x1a9   :  { %v498_v17 = vpop.f32.mrf.mxu1 }
 0x1aa   :  { %v552_v20 = vadd.f32 %v551_v60, %v498_v17  ;;  %v574_v21 = vmax.f32 %v570_v13, %v550_v14 }
 0x1ab   :  { %v500_v24 = vpop.f32.mrf.mxu1 }
 0x1ac   :  { %v571_v25 = vmax.f32 %v567_v19, %v552_v20  ;;  %v554_v26 = vadd.f32 %v553_v63, %v500_v24  ;;  %v602_v27 = vadd.f32 %v585_v18, %v574_v21 }
 0x1ad   :  { %v504_v30 = vpop.f32.mrf.mxu1 }
 0x1ae   :  { %v606_v32 = vmax.f32 %v602_v27, 0.0  ;;  %v558_v33 = vadd.f32 %v557_v10, %v504_v30  ;;  %v575_v34 = vmax.f32 %v571_v25, %v554_v26 }
 0x1af   :  { %v506_v35 = vpop.f32.mrf.mxu1 }
 0x1b0   :  { %610 = vst [vmem:[%s1009_s3] sm:$0xff] %v606_v32  ;;  %v572_v8 = vmax.f32 %v568_v28, %v558_v33  ;;  %v603_v36 = vadd.f32 %v590_v22, %v575_v34  ;;  %v560_v9 = vadd.f32 %v559_v23, %v506_v35 }
 0x1b1   :  { %v508_v38 = vpop.f32.mrf.mxu1 }
 0x1b2   :  { %v607_v41 = vmax.f32 %v603_v36, 0.0  ;;  %v562_v42 = vadd.f32 %v561_v7, %v508_v38  ;;  %v576_v44 = vmax.f32 %v572_v8, %v560_v9 }
 0x1b3   :  { %v510_v46 = vpop.f32.mrf.mxu1 }
 0x1b4   :  { %611 = vst [vmem:[%s1009_s3 + $0x8] sm:$0xff] %v607_v41  ;;  %v573_v31 = vmax.f32 %v569_v40, %v562_v42  ;;  %v604_v43 = vadd.f32 %v595_v39, %v576_v44  ;;  %v564_v47 = vadd.f32 %v563_v45, %v510_v46 }
 0x1b6   :  { %v608_v12 = vmax.f32 %v604_v43, 0.0  ;;  %v577_v48 = vmax.f32 %v573_v31, %v564_v47 }
 0x1b8   :  { %612 = vst [vmem:[%s1009_s3 + $0x10] sm:$0xff] %v608_v12  ;;  %v605_v51 = vadd.f32 %v600_v49, %v577_v48 }
 0x1ba   :  { %v609_v37 = vmax.f32 %v605_v51, 0.0 }
 0x1bc   :  { %613 = vst [vmem:[%s1009_s3 + $0x18] sm:$0xff] %v609_v37 }

// kernel: encoder_forward.7
= control target key start
LH: loop header
LB: loop body
LE: loop exit
PB: predicated region body
PF: predicated region fallthrough
CT: control target
= control target key end

     0   :  { %s627_s16 = smov 124   ;;  %s628_s10 = smov 125   ;;  %v629_v12 = vmov 0   ;;  %vm200_vm0 = vcmask 1014784   ;;  %vm159_vm1 = vcmask 1022976   ;;  %vm328_vm2 = vcmask 261120   ;;  %s862_s0 = inlined_call_operand.vmem [shape: bf16[4,32,256], index: 0, kind: input, shape index: {}]   ;;  %s863_s1 = inlined_call_operand.vmem [shape: bf16[12,288], index: 1, kind: input, shape index: {}]   ;;  %s864_s2 = inlined_call_operand.vmem [shape: f32[12,1], index: 2, kind: input, shape index: {}]   ;;  %s865_s3 = inlined_call_operand.vmem [shape: f32[12,128], index: 3, kind: output, shape index: {}]  }
   0x1   :  { %v591_v0 = vld [vmem:[%s862_s0 + $0x30] ss:$8 sps:$4 sm:$0xff]   ;;  %v595_v2 = vld [vmem:[%s862_s0 + $0x34] ss:$8 sps:$4 sm:$0xff]   ;;  %v597_v4 = vld [vmem:[%s862_s0 + $0x20] ss:$8 sps:$4 sm:$0xff]   ;;  %407 = vmatprep.mubr.bf16.mxu1 %v629_v12  ;;  %589 = vset.pattern.permute.xlu0 %v629_v12 }
   0x2   :  { %v593_v1 = vld [vmem:[%s862_s0 + $0x10] ss:$8 sps:$4 sm:$0xff]   ;;  %253 = vrot.lane.b32.xlu0 %v591_v0, %s627_s16  ;;  %v596_v3 = vld [vmem:[%s862_s0 + $0x14] ss:$8 sps:$4 sm:$0xff]   ;;  %v599_v5 = vld [vmem:[%s862_s0 + $0x24] ss:$8 sps:$4 sm:$0xff]   ;;  %590 = vset.pattern.permute.xlu1 %v629_v12 }
   0x3   :  { %196 = vrot.lane.b32.xlu1 %v593_v1, %s627_s16  ;;  %v600_v6 = vld [vmem:[%s862_s0 + $0x4] ss:$8 sps:$4 sm:$0xff]   ;;  %v602_v7 = vld [vmem:[%s862_s0] ss:$8 sps:$4 sm:$0xff]   ;;  %v684_v8 = vld [vmem:[%s862_s0 + $0x70] ss:$8 sps:$4 sm:$0xff]  }
   0x4   :  { %v689_v9 = vld [vmem:[%s862_s0 + $0x50] ss:$8 sps:$4 sm:$0xff]   ;;  %332 = vmatprep.subr.bf16.mxu0 %v684_v8  ;;  %v695_v10 = vld [vmem:[%s862_s0 + $0x60] ss:$8 sps:$4 sm:$0xff]   ;;  %s630_s11 = smov 127   ;;  %vm94_vm3 = vcmask 1039360  }
   0x5   :  { %333 = vmatpush1.bf16.msra.mxu0 %v689_v9  ;;  %v702_v11 = vld [vmem:[%s862_s0 + $0x40] ss:$8 sps:$4 sm:$0xff]   ;;  %v605_v13 = vld [vmem:[%s862_s0 + $0x70] ss:$8 sps:$4 sm:$0xff]   ;;  %v603_v14 = vld [vmem:[%s862_s0 + $0x74] ss:$8 sps:$4 sm:$0xff]  }
   0x6   :  { %255 = vrot.lane.b32.xlu0 %v595_v2, %s627_s16  ;;  %334 = vmatprep.subr.bf16.mxu0 %v695_v10  ;;  %v608_v15 = vld [vmem:[%s862_s0 + $0x50] ss:$8 sps:$4 sm:$0xff]   ;;  %v606_v16 = vld [vmem:[%s862_s0 + $0x54] ss:$8 sps:$4 sm:$0xff]   ;;  %v611_v17 = vld [vmem:[%s862_s0 + $0x60] ss:$8 sps:$4 sm:$0xff]  }
   0x7   :  { %198 = vrot.lane.b32.xlu1 %v596_v3, %s627_s16  ;;  %v609_v18 = vld [vmem:[%s862_s0 + $0x64] ss:$8 sps:$4 sm:$0xff]   ;;  %v614_v19 = vld [vmem:[%s862_s0 + $0x40] ss:$8 sps:$4 sm:$0xff]   ;;  %v620_v58 = vld [vmem:[%s862_s0 + $0x30] ss:$8 sps:$4 sm:$0xff]  }
   0x8   :  { %v612_v20 = vld [vmem:[%s862_s0 + $0x44] ss:$8 sps:$4 sm:$0xff]   ;;  %v511_v23 = vld [vmem:[%s864_s2 + $0x8] sm:$0xf] }
   0x9   :  { %335 = vmatpush1.bf16.msra.mxu0 %v702_v11  ;;  %v626_v21 = vld [vmem:[%s863_s1 + $0x4] ss:$12 sps:$4 sm:$0x3f]   ;;  %v785_v36 = vld [vmem:[%s863_s1 + $0x8] ss:$12 sps:$4 sm:$0x3f]  }
   0xa   :  { %249 = vrot.lane.b32.xlu0 %v597_v4, %s627_s16  ;;  %364 = vmatprep.mubr.bf16.mxu0 %v626_v21  ;;  %v510_v22 = vld [vmem:[%s864_s2] sm:$0xff] }
   0xb   :  { %251 = vrot.lane.b32.xlu1 %v599_v5, %s627_s16  ;;  %v621_v62 = vld [vmem:[%s862_s0 + $0x20] ss:$8 sps:$4 sm:$0xff]  }
   0xe   :  { %192 = vrot.lane.b32.xlu0 %v602_v7, %s627_s16 }
   0xf   :  { %194 = vrot.lane.b32.xlu1 %v600_v6, %s627_s16 }
  0x12   :  { %184 = vrot.lane.b32.xlu0 %v591_v0, %s628_s10 }
  0x13   :  { %186 = vrot.lane.b32.xlu1 %v595_v2, %s628_s10 }
  0x16   :  { %213 = vrot.lane.b32.xlu0 %v591_v0, %s630_s11 }
  0x17   :  { %215 = vrot.lane.b32.xlu1 %v595_v2, %s630_s11  ;;  %v622_v2 = vld [vmem:[%s862_s0 + $0x10] ss:$8 sps:$4 sm:$0xff]  }
  0x1a   :  { %90 = vrot.lane.b32.xlu0 %v593_v1, %s630_s11 }
  0x1b   :  { %92 = vrot.lane.b32.xlu1 %v596_v3, %s630_s11 }
  0x1e   :  { %155 = vrot.lane.b32.xlu0 %v593_v1, %s628_s10 }
  0x1f   :  { %157 = vrot.lane.b32.xlu1 %v596_v3, %s628_s10 }
  0x22   :  { %180 = vrot.lane.b32.xlu0 %v597_v4, %s628_s10 }
  0x23   :  { %182 = vrot.lane.b32.xlu1 %v599_v5, %s628_s10 }
  0x26   :  { %209 = vrot.lane.b32.xlu0 %v597_v4, %s630_s11 }
  0x27   :  { %211 = vrot.lane.b32.xlu1 %v599_v5, %s630_s11 }
  0x2a   :  { %86 = vrot.lane.b32.xlu0 %v602_v7, %s630_s11 }
  0x2b   :  { %88 = vrot.lane.b32.xlu1 %v600_v6, %s630_s11 }
  0x2e   :  { %151 = vrot.lane.b32.xlu0 %v602_v7, %s628_s10 }
  0x2f   :  { %153 = vrot.lane.b32.xlu1 %v600_v6, %s628_s10  ;;  %v623_v6 = vld [vmem:[%s862_s0] ss:$8 sps:$4 sm:$0xff]  }
  0x32   :  { %241 = vrot.lane.b32.xlu0 %v605_v13, %s630_s11 }
  0x33   :  { %243 = vrot.lane.b32.xlu1 %v603_v14, %s630_s11 }
  0x36   :  { %143 = vrot.lane.b32.xlu0 %v608_v15, %s630_s11 }
  0x37   :  { %145 = vrot.lane.b32.xlu1 %v606_v16, %s630_s11 }
  0x3a   :  { %237 = vrot.lane.b32.xlu0 %v611_v17, %s630_s11 }
  0x3b   :  { %239 = vrot.lane.b32.xlu1 %v609_v18, %s630_s11 }
  0x3e   :  { %139 = vrot.lane.b32.xlu0 %v614_v19, %s630_s11 }
  0x3f   :  { %141 = vrot.lane.b32.xlu1 %v612_v20, %s630_s11 }
  0x42   :  { %289 = vrot.lane.b32.xlu0 %v608_v15, %s627_s16 }
  0x43   :  { %291 = vrot.lane.b32.xlu1 %v606_v16, %s627_s16 }
  0x46   :  { %277 = vrot.lane.b32.xlu0 %v605_v13, %s628_s10 }
  0x47   :  { %279 = vrot.lane.b32.xlu1 %v603_v14, %s628_s10 }
  0x4a   :  { %285 = vrot.lane.b32.xlu0 %v614_v19, %s627_s16 }
  0x4b   :  { %287 = vrot.lane.b32.xlu1 %v612_v20, %s627_s16 }
  0x4e   :  { %273 = vrot.lane.b32.xlu0 %v611_v17, %s628_s10 }
  0x4f   :  { %275 = vrot.lane.b32.xlu1 %v609_v18, %s628_s10 }
  0x52   :  { %265 = vrot.lane.b32.xlu0 %v608_v15, %s628_s10 }
  0x53   :  { %267 = vrot.lane.b32.xlu1 %v606_v16, %s628_s10 }
  0x56   :  { %261 = vrot.lane.b32.xlu0 %v614_v19, %s628_s10 }
  0x57   :  { %263 = vrot.lane.b32.xlu1 %v612_v20, %s628_s10 }
  0x5a   :  { %301 = vrot.lane.b32.xlu0 %v605_v13, %s627_s16 }
  0x5b   :  { %303 = vrot.lane.b32.xlu1 %v603_v14, %s627_s16 }
  0x5e   :  { %297 = vrot.lane.b32.xlu0 %v611_v17, %s627_s16 }
  0x5f   :  { %299 = vrot.lane.b32.xlu1 %v609_v18, %s627_s16 }
  0x62   :  { %514 = vperm.xlu0 %589, %v510_v22  }
  0x63   :  { %519 = vperm.xlu1 %590, %v511_v23  }
  0x74   :  { %v254_v24 = vpop.permute.xlu0 %253 }
  0x75   :  { %v197_v25 = vpop.permute.xlu1 %196 }
  0x78   :  { %v256_v26 = vpop.permute.xlu0 %255 }
  0x79   :  { %v199_v27 = vpop.permute.xlu1 %198  ;;  %v768_v28 = vsel %vm200_vm0, %v254_v24, %v256_v26 }
  0x7a   :  { %v771_v29 = vsel %vm200_vm0, %v197_v25, %v199_v27  ;;  %387 = vmatprep.subr.bf16.mxu1 %v768_v28 }
  0x7b   :  { %388 = vmatpush1.bf16.msra.mxu1 %v771_v29 }
  0x7c   :  { %v250_v30 = vpop.permute.xlu0 %249 }
  0x7d   :  { %v252_v31 = vpop.permute.xlu1 %251 }
  0x7e   :  { %v776_v32 = vsel %vm200_vm0, %v250_v30, %v252_v31 }
  0x7f   :  { %389 = vmatprep.subr.bf16.mxu1 %v776_v32 }
  0x80   :  { %v193_v33 = vpop.permute.xlu0 %192 }
  0x81   :  { %v195_v34 = vpop.permute.xlu1 %194 }
  0x82   :  { %v780_v35 = vsel %vm200_vm0, %v193_v33, %v195_v34 }
  0x83   :  { %390 = vmatpush1.bf16.msra.mxu1 %v780_v35 }
  0x84   :  { %v185_v37 = vpop.permute.xlu0 %184 }
  0x85   :  { %v187_v38 = vpop.permute.xlu1 %186 }
  0x86   :  { %v789_v39 = vsel %vm159_vm1, %v185_v37, %v187_v38  ;;  %583 = vmatmul.mubr.msk.bf16.vlgmr.msra.gmra.mxu1 %vm328_vm2, %v785_v36 }
  0x87   :  { %418 = vmatprep.subr.bf16.mxu1 %v789_v39  ;;  %450 = vmatprep.mubr.bf16.mxu1 %v626_v21 }
  0x88   :  { %v214_v40 = vpop.permute.xlu0 %213 }
  0x89   :  { %v216_v41 = vpop.permute.xlu1 %215 }
  0x8a   :  { %v218_v42 = vsel %vm94_vm3, %v214_v40, %v216_v41  ;;  %v624_v41 = vld [vmem:[%s863_s1] ss:$12 sps:$4 sm:$0x3f]  }
  0x8b   :  { %336 = vmatprep.subr.bf16.mxu0 %v218_v42 }
  0x8c   :  { %v91_v43 = vpop.permute.xlu0 %90 }
  0x8d   :  { %v93_v44 = vpop.permute.xlu1 %92 }
  0x8e   :  { %v96_v45 = vsel %vm94_vm3, %v91_v43, %v93_v44 }
  0x8f   :  { %337 = vmatpush1.bf16.msra.mxu0 %v96_v45 }
  0x90   :  { %v156_v46 = vpop.permute.xlu0 %155 }
  0x91   :  { %v158_v47 = vpop.permute.xlu1 %157 }
  0x92   :  { %v161_v48 = vsel %vm159_vm1, %v156_v46, %v158_v47 }
  0x93   :  { %419 = vmatpush1.bf16.msra.mxu1 %v161_v48 }
  0x94   :  { %v181_v49 = vpop.permute.xlu0 %180 }
  0x95   :  { %v183_v50 = vpop.permute.xlu1 %182 }
  0x96   :  { %v798_v51 = vsel %vm159_vm1, %v181_v49, %v183_v50 }
  0x97   :  { %420 = vmatprep.subr.bf16.mxu1 %v798_v51 }
  0x98   :  { %v210_v52 = vpop.permute.xlu0 %209 }
  0x99   :  { %v212_v53 = vpop.permute.xlu1 %211 }
  0x9a   :  { %v217_v54 = vsel %vm94_vm3, %v210_v52, %v212_v53 }
  0x9b   :  { %338 = vmatprep.subr.bf16.mxu0 %v217_v54 }
  0x9c   :  { %v87_v55 = vpop.permute.xlu0 %86 }
  0x9d   :  { %v89_v56 = vpop.permute.xlu1 %88 }
  0x9e   :  { %v95_v57 = vsel %vm94_vm3, %v87_v55, %v89_v56 }
  0x9f   :  { %339 = vmatpush1.bf16.msra.mxu0 %v95_v57 }
  0xa0   :  { %340 = vmatprep.subr.bf16.mxu0 %v96_v45  ;;  %v152_v59 = vpop.permute.xlu0 %151 }
  0xa1   :  { %v154_v60 = vpop.permute.xlu1 %153 }
  0xa2   :  { %v160_v61 = vsel %vm159_vm1, %v152_v59, %v154_v60 }
  0xa3   :  { %341 = vmatpush1.bf16.msra.mxu0 %v620_v58  ;;  %421 = vmatpush1.bf16.msra.mxu1 %v160_v61 }
  0xa4   :  { %342 = vmatprep.subr.bf16.mxu0 %v95_v57  ;;  %v242_v63 = vpop.permute.xlu0 %241 }
  0xa5   :  { %v244_v0 = vpop.permute.xlu1 %243 }
  0xa6   :  { %v246_v1 = vsel %vm94_vm3, %v242_v63, %v244_v0 }
  0xa7   :  { %343 = vmatpush1.bf16.msra.mxu0 %v621_v62  ;;  %422 = vmatprep.subr.bf16.mxu1 %v246_v1 }
  0xa8   :  { %v144_v3 = vpop.permute.xlu0 %143  ;;  %344 = vmatprep.subr.bf16.mxu0 %v620_v58 }
  0xa9   :  { %v146_v4 = vpop.permute.xlu1 %145 }
  0xaa   :  { %v148_v5 = vsel %vm94_vm3, %v144_v3, %v146_v4 }
  0xab   :  { %345 = vmatpush1.bf16.msra.mxu0 %v622_v2  ;;  %423 = vmatpush1.bf16.msra.mxu1 %v148_v5 }
  0xac   :  { %v238_v7 = vpop.permute.xlu0 %237  ;;  %346 = vmatprep.subr.bf16.mxu0 %v621_v62 }
  0xad   :  { %v240_v13 = vpop.permute.xlu1 %239 }
  0xae   :  { %v245_v14 = vsel %vm94_vm3, %v238_v7, %v240_v13 }
  0xaf   :  { %347 = vmatpush1.bf16.msra.mxu0 %v623_v6  ;;  %424 = vmatprep.subr.bf16.mxu1 %v245_v14 }
  0xb0   :  { %348 = vmatprep.subr.bf16.mxu0 %v771_v29  ;;  %v140_v15 = vpop.permute.xlu0 %139 }
  0xb1   :  { %v142_v16 = vpop.permute.xlu1 %141 }
  0xb2   :  { %v147_v17 = vsel %vm94_vm3, %v140_v15, %v142_v16 }
  0xb3   :  { %349 = vmatpush2.bf16.msra.mxu0 %v789_v39  ;;  %425 = vmatpush1.bf16.msra.mxu1 %v147_v17 }
  0xb4   :  { %350 = vmatprep.subr.bf16.mxu0 %v780_v35  ;;  %426 = vmatprep.subr.bf16.mxu1 %v148_v5  ;;  %v290_v18 = vpop.permute.xlu0 %289 }
  0xb5   :  { %v292_v19 = vpop.permute.xlu1 %291 }
  0xb6   :  { %v294_v26 = vsel %vm200_vm0, %v290_v18, %v292_v19 }
  0xb7   :  { %351 = vmatpush2.bf16.msra.mxu0 %v798_v51  ;;  %427 = vmatpush1.bf16.msra.mxu1 %v684_v8 }
  0xb8   :  { %428 = vmatprep.subr.bf16.mxu1 %v147_v17  ;;  %352 = vmatprep.subr.bf16.mxu0 %v789_v39  ;;  %v278_v20 = vpop.permute.xlu0 %277 }
  0xb9   :  { %v280_v21 = vpop.permute.xlu1 %279 }
  0xba   :  { %v282_v33 = vsel %vm159_vm1, %v278_v20, %v280_v21 }
  0xbb   :  { %353 = vmatpush2.bf16.msra.mxu0 %v161_v48  ;;  %429 = vmatpush1.bf16.msra.mxu1 %v695_v10 }
  0xbc   :  { %354 = vmatprep.subr.bf16.mxu0 %v798_v51  ;;  %430 = vmatprep.subr.bf16.mxu1 %v684_v8  ;;  %v286_v22 = vpop.permute.xlu0 %285 }
  0xbd   :  { %v288_v23 = vpop.permute.xlu1 %287 }
  0xbe   :  { %v293_v31 = vsel %vm200_vm0, %v286_v22, %v288_v23 }
  0xbf   :  { %355 = vmatpush2.bf16.msra.mxu0 %v160_v61  ;;  %431 = vmatpush1.bf16.msra.mxu1 %v689_v9 }
  0xc0   :  { %356 = vmatprep.subr.bf16.mxu0 %v246_v1  ;;  %432 = vmatprep.subr.bf16.mxu1 %v695_v10  ;;  %v274_v24 = vpop.permute.xlu0 %273 }
  0xc1   :  { %v276_v25 = vpop.permute.xlu1 %275 }
  0xc2   :  { %v281_v9 = vsel %vm159_vm1, %v274_v24, %v276_v25 }
  0xc3   :  { %357 = vmatpush2.bf16.msra.mxu0 %v148_v5  ;;  %433 = vmatpush1.bf16.msra.mxu1 %v702_v11 }
  0xc4   :  { %434 = vmatprep.subr.bf16.mxu1 %v294_v26  ;;  %358 = vmatprep.subr.bf16.mxu0 %v245_v14  ;;  %v266_v27 = vpop.permute.xlu0 %265 }
  0xc5   :  { %v268_v30 = vpop.permute.xlu1 %267 }
  0xc6   :  { %v270_v11 = vsel %vm159_vm1, %v266_v27, %v268_v30 }
  0xc7   :  { %359 = vmatpush2.bf16.msra.mxu0 %v147_v17  ;;  %435 = vmatpush2.bf16.msra.mxu1 %v282_v33 }
  0xc8   :  { %436 = vmatprep.subr.bf16.mxu1 %v293_v31  ;;  %360 = vmatprep.subr.bf16.mxu0 %v148_v5  ;;  %v262_v34 = vpop.permute.xlu0 %261 }
  0xc9   :  { %v264_v37 = vpop.permute.xlu1 %263 }
  0xca   :  { %v269_v43 = vsel %vm159_vm1, %v262_v34, %v264_v37 }
  0xcb   :  { %361 = vmatpush2.bf16.msra.mxu0 %v684_v8  ;;  %437 = vmatpush2.bf16.msra.mxu1 %v281_v9 }
  0xcc   :  { %438 = vmatprep.subr.bf16.mxu1 %v282_v33  ;;  %362 = vmatprep.subr.bf16.mxu0 %v147_v17  ;;  %v302_v38 = vpop.permute.xlu0 %301 }
  0xcd   :  { %v304_v40 = vpop.permute.xlu1 %303 }
  0xce   :  { %v306_v42 = vsel %vm200_vm0, %v302_v38, %v304_v40 }
  0xcf   :  { %363 = vmatpush2.bf16.msra.mxu0 %v695_v10  ;;  %439 = vmatpush2.bf16.msra.mxu1 %v270_v11 }
  0xd0   :  { %440 = vmatprep.subr.bf16.mxu1 %v281_v9  ;;  %473 = vmatprep.subr.bf16.mxu0 %v306_v42  ;;  %v298_v8 = vpop.permute.xlu0 %297 }
  0xd1   :  { %v300_v44 = vpop.permute.xlu1 %299 }
  0xd2   :  { %365 = vmatmul.mubr.bf16.vlgmr.msra.gmra.mxu0 %v624_v41  ;;  %v305_v45 = vsel %vm200_vm0, %v298_v8, %v300_v44 }
  0xd3   :  { %441 = vmatpush2.bf16.msra.mxu1 %v269_v43  ;;  %474 = vmatpush1.bf16.msra.mxu0 %v294_v26 }
  0xd4   :  { %442 = vmatprep.subr.bf16.mxu1 %v768_v28  ;;  %475 = vmatprep.subr.bf16.mxu0 %v305_v45 }
  0xd5   :  { %493 = vmatprep.mubr.bf16.mxu0 %v629_v12 }
  0xd7   :  { %443 = vmatpush2.bf16.msra.mxu1 %v771_v29  ;;  %476 = vmatpush1.bf16.msra.mxu0 %v293_v31 }
  0xd8   :  { %444 = vmatprep.subr.bf16.mxu1 %v776_v32 }
  0xda   :  { %584 = vmatmul.mubr.msk.bf16.vlgmr.msra.gmra.mxu0 %vm328_vm2, %v785_v36 }
  0xdb   :  { %445 = vmatpush2.bf16.msra.mxu1 %v780_v35 }
  0xdc   :  { %446 = vmatprep.subr.bf16.mxu1 %v771_v29 }
  0xdd   :  { %v515_v60 = vpop.permute.xlu0 %514 }
  0xde   :  { %v520_v5 = vpop.permute.xlu1 %519 }
  0xdf   :  { %447 = vmatpush2.bf16.msra.mxu1 %v789_v39 }
  0xe0   :  { %448 = vmatprep.subr.bf16.mxu1 %v780_v35 }
  0xe3   :  { %449 = vmatpush2.bf16.msra.mxu1 %v798_v51 }
  0xe6   :  { %451 = vmatmul.mubr.bf16.vlgmr.msra.gmra.mxu1 %v624_v41 }
 0x146   :  { %v409_v28 = vpop.f32.mrf.mxu1 }
 0x148   :  { %v411_v47 = vpop.f32.mrf.mxu1 }
 0x14a   :  { %v413_v48 = vpop.f32.mrf.mxu1 }
 0x14c   :  { %v415_v50 = vpop.f32.mrf.mxu1 }
 0x192   :  { %v366_v10 = vpop.f32.mrf.mxu0 }
 0x193   :  { %v410_v53 = vadd.f32 %v409_v28, %v366_v10 }
 0x194   :  { %v368_v12 = vpop.f32.mrf.mxu0 }
 0x195   :  { %v412_v36 = vadd.f32 %v411_v47, %v368_v12 }
 0x196   :  { %v370_v46 = vpop.f32.mrf.mxu0 }
 0x197   :  { %v504_v54 = vmax.f32 %v410_v53, %v412_v36  ;;  %v414_v51 = vadd.f32 %v413_v48, %v370_v46 }
 0x198   :  { %v372_v32 = vpop.f32.mrf.mxu0 }
 0x199   :  { %v416_v39 = vadd.f32 %v415_v50, %v372_v32 }
 0x19a   :  { %v495_v49 = vpop.f32.mrf.mxu0 }
 0x19b   :  { %v505_v61 = vmax.f32 %v414_v51, %v416_v39 }
 0x19c   :  { %v497_v52 = vpop.f32.mrf.mxu0 }
 0x19e   :  { %v499_v35 = vpop.f32.mrf.mxu0 }
 0x1a0   :  { %v501_v0 = vpop.f32.mrf.mxu0 }
 0x1a6   :  { %v452_v29 = vpop.f32.mrf.mxu1 }
 0x1a7   :  { %v496_v55 = vadd.f32 %v495_v49, %v452_v29 }
 0x1a8   :  { %v454_v56 = vpop.f32.mrf.mxu1 }
 0x1a9   :  { %v506_v57 = vmax.f32 %v504_v54, %v496_v55  ;;  %v498_v58 = vadd.f32 %v497_v52, %v454_v56 }
 0x1aa   :  { %v456_v59 = vpop.f32.mrf.mxu1 }
 0x1ab   :  { %v500_v62 = vadd.f32 %v499_v35, %v456_v59  ;;  %v508_v63 = vmax.f32 %v506_v57, %v498_v58 }
 0x1ac   :  { %v458_v1 = vpop.f32.mrf.mxu1 }
 0x1ad   :  { %v507_v2 = vmax.f32 %v505_v61, %v500_v62  ;;  %v502_v3 = vadd.f32 %v501_v0, %v458_v1  ;;  %v522_v4 = vadd.f32 %v515_v60, %v508_v63 }
 0x1af   :  { %v524_v6 = vmax.f32 %v522_v4, 0.0  ;;  %v509_v7 = vmax.f32 %v507_v2, %v502_v3 }
 0x1b1   :  { %526 = vst [vmem:[%s865_s3] sm:$0xff] %v524_v6  ;;  %v523_v13 = vadd.f32 %v520_v5, %v509_v7 }
 0x1b3   :  { %v525_v14 = vmax.f32 %v523_v13, 0.0 }
 0x1b5   :  { %527 = vst [vmem:[%s865_s3 + $0x8] sm:$0xf] %v525_v14 }

</bundles_post_ra>
